<compile_context>
chip_gen: v6e
topology: v6e:2x2x1
jax: 0.10.0
libtpu: 0.0.40
codegen_flags: <defaults>
</compile_context>

<pallas_src>
import functools

import jax
import jax.numpy as jnp
from jax.experimental import pallas as pl
from jax.experimental.pallas import tpu as pltpu

EPS = 1e-5  # nn.BatchNorm2d default eps


def _shift_lanes(v, d):
    """Circular shift along the lane axis: out[:, p] = v[:, (p + d) % Pw].

    Wrap-around only ever lands on halo / lane-tail positions, which are
    excluded by the interior mask before they influence anything.
    Implemented with slice+concat (explicit, well-defined semantics).
    """
    n = v.shape[1]
    d = d % n
    if d == 0:
        return v
    return jnp.concatenate([v[:, d:], v[:, :d]], axis=1)


def _bn_relu(y, mask, gamma, beta, bias, inv_count, use_bn):
    """Two-pass BatchNorm (batch stats) + ReLU on a (C, Pw) slab.

    Statistics are taken only over interior pixels (mask), and the result is
    re-masked so halo/tail positions are exactly zero for the next layer.
    When use_bn=True the conv bias is skipped by the caller: a per-channel
    constant shifts the mean but not the variance, so BN output is unchanged.
    """
    if use_bn:
        mean = jnp.sum(y * mask, axis=1, keepdims=True) * inv_count
        centered = (y - mean) * mask
        var = jnp.sum(centered * centered, axis=1, keepdims=True) * inv_count
        scale = gamma * jax.lax.rsqrt(var + EPS)
        shift = beta - mean * scale
        y = y * scale + shift
    else:
        y = y + bias
    return jnp.maximum(y, 0.0) * mask


def _encoder_fused_kernel(x_ref, mask_ref, w1_ref, b1_ref, g1_ref, be1_ref,
                          w2_ref, b2_ref, g2_ref, be2_ref, out_ref,
                          *, wp, inv_count, use_bn):
    """Fused 2-layer Encoder forward, whole batch resident in VMEM.

    x_ref   : (1, Pw)     flattened zero-padded input (tail-padded to 128 lanes)
    mask_ref: (1, Pw)     1.0 at interior (real output) pixels, else 0.0
    w1_ref  : (C1, 9)     layer-1 weights, column = tap (kh*3+kw)
    w2_ref  : (C2, 9*C1)  layer-2 weights, column = tap*C1 + cin
    b*/g*/be*: (C, 1)     conv bias / BN gamma / BN beta
    out_ref : (C2, Pw)    channels-first, pixels-on-lanes output slab
    """
    C1 = w1_ref.shape[0]
    pw = x_ref.shape[1]
    # Tap offsets in the flattened padded domain: (kh-1)*Wp + (kw-1).
    taps = [(kh - 1) * wp + (kw - 1) for kh in range(3) for kw in range(3)]

    x = x_ref[...]        # (1, Pw)
    mask = mask_ref[...]  # (1, Pw)

    # ---- Layer 1: 3x3 conv, Cin=1 -> nine VPU broadcast MACs on (C1, Pw) ----
    # (a K=1 matmul would use <1% of the MXU; this layer is VPU/memory bound)
    acc1 = jnp.zeros((C1, pw), jnp.float32)
    for t, d in enumerate(taps):
        acc1 = acc1 + w1_ref[:, t:t + 1] * _shift_lanes(x, d)
    a1 = _bn_relu(acc1, mask, g1_ref[...], be1_ref[...], b1_ref[...],
                  inv_count, use_bn)  # halo/tail positions forced to 0

    # ---- Layer 2: 3x3 conv, Cin=C1 -> ONE transposed im2col matmul ----------
    # lhsT is built as a value (9 lane shifts + one sublane-aligned concat);
    # no scratch, no masked strided stores, no re-read.
    lhsT = jnp.concatenate([_shift_lanes(a1, d) for d in taps], axis=0)  # (9*C1, Pw)
    acc2 = jnp.dot(w2_ref[...], lhsT, preferred_element_type=jnp.float32)  # (C2, Pw)
    y2 = _bn_relu(acc2, mask, g2_ref[...], be2_ref[...], b2_ref[...],
                  inv_count, use_bn)

    out_ref[...] = y2.astype(out_ref.dtype)  # full-width lane-dense store


def encoder_forward(x_nchw, params, use_bn):
    """Fused Encoder forward: NCHW in, NCHW out. Implements num_layers == 2."""
    assert len(params) == 2, "fused Pallas kernel implements num_layers=2"
    N, Cin, H, W = x_nchw.shape
    assert Cin == 1, "Encoder starts at 1 input channel"
    (w1, b1, g1, be1), (w2, b2, g2, be2) = params
    C1, C2 = w1.shape[-1], w2.shape[-1]
    Hp, Wp = H + 2, W + 2
    P = N * Hp * Wp                       # padded flattened pixel count
    Pw = ((P + 127) // 128) * 128         # rounded up to full lane tiles

    # Cin == 1: NCHW -> (N,H,W) is a pure metadata reshape.  Halo-pad once,
    # flatten, tail-pad to Pw lanes.
    xpad = jnp.pad(x_nchw.reshape(N, H, W), ((0, 0), (1, 1), (1, 1)))
    xflat = jnp.pad(xpad.reshape(-1), (0, Pw - P)).reshape(1, Pw)

    # Interior mask: 1.0 exactly at flattened positions that are real pixels.
    idx = jnp.arange(Pw)
    i = (idx // Wp) % Hp
    j = idx % Wp
    interior = (idx < P) & (i >= 1) & (i <= H) & (j >= 1) & (j <= W)
    mask = interior.astype(jnp.float32).reshape(1, Pw)

    vmem = pl.BlockSpec(memory_space=pltpu.MemorySpace.VMEM)
    kernel = functools.partial(_encoder_fused_kernel, wp=Wp,
                               inv_count=1.0 / float(N * H * W), use_bn=use_bn)
    cost = pl.CostEstimate(
        flops=2 * N * H * W * 9 * (Cin * C1 + C1 * C2),
        transcendentals=C1 + C2,
        bytes_accessed=4 * (Pw * (2 + C2) + 9 * Cin * C1 + 9 * C1 * C2
                            + 4 * (C1 + C2)),
    )

    out_t = pl.pallas_call(
        kernel,
        out_shape=jax.ShapeDtypeStruct((C2, Pw), jnp.float32),
        in_specs=[vmem] * 10,
        out_specs=vmem,
        compiler_params=pltpu.CompilerParams(vmem_limit_bytes=32 * 1024 * 1024),
        cost_estimate=cost,
    )(xflat, mask,
      w1.reshape(9, C1).T,                 # (C1, 9)
      b1.reshape(C1, 1), g1.reshape(C1, 1), be1.reshape(C1, 1),
      w2.reshape(9 * C1, C2).T,            # (C2, 9*C1), cols ordered (tap, cin)
      b2.reshape(C2, 1), g2.reshape(C2, 1), be2.reshape(C2, 1))

    # (C2, Pw) -> NCHW: drop lane tail, slice interior, swap two leading axes.
    out = out_t[:, :P].reshape(C2, N, Hp, Wp)[:, :, 1:-1, 1:-1]
    return jnp.transpose(out, (1, 0, 2, 3))


def init_encoder_params(key, num_layers):
    """Deterministic params mirroring the module (start=1, end=32, x2 per layer)."""
    params = []
    start, end = 1, 32
    for _ in range(num_layers):
        key, k1, k2, k3, k4 = jax.random.split(key, 5)
        fan_in = 9 * start
        bound = 1.0 / (fan_in ** 0.5)
        w = jax.random.uniform(k1, (3, 3, start, end), jnp.float32, -bound, bound)  # HWIO
        b = jax.random.uniform(k2, (end,), jnp.float32, -bound, bound)
        gamma = 1.0 + 0.1 * jax.random.normal(k3, (end,), jnp.float32)
        beta = 0.1 * jax.random.normal(k4, (end,), jnp.float32)
        params.append((w, b, gamma, beta))
        start, end = end, end * 2
    return params


def encoder_reference(x_nchw, params, use_bn):
    """Plain-JAX reference (conv + bias + two-pass BN + ReLU) for verification."""
    x = jnp.transpose(x_nchw, (0, 2, 3, 1))
    for (w, b, g, beta) in params:
        x = jax.lax.conv_general_dilated(
            x, w, window_strides=(1, 1), padding='SAME',
            dimension_numbers=('NHWC', 'HWIO', 'NHWC'),
            precision=jax.lax.Precision.HIGHEST) + b
        if use_bn:
            mean = jnp.mean(x, axis=(0, 1, 2), keepdims=True)
            var = jnp.mean((x - mean) ** 2, axis=(0, 1, 2), keepdims=True)
            x = (x - mean) * jax.lax.rsqrt(var + EPS) * g + beta
        x = jnp.maximum(x, 0.0)
    return jnp.transpose(x, (0, 3, 1, 2))


if __name__ == "__main__":
    USE_BATCH_NORM = True
    NUM_LAYERS = 2
    # use_3d=False -> Conv2d / BatchNorm2d path.
    # TODO(synk): use_3d=True (Conv3d / BatchNorm3d) variant not implemented.

    key = jax.random.PRNGKey(0)
    key, xkey = jax.random.split(key)
    x = jax.random.normal(xkey, (2, 1, 16, 16), jnp.float32)   # NCHW, Cin=1

    params = init_encoder_params(key, NUM_LAYERS)

    out = jax.block_until_ready(encoder_forward(x, params, USE_BATCH_NORM))

    ref = encoder_reference(x, params, USE_BATCH_NORM)
    assert out.shape == (2, 64, 16, 16), out.shape
    if not jnp.allclose(out, ref, atol=1e-4, rtol=1e-4):
        raise AssertionError("Pallas encoder output mismatch vs JAX reference")

    print("KERNEL_OK")
</pallas_src>

<mosaic_0001>
module attributes {stable_mosaic.version = 11 : i64} {
  func.func @_encoder_fused_kernel(%arg0: memref<1x768xf32, #tpu.memory_space<vmem>>, %arg1: memref<1x768xf32, #tpu.memory_space<vmem>>, %arg2: memref<32x9xf32, #tpu.memory_space<vmem>>, %arg3: memref<32x1xf32, #tpu.memory_space<vmem>>, %arg4: memref<32x1xf32, #tpu.memory_space<vmem>>, %arg5: memref<32x1xf32, #tpu.memory_space<vmem>>, %arg6: memref<64x288xf32, #tpu.memory_space<vmem>>, %arg7: memref<64x1xf32, #tpu.memory_space<vmem>>, %arg8: memref<64x1xf32, #tpu.memory_space<vmem>>, %arg9: memref<64x1xf32, #tpu.memory_space<vmem>>, %arg10: memref<64x768xf32, #tpu.memory_space<vmem>>) attributes {dimension_semantics = [], scalar_prefetch = 0 : i64, scratch_operands = 0 : i64, tpu.core_type = #tpu.core_type<tc>} {
    %c0 = arith.constant 0 : index
    %c0_0 = arith.constant 0 : index
    %0 = vector.load %arg0[%c0, %c0_0] : memref<1x768xf32, #tpu.memory_space<vmem>>, vector<1x768xf32>
    %c0_1 = arith.constant 0 : index
    %c0_2 = arith.constant 0 : index
    %1 = vector.load %arg1[%c0_1, %c0_2] : memref<1x768xf32, #tpu.memory_space<vmem>>, vector<1x768xf32>
    %cst = arith.constant 0.000000e+00 : f32
    %2 = vector.broadcast %cst : f32 to vector<32x768xf32>
    %c0_3 = arith.constant 0 : index
    %c0_4 = arith.constant 0 : index
    %3 = vector.load %arg2[%c0_3, %c0_4] : memref<32x9xf32, #tpu.memory_space<vmem>>, vector<32x1xf32>
    %4 = vector.extract_strided_slice %0 {offsets = [0, 749], sizes = [1, 19], strides = [1, 1]} : vector<1x768xf32> to vector<1x19xf32>
    %5 = vector.extract_strided_slice %0 {offsets = [0, 0], sizes = [1, 749], strides = [1, 1]} : vector<1x768xf32> to vector<1x749xf32>
    %6 = tpu.concatenate %4, %5 in 1 : vector<1x19xf32>, vector<1x749xf32> -> vector<1x768xf32>
    %7 = vector.broadcast %3 : vector<32x1xf32> to vector<32x768xf32>
    %8 = vector.broadcast %6 : vector<1x768xf32> to vector<32x768xf32>
    %9 = arith.mulf %7, %8 : vector<32x768xf32>
    %10 = arith.addf %2, %9 : vector<32x768xf32>
    %c0_5 = arith.constant 0 : index
    %c1 = arith.constant 1 : index
    %11 = vector.load %arg2[%c0_5, %c1] : memref<32x9xf32, #tpu.memory_space<vmem>>, vector<32x1xf32>
    %12 = vector.extract_strided_slice %0 {offsets = [0, 750], sizes = [1, 18], strides = [1, 1]} : vector<1x768xf32> to vector<1x18xf32>
    %13 = vector.extract_strided_slice %0 {offsets = [0, 0], sizes = [1, 750], strides = [1, 1]} : vector<1x768xf32> to vector<1x750xf32>
    %14 = tpu.concatenate %12, %13 in 1 : vector<1x18xf32>, vector<1x750xf32> -> vector<1x768xf32>
    %15 = vector.broadcast %11 : vector<32x1xf32> to vector<32x768xf32>
    %16 = vector.broadcast %14 : vector<1x768xf32> to vector<32x768xf32>
    %17 = arith.mulf %15, %16 : vector<32x768xf32>
    %18 = arith.addf %10, %17 : vector<32x768xf32>
    %c0_6 = arith.constant 0 : index
    %c2 = arith.constant 2 : index
    %19 = vector.load %arg2[%c0_6, %c2] : memref<32x9xf32, #tpu.memory_space<vmem>>, vector<32x1xf32>
    %20 = vector.extract_strided_slice %0 {offsets = [0, 751], sizes = [1, 17], strides = [1, 1]} : vector<1x768xf32> to vector<1x17xf32>
    %21 = vector.extract_strided_slice %0 {offsets = [0, 0], sizes = [1, 751], strides = [1, 1]} : vector<1x768xf32> to vector<1x751xf32>
    %22 = tpu.concatenate %20, %21 in 1 : vector<1x17xf32>, vector<1x751xf32> -> vector<1x768xf32>
    %23 = vector.broadcast %19 : vector<32x1xf32> to vector<32x768xf32>
    %24 = vector.broadcast %22 : vector<1x768xf32> to vector<32x768xf32>
    %25 = arith.mulf %23, %24 : vector<32x768xf32>
    %26 = arith.addf %18, %25 : vector<32x768xf32>
    %c0_7 = arith.constant 0 : index
    %c3 = arith.constant 3 : index
    %27 = vector.load %arg2[%c0_7, %c3] : memref<32x9xf32, #tpu.memory_space<vmem>>, vector<32x1xf32>
    %28 = vector.extract_strided_slice %0 {offsets = [0, 767], sizes = [1, 1], strides = [1, 1]} : vector<1x768xf32> to vector<1x1xf32>
    %29 = vector.extract_strided_slice %0 {offsets = [0, 0], sizes = [1, 767], strides = [1, 1]} : vector<1x768xf32> to vector<1x767xf32>
    %30 = tpu.concatenate %28, %29 in 1 : vector<1x1xf32>, vector<1x767xf32> -> vector<1x768xf32>
    %31 = vector.broadcast %27 : vector<32x1xf32> to vector<32x768xf32>
    %32 = vector.broadcast %30 : vector<1x768xf32> to vector<32x768xf32>
    %33 = arith.mulf %31, %32 : vector<32x768xf32>
    %34 = arith.addf %26, %33 : vector<32x768xf32>
    %c0_8 = arith.constant 0 : index
    %c4 = arith.constant 4 : index
    %35 = vector.load %arg2[%c0_8, %c4] : memref<32x9xf32, #tpu.memory_space<vmem>>, vector<32x1xf32>
    %36 = vector.broadcast %35 : vector<32x1xf32> to vector<32x768xf32>
    %37 = vector.broadcast %0 : vector<1x768xf32> to vector<32x768xf32>
    %38 = arith.mulf %36, %37 : vector<32x768xf32>
    %39 = arith.addf %34, %38 : vector<32x768xf32>
    %c0_9 = arith.constant 0 : index
    %c5 = arith.constant 5 : index
    %40 = vector.load %arg2[%c0_9, %c5] : memref<32x9xf32, #tpu.memory_space<vmem>>, vector<32x1xf32>
    %41 = vector.extract_strided_slice %0 {offsets = [0, 1], sizes = [1, 767], strides = [1, 1]} : vector<1x768xf32> to vector<1x767xf32>
    %42 = vector.extract_strided_slice %0 {offsets = [0, 0], sizes = [1, 1], strides = [1, 1]} : vector<1x768xf32> to vector<1x1xf32>
    %43 = tpu.concatenate %41, %42 in 1 : vector<1x767xf32>, vector<1x1xf32> -> vector<1x768xf32>
    %44 = vector.broadcast %40 : vector<32x1xf32> to vector<32x768xf32>
    %45 = vector.broadcast %43 : vector<1x768xf32> to vector<32x768xf32>
    %46 = arith.mulf %44, %45 : vector<32x768xf32>
    %47 = arith.addf %39, %46 : vector<32x768xf32>
    %c0_10 = arith.constant 0 : index
    %c6 = arith.constant 6 : index
    %48 = vector.load %arg2[%c0_10, %c6] : memref<32x9xf32, #tpu.memory_space<vmem>>, vector<32x1xf32>
    %49 = vector.extract_strided_slice %0 {offsets = [0, 17], sizes = [1, 751], strides = [1, 1]} : vector<1x768xf32> to vector<1x751xf32>
    %50 = vector.extract_strided_slice %0 {offsets = [0, 0], sizes = [1, 17], strides = [1, 1]} : vector<1x768xf32> to vector<1x17xf32>
    %51 = tpu.concatenate %49, %50 in 1 : vector<1x751xf32>, vector<1x17xf32> -> vector<1x768xf32>
    %52 = vector.broadcast %48 : vector<32x1xf32> to vector<32x768xf32>
    %53 = vector.broadcast %51 : vector<1x768xf32> to vector<32x768xf32>
    %54 = arith.mulf %52, %53 : vector<32x768xf32>
    %55 = arith.addf %47, %54 : vector<32x768xf32>
    %c0_11 = arith.constant 0 : index
    %c7 = arith.constant 7 : index
    %56 = vector.load %arg2[%c0_11, %c7] : memref<32x9xf32, #tpu.memory_space<vmem>>, vector<32x1xf32>
    %57 = vector.extract_strided_slice %0 {offsets = [0, 18], sizes = [1, 750], strides = [1, 1]} : vector<1x768xf32> to vector<1x750xf32>
    %58 = vector.extract_strided_slice %0 {offsets = [0, 0], sizes = [1, 18], strides = [1, 1]} : vector<1x768xf32> to vector<1x18xf32>
    %59 = tpu.concatenate %57, %58 in 1 : vector<1x750xf32>, vector<1x18xf32> -> vector<1x768xf32>
    %60 = vector.broadcast %56 : vector<32x1xf32> to vector<32x768xf32>
    %61 = vector.broadcast %59 : vector<1x768xf32> to vector<32x768xf32>
    %62 = arith.mulf %60, %61 : vector<32x768xf32>
    %63 = arith.addf %55, %62 : vector<32x768xf32>
    %c0_12 = arith.constant 0 : index
    %c8 = arith.constant 8 : index
    %64 = vector.load %arg2[%c0_12, %c8] : memref<32x9xf32, #tpu.memory_space<vmem>>, vector<32x1xf32>
    %65 = vector.extract_strided_slice %0 {offsets = [0, 19], sizes = [1, 749], strides = [1, 1]} : vector<1x768xf32> to vector<1x749xf32>
    %66 = vector.extract_strided_slice %0 {offsets = [0, 0], sizes = [1, 19], strides = [1, 1]} : vector<1x768xf32> to vector<1x19xf32>
    %67 = tpu.concatenate %65, %66 in 1 : vector<1x749xf32>, vector<1x19xf32> -> vector<1x768xf32>
    %68 = vector.broadcast %64 : vector<32x1xf32> to vector<32x768xf32>
    %69 = vector.broadcast %67 : vector<1x768xf32> to vector<32x768xf32>
    %70 = arith.mulf %68, %69 : vector<32x768xf32>
    %71 = arith.addf %63, %70 : vector<32x768xf32>
    %c0_13 = arith.constant 0 : index
    %c0_14 = arith.constant 0 : index
    %72 = vector.load %arg4[%c0_13, %c0_14] : memref<32x1xf32, #tpu.memory_space<vmem>>, vector<32x1xf32>
    %c0_15 = arith.constant 0 : index
    %c0_16 = arith.constant 0 : index
    %73 = vector.load %arg5[%c0_15, %c0_16] : memref<32x1xf32, #tpu.memory_space<vmem>>, vector<32x1xf32>
    %74 = vector.broadcast %1 : vector<1x768xf32> to vector<32x768xf32>
    %75 = arith.mulf %71, %74 : vector<32x768xf32>
    %cst_17 = arith.constant dense<0.000000e+00> : vector<32xf32>
    %76 = vector.multi_reduction <add>, %75, %cst_17 [1] : vector<32x768xf32> to vector<32xf32>
    %77 = vector.shape_cast %76 : vector<32xf32> to vector<32x1xf32>
    %cst_18 = arith.constant 0.001953125 : f32
    %78 = vector.broadcast %cst_18 : f32 to vector<32x1xf32>
    %79 = arith.mulf %77, %78 : vector<32x1xf32>
    %80 = vector.broadcast %79 : vector<32x1xf32> to vector<32x768xf32>
    %81 = arith.subf %71, %80 : vector<32x768xf32>
    %82 = vector.broadcast %1 : vector<1x768xf32> to vector<32x768xf32>
    %83 = arith.mulf %81, %82 : vector<32x768xf32>
    %84 = arith.mulf %83, %83 : vector<32x768xf32>
    %cst_19 = arith.constant dense<0.000000e+00> : vector<32xf32>
    %85 = vector.multi_reduction <add>, %84, %cst_19 [1] : vector<32x768xf32> to vector<32xf32>
    %86 = vector.shape_cast %85 : vector<32xf32> to vector<32x1xf32>
    %cst_20 = arith.constant 0.001953125 : f32
    %87 = vector.broadcast %cst_20 : f32 to vector<32x1xf32>
    %88 = arith.mulf %86, %87 : vector<32x1xf32>
    %cst_21 = arith.constant 9.99999974E-6 : f32
    %89 = vector.broadcast %cst_21 : f32 to vector<32x1xf32>
    %90 = arith.addf %88, %89 : vector<32x1xf32>
    %91 = math.rsqrt %90 : vector<32x1xf32>
    %92 = arith.mulf %72, %91 : vector<32x1xf32>
    %93 = arith.mulf %79, %92 : vector<32x1xf32>
    %94 = arith.subf %73, %93 : vector<32x1xf32>
    %95 = vector.broadcast %92 : vector<32x1xf32> to vector<32x768xf32>
    %96 = arith.mulf %71, %95 : vector<32x768xf32>
    %97 = vector.broadcast %94 : vector<32x1xf32> to vector<32x768xf32>
    %98 = arith.addf %96, %97 : vector<32x768xf32>
    %cst_22 = arith.constant 0.000000e+00 : f32
    %99 = vector.broadcast %cst_22 : f32 to vector<32x768xf32>
    %100 = arith.maximumf %98, %99 : vector<32x768xf32>
    %101 = vector.broadcast %1 : vector<1x768xf32> to vector<32x768xf32>
    %102 = arith.mulf %100, %101 : vector<32x768xf32>
    %103 = vector.extract_strided_slice %102 {offsets = [0, 749], sizes = [32, 19], strides = [1, 1]} : vector<32x768xf32> to vector<32x19xf32>
    %104 = vector.extract_strided_slice %102 {offsets = [0, 0], sizes = [32, 749], strides = [1, 1]} : vector<32x768xf32> to vector<32x749xf32>
    %105 = tpu.concatenate %103, %104 in 1 : vector<32x19xf32>, vector<32x749xf32> -> vector<32x768xf32>
    %106 = vector.extract_strided_slice %102 {offsets = [0, 750], sizes = [32, 18], strides = [1, 1]} : vector<32x768xf32> to vector<32x18xf32>
    %107 = vector.extract_strided_slice %102 {offsets = [0, 0], sizes = [32, 750], strides = [1, 1]} : vector<32x768xf32> to vector<32x750xf32>
    %108 = tpu.concatenate %106, %107 in 1 : vector<32x18xf32>, vector<32x750xf32> -> vector<32x768xf32>
    %109 = vector.extract_strided_slice %102 {offsets = [0, 751], sizes = [32, 17], strides = [1, 1]} : vector<32x768xf32> to vector<32x17xf32>
    %110 = vector.extract_strided_slice %102 {offsets = [0, 0], sizes = [32, 751], strides = [1, 1]} : vector<32x768xf32> to vector<32x751xf32>
    %111 = tpu.concatenate %109, %110 in 1 : vector<32x17xf32>, vector<32x751xf32> -> vector<32x768xf32>
    %112 = vector.extract_strided_slice %102 {offsets = [0, 767], sizes = [32, 1], strides = [1, 1]} : vector<32x768xf32> to vector<32x1xf32>
    %113 = vector.extract_strided_slice %102 {offsets = [0, 0], sizes = [32, 767], strides = [1, 1]} : vector<32x768xf32> to vector<32x767xf32>
    %114 = tpu.concatenate %112, %113 in 1 : vector<32x1xf32>, vector<32x767xf32> -> vector<32x768xf32>
    %115 = vector.extract_strided_slice %102 {offsets = [0, 1], sizes = [32, 767], strides = [1, 1]} : vector<32x768xf32> to vector<32x767xf32>
    %116 = vector.extract_strided_slice %102 {offsets = [0, 0], sizes = [32, 1], strides = [1, 1]} : vector<32x768xf32> to vector<32x1xf32>
    %117 = tpu.concatenate %115, %116 in 1 : vector<32x767xf32>, vector<32x1xf32> -> vector<32x768xf32>
    %118 = vector.extract_strided_slice %102 {offsets = [0, 17], sizes = [32, 751], strides = [1, 1]} : vector<32x768xf32> to vector<32x751xf32>
    %119 = vector.extract_strided_slice %102 {offsets = [0, 0], sizes = [32, 17], strides = [1, 1]} : vector<32x768xf32> to vector<32x17xf32>
    %120 = tpu.concatenate %118, %119 in 1 : vector<32x751xf32>, vector<32x17xf32> -> vector<32x768xf32>
    %121 = vector.extract_strided_slice %102 {offsets = [0, 18], sizes = [32, 750], strides = [1, 1]} : vector<32x768xf32> to vector<32x750xf32>
    %122 = vector.extract_strided_slice %102 {offsets = [0, 0], sizes = [32, 18], strides = [1, 1]} : vector<32x768xf32> to vector<32x18xf32>
    %123 = tpu.concatenate %121, %122 in 1 : vector<32x750xf32>, vector<32x18xf32> -> vector<32x768xf32>
    %124 = vector.extract_strided_slice %102 {offsets = [0, 19], sizes = [32, 749], strides = [1, 1]} : vector<32x768xf32> to vector<32x749xf32>
    %125 = vector.extract_strided_slice %102 {offsets = [0, 0], sizes = [32, 19], strides = [1, 1]} : vector<32x768xf32> to vector<32x19xf32>
    %126 = tpu.concatenate %124, %125 in 1 : vector<32x749xf32>, vector<32x19xf32> -> vector<32x768xf32>
    %127 = tpu.concatenate %105, %108, %111, %114, %102, %117, %120, %123, %126 in 0 : vector<32x768xf32>, vector<32x768xf32>, vector<32x768xf32>, vector<32x768xf32>, vector<32x768xf32>, vector<32x768xf32>, vector<32x768xf32>, vector<32x768xf32>, vector<32x768xf32> -> vector<288x768xf32>
    %c0_23 = arith.constant 0 : index
    %c0_24 = arith.constant 0 : index
    %128 = vector.load %arg6[%c0_23, %c0_24] : memref<64x288xf32, #tpu.memory_space<vmem>>, vector<64x288xf32>
    %cst_25 = arith.constant dense<0.000000e+00> : vector<64x768xf32>
    %129 = tpu.matmul %128, %127, %cst_25 {dimension_numbers = #tpu.dot_dimension_numbers<[1], [0], [0], [1], [0, 0, 1, 1], [], []>} : vector<64x288xf32>, vector<288x768xf32>, vector<64x768xf32> -> vector<64x768xf32>
    %c0_26 = arith.constant 0 : index
    %c0_27 = arith.constant 0 : index
    %130 = vector.load %arg8[%c0_26, %c0_27] : memref<64x1xf32, #tpu.memory_space<vmem>>, vector<64x1xf32>
    %c0_28 = arith.constant 0 : index
    %c0_29 = arith.constant 0 : index
    %131 = vector.load %arg9[%c0_28, %c0_29] : memref<64x1xf32, #tpu.memory_space<vmem>>, vector<64x1xf32>
    %132 = vector.broadcast %1 : vector<1x768xf32> to vector<64x768xf32>
    %133 = arith.mulf %129, %132 : vector<64x768xf32>
    %cst_30 = arith.constant dense<0.000000e+00> : vector<64xf32>
    %134 = vector.multi_reduction <add>, %133, %cst_30 [1] : vector<64x768xf32> to vector<64xf32>
    %135 = vector.shape_cast %134 : vector<64xf32> to vector<64x1xf32>
    %cst_31 = arith.constant 0.001953125 : f32
    %136 = vector.broadcast %cst_31 : f32 to vector<64x1xf32>
    %137 = arith.mulf %135, %136 : vector<64x1xf32>
    %138 = vector.broadcast %137 : vector<64x1xf32> to vector<64x768xf32>
    %139 = arith.subf %129, %138 : vector<64x768xf32>
    %140 = vector.broadcast %1 : vector<1x768xf32> to vector<64x768xf32>
    %141 = arith.mulf %139, %140 : vector<64x768xf32>
    %142 = arith.mulf %141, %141 : vector<64x768xf32>
    %cst_32 = arith.constant dense<0.000000e+00> : vector<64xf32>
    %143 = vector.multi_reduction <add>, %142, %cst_32 [1] : vector<64x768xf32> to vector<64xf32>
    %144 = vector.shape_cast %143 : vector<64xf32> to vector<64x1xf32>
    %cst_33 = arith.constant 0.001953125 : f32
    %145 = vector.broadcast %cst_33 : f32 to vector<64x1xf32>
    %146 = arith.mulf %144, %145 : vector<64x1xf32>
    %cst_34 = arith.constant 9.99999974E-6 : f32
    %147 = vector.broadcast %cst_34 : f32 to vector<64x1xf32>
    %148 = arith.addf %146, %147 : vector<64x1xf32>
    %149 = math.rsqrt %148 : vector<64x1xf32>
    %150 = arith.mulf %130, %149 : vector<64x1xf32>
    %151 = arith.mulf %137, %150 : vector<64x1xf32>
    %152 = arith.subf %131, %151 : vector<64x1xf32>
    %153 = vector.broadcast %150 : vector<64x1xf32> to vector<64x768xf32>
    %154 = arith.mulf %129, %153 : vector<64x768xf32>
    %155 = vector.broadcast %152 : vector<64x1xf32> to vector<64x768xf32>
    %156 = arith.addf %154, %155 : vector<64x768xf32>
    %cst_35 = arith.constant 0.000000e+00 : f32
    %157 = vector.broadcast %cst_35 : f32 to vector<64x768xf32>
    %158 = arith.maximumf %156, %157 : vector<64x768xf32>
    %159 = vector.broadcast %1 : vector<1x768xf32> to vector<64x768xf32>
    %160 = arith.mulf %158, %159 : vector<64x768xf32>
    %c0_36 = arith.constant 0 : index
    %c0_37 = arith.constant 0 : index
    %161 = vector.load %arg10[%c0_36, %c0_37] : memref<64x768xf32, #tpu.memory_space<vmem>>, vector<64x768xf32>
    tpu.vector_store %arg10[%c0_36, %c0_37], %160 {strides = array<i32>} : memref<64x768xf32, #tpu.memory_space<vmem>>, vector<64x768xf32>,
    return
  }
}

</mosaic_0001>

<bundles_post_ra>
// kernel: tpu_custom_call.1
= control target key start
LH: loop header
LB: loop body
LE: loop exit
PB: predicated region body
PF: predicated region fallthrough
CT: control target
= control target key end

     0   :  { %v43_v1 = vlaneseq  ;;  %v3799_v2 = vmov 1   ;;  %s7256_s0 = inlined_call_operand.vmem [shape: f32[1,768], index: 0, kind: input, shape index: {}]   ;;  %s7257_s1 = inlined_call_operand.vmem [shape: f32[1,768], index: 1, kind: input, shape index: {}]   ;;  %s7258_s2 = inlined_call_operand.vmem [shape: f32[32,9], index: 2, kind: input, shape index: {}]   ;;  %s7259_s3 = inlined_call_operand.vmem [shape: f32[32,1], index: 3, kind: input, shape index: {}]   ;;  %s7260_s4 = inlined_call_operand.vmem [shape: f32[32,1], index: 4, kind: input, shape index: {}]   ;;  %s7261_s5 = inlined_call_operand.vmem [shape: f32[32,1], index: 5, kind: input, shape index: {}]   ;;  %s7262_s6 = inlined_call_operand.vmem [shape: f32[64,288], index: 6, kind: input, shape index: {}]   ;;  %s7263_s7 = inlined_call_operand.vmem [shape: f32[64,1], index: 7, kind: input, shape index: {}]   ;;  %s7264_s8 = inlined_call_operand.vmem [shape: f32[64,1], index: 8, kind: input, shape index: {}]   ;;  %s7265_s9 = inlined_call_operand.vmem [shape: f32[64,1], index: 9, kind: input, shape index: {}]   ;;  %s7266_s10 = inlined_call_operand.hbm [shape: f32[64,768], index: 10, kind: output, shape index: {}]  }
   0x1   :  { %v3878_v0 = vld [vmem:[%s7258_s2 + $0x18] sm:$0xff]  ;;  %3716 = vset.pattern.permute.xlu0 %v3799_v2  ;;  %3718 = vset.pattern.permute.xlu1 %v3799_v2  ;;  %v36_v4 = vld [vmem:[%s7256_s0] sm:$0x3f] }
   0x2   :  { %224 = vperm.xlu0 %3716, %v3878_v0   ;;  %v3883_v3 = vshrl.u32 %v43_v1, 7 }
   0x4   :  { %v45_v5 = vsub.s32 5, %v3883_v3  ;;  %v3890_v6 = vsub.s32 0, %v3883_v3 }
   0x5   :  { %15 = vsyncpa [#allocation3], 0  ;;  %v3800_v7 = vmov 0   ;;  %v56_v9 = vsub.s32 1, %v3883_v3  ;;  %s3801_s15 = smov 19   ;;  %v3904_v10 = vld [vmem:[%s7258_s2 + $0x10] sm:$0xff] }
   0x6   :  { %3717 = vset.pattern.permute.xlu0 %v3800_v7  ;;  %v3895_v8 = vrot.slane %v36_v4, %v45_v5  ;;  %v3907_v11 = vrot.slane %v36_v4, %v3890_v6  ;;  %s3802_s17 = smov 18   ;;  %v60_v13 = vsub.s32 2, %v3883_v3  ;;  %v3803_v14 = vmov 2   ;;  %s3805_s18 = smov 17   ;;  %v3944_v18 = vld [vmem:[%s7258_s2 + $0x8] sm:$0xff]  ;;  %v3971_v20 = vld [vmem:[%s7258_s2] sm:$0xff] }
   0x7   :  { %110 = vperm.xlu0 %3717, %v3878_v0   ;;  %v3912_v12 = vrot.slane %v36_v4, %v56_v9  ;;  %v3804_v16 = vmov 3   ;;  %v64_v17 = vsub.s32 3, %v3883_v3  ;;  %s3806_s21 = smov 1   ;;  %v68_v21 = vsub.s32 4, %v3883_v3  ;;  %s3807_s2 = smov 127  }
   0x8   :  { %7414 = vst [vmem:[#allocation5_spill] sm:$0xff] %v3895_v8  ;;  %47 = vrot.lane.b32.xlu1 %v3895_v8, %s3801_s15  ;;  %7415 = vst [vmem:[#allocation6_spill] sm:$0xff] %v3907_v11  ;;  %v3924_v15 = vrot.slane %v36_v4, %v60_v13  ;;  %v3808_v23 = vmov 5   ;;  %v3809_v24 = vmov 4   ;;  %s3810_s24 = smov 111   ;;  %v3811_v25 = vmov 6  }
   0x9   :  { %7416 = vst [vmem:[#allocation7_spill] sm:$0xff] %v3912_v12  ;;  %v3949_v19 = vrot.slane %v36_v4, %v64_v17  ;;  %v3981_v22 = vrot.slane %v36_v4, %v68_v21  ;;  %s3812_s25 = smov 110   ;;  %v3813_v26 = vmov 7   ;;  %s3814_s26 = smov 109   ;;  %v3815_v33 = vmov 8  }
   0xa   :  { %7417 = vst [vmem:[#allocation8_spill] sm:$0xff] %v3924_v15  ;;  %vm198_vm0 = vcmask 146432   ;;  %vm80_vm1 = vcmask 154624   ;;  %vm312_vm2 = vcmask 138240   ;;  %vm426_vm3 = vcmask 7168  }
   0xb   :  { %105 = vperm.xlu0 %3717, %v3904_v10   ;;  %7418 = vst [vmem:[#allocation9_spill] sm:$0xff] %v3949_v19  ;;  %7419 = vst [vmem:[#allocation10_spill] sm:$0xff] %v3981_v22  ;;  %vm723_vm4 = vcmask 908288   ;;  %vm609_vm5 = vcmask 1039360   ;;  %vm837_vm6 = vcmask 900096   ;;  %vm951_vm7 = vcmask 891904  }
   0xc   :  { %70 = vrot.lane.b32.xlu1 %v3907_v11, %s3801_s15  ;;  %vm2256_vm8 = vcmask 261120  }
   0xf   :  { %190 = vrot.lane.b32.xlu0 %v3912_v12, %s3802_s17 }
  0x10   :  { %72 = vrot.lane.b32.xlu1 %v3912_v12, %s3801_s15  ;;  %3719 = vset.pattern.permute.xlu0 %v3803_v14 }
  0x13   :  { %338 = vperm.xlu0 %3719, %v3878_v0  }
  0x14   :  { %185 = vrot.lane.b32.xlu1 %v3895_v8, %s3802_s17 }
  0x17   :  { %192 = vrot.lane.b32.xlu0 %v3924_v15, %s3802_s17 }
  0x18   :  { %188 = vrot.lane.b32.xlu1 %v3907_v11, %s3802_s17  ;;  %3723 = vset.pattern.permute.xlu0 %v3804_v16 }
  0x1b   :  { %299 = vrot.lane.b32.xlu0 %v3895_v8, %s3805_s18 }
  0x1c   :  { %220 = vperm.xlu1 %3718, %v3904_v10  }
  0x1f   :  { %304 = vrot.lane.b32.xlu0 %v3912_v12, %s3805_s18 }
  0x20   :  { %74 = vrot.lane.b32.xlu1 %v3924_v15, %s3801_s15 }
  0x21   :  { %3720 = vset.pattern.permute.xlu1 %v3800_v7 }
  0x23   :  { %452 = vperm.xlu0 %3723, %v3878_v0  }
  0x24   :  { %100 = vperm.xlu1 %3720, %v3944_v18  }
  0x27   :  { %194 = vrot.lane.b32.xlu0 %v3949_v19, %s3802_s17 }
  0x28   :  { %3721 = vset.pattern.permute.xlu1 %v3799_v2 }
  0x29   :  { %216 = vperm.xlu1 %3721, %v3944_v18  }
  0x2b   :  { %306 = vrot.lane.b32.xlu0 %v3924_v15, %s3805_s18 }
  0x2d   :  { %302 = vrot.lane.b32.xlu1 %v3907_v11, %s3805_s18 }
  0x2e   :  { %3722 = vset.pattern.permute.xlu1 %v3803_v14 }
  0x2f   :  { %413 = vrot.lane.b32.xlu0 %v3895_v8, %s3806_s21 }
  0x31   :  { %334 = vperm.xlu1 %3722, %v3904_v10  }
  0x33   :  { %418 = vrot.lane.b32.xlu0 %v3912_v12, %s3806_s21 }
  0x35   :  { %76 = vrot.lane.b32.xlu1 %v3949_v19, %s3801_s15 }
  0x36   :  { %3724 = vset.pattern.permute.xlu1 %v3800_v7 }
  0x37   :  { %308 = vrot.lane.b32.xlu0 %v3949_v19, %s3805_s18 }
  0x39   :  { %95 = vperm.xlu1 %3724, %v3971_v20  }
  0x3b   :  { %420 = vrot.lane.b32.xlu0 %v3924_v15, %s3806_s21 }
  0x3d   :  { %3725 = vset.pattern.permute.xlu1 %v3799_v2 }
  0x3e   :  { %212 = vperm.xlu1 %3725, %v3971_v20  }
  0x3f   :  { %310 = vrot.lane.b32.xlu0 %v3981_v22, %s3805_s18 }
  0x42   :  { %3726 = vset.pattern.permute.xlu1 %v3803_v14 }
  0x43   :  { %440 = vperm.xlu0 %3723, %v3971_v20   ;;  %330 = vperm.xlu1 %3726, %v3944_v18  }
  0x47   :  { %599 = vrot.lane.b32.xlu0 %v3912_v12, %s3807_s2  ;;  %416 = vrot.lane.b32.xlu1 %v3907_v11, %s3806_s21 }
  0x48   :  { %3732 = vset.pattern.permute.xlu0 %v3808_v23  ;;  %3727 = vset.pattern.permute.xlu1 %v3804_v16 }
  0x4b   :  { %632 = vperm.xlu0 %3732, %v3904_v10   ;;  %448 = vperm.xlu1 %3727, %v3904_v10  }
  0x4f   :  { %3733 = vset.pattern.permute.xlu0 %v3809_v24  ;;  %78 = vrot.lane.b32.xlu1 %v3981_v22, %s3801_s15 }
  0x50   :  { %540 = vperm.xlu0 %3733, %v3878_v0   ;;  %3728 = vset.pattern.permute.xlu1 %v3803_v14 }
  0x53   :  { %196 = vrot.lane.b32.xlu1 %v3981_v22, %s3802_s17 }
  0x54   :  { %536 = vperm.xlu0 %3733, %v3904_v10  }
  0x57   :  { %326 = vperm.xlu1 %3728, %v3971_v20  }
  0x58   :  { %528 = vperm.xlu0 %3733, %v3971_v20  }
  0x5b   :  { %3729 = vset.pattern.permute.xlu1 %v3804_v16 }
  0x5c   :  { %711 = vrot.lane.b32.xlu0 %v3907_v11, %s3810_s24  ;;  %444 = vperm.xlu1 %3729, %v3944_v18  }
  0x5d   :  { %3740 = vset.pattern.permute.xlu0 %v3811_v25 }
  0x60   :  { %715 = vrot.lane.b32.xlu0 %v3924_v15, %s3810_s24  ;;  %3730 = vset.pattern.permute.xlu1 %v3808_v23 }
  0x61   :  { %636 = vperm.xlu1 %3730, %v3878_v0  }
  0x64   :  { %717 = vrot.lane.b32.xlu0 %v3949_v19, %s3810_s24 }
  0x65   :  { %422 = vrot.lane.b32.xlu1 %v3949_v19, %s3806_s21 }
  0x66   :  { %3731 = vset.pattern.permute.xlu1 %v3809_v24 }
  0x68   :  { %825 = vrot.lane.b32.xlu0 %v3907_v11, %s3812_s25 }
  0x69   :  { %532 = vperm.xlu1 %3731, %v3944_v18  }
  0x6c   :  { %829 = vrot.lane.b32.xlu0 %v3924_v15, %s3812_s25 }
  0x6d   :  { %597 = vrot.lane.b32.xlu1 %v3907_v11, %s3807_s2 }
  0x6e   :  { %3734 = vset.pattern.permute.xlu1 %v3811_v25 }
  0x70   :  { %738 = vperm.xlu0 %3740, %v3971_v20  }
  0x71   :  { %601 = vrot.lane.b32.xlu1 %v3924_v15, %s3807_s2 }
  0x74   :  { %3741 = vset.pattern.permute.xlu0 %v3813_v26 }
  0x75   :  { %864 = vperm.xlu0 %3741, %v3878_v0   ;;  %750 = vperm.xlu1 %3734, %v3878_v0  }
  0x79   :  { %424 = vrot.lane.b32.xlu1 %v3981_v22, %s3806_s21  ;;  %939 = vrot.lane.b32.xlu0 %v3907_v11, %s3814_s26 }
  0x7a   :  { %3735 = vset.pattern.permute.xlu1 %v3808_v23  ;;  %v4029_v27 = vpop.permute.xlu1 %47 }
  0x7b   :  { %7420 = vst [vmem:[#allocation11_spill] sm:$0xff] %v4029_v27 }
  0x7d   :  { %603 = vrot.lane.b32.xlu1 %v3949_v19, %s3807_s2  ;;  %v4033_v28 = vpop.permute.xlu0 %224  ;;  %943 = vrot.lane.b32.xlu0 %v3924_v15, %s3814_s26 }
  0x7e   :  { %7421 = vst [vmem:[#allocation12_spill] sm:$0xff] %v4033_v28  ;;  %v4037_v29 = vpop.permute.xlu1 %70 }
  0x81   :  { %628 = vperm.xlu1 %3735, %v3944_v18   ;;  %721 = vrot.lane.b32.xlu0 %v3895_v8, %s3810_s24 }
  0x82   :  { %v4042_v30 = vpop.permute.xlu0 %110  ;;  %v4049_v32 = vpop.permute.xlu1 %72 }
  0x83   :  { %v81_v1 = vsel %vm80_vm1, %v4037_v29, %v4049_v32 }
  0x85   :  { %713 = vrot.lane.b32.xlu1 %v3912_v12, %s3810_s24  ;;  %852 = vperm.xlu0 %3741, %v3971_v20  }
  0x86   :  { %v4047_v31 = vpop.permute.xlu0 %105  ;;  %3736 = vset.pattern.permute.xlu1 %v3811_v25  ;;  %v4055_v35 = vpop.permute.xlu1 %185 }
  0x87   :  { %7422 = vst [vmem:[#allocation13_spill] sm:$0xff] %v4055_v35 }
  0x89   :  { %746 = vperm.xlu1 %3736, %v3904_v10   ;;  %3743 = vset.pattern.permute.xlu0 %v3815_v33 }
  0x8a   :  { %v4052_v34 = vpop.permute.xlu0 %190  ;;  %978 = vperm.xlu0 %3743, %v3878_v0   ;;  %v189_v38 = vpop.permute.xlu1 %188  ;;  %v92_v0 = vsel %vm80_vm1, %v4029_v27, %v4037_v29 }
  0x8b   :  { %v199_v62 = vsel %vm198_vm0, %v189_v38, %v4052_v34  ;;  %v210_v63 = vsel %vm198_vm0, %v4055_v35, %v189_v38 }
  0x8c   :  { %v4156_v14 = vrot.slane %v210_v63, %v3890_v6  ;;  %v4159_v16 = vrot.slane %v199_v62, %v3890_v6 }
  0x8d   :  { %605 = vrot.lane.b32.xlu1 %v3981_v22, %s3807_s2 }
  0x8e   :  { %v4059_v36 = vpop.permute.xlu0 %338  ;;  %3737 = vset.pattern.permute.xlu1 %v3808_v23  ;;  %835 = vrot.lane.b32.xlu0 %v3895_v8, %s3812_s25 }
  0x91   :  { %624 = vperm.xlu1 %3737, %v3971_v20  }
  0x92   :  { %v4064_v37 = vpop.permute.xlu0 %192  ;;  %966 = vperm.xlu0 %3743, %v3971_v20   ;;  %v4165_v20 = vrot.slane %v81_v1, %v3890_v6 }
  0x94   :  { %v150_v1 = vmul.f32 %v4165_v20, %v4047_v31 }
  0x95   :  { %3738 = vset.pattern.permute.xlu1 %v3811_v25 }
  0x96   :  { %v4067_v39 = vpop.permute.xlu0 %299  ;;  %742 = vperm.xlu1 %3738, %v3944_v18   ;;  %3744 = vset.pattern.permute.xlu0 %v3800_v7 }
  0x97   :  { %v4071_v40 = vpop.permute.xlu1 %220 }
  0x98   :  { %7423 = vst [vmem:[#allocation14_spill] sm:$0xff] %v4071_v40 }
  0x9a   :  { %v4073_v41 = vpop.permute.xlu0 %304  ;;  %827 = vrot.lane.b32.xlu1 %v3912_v12, %s3812_s25 }
  0x9b   :  { %v4077_v42 = vpop.permute.xlu1 %74  ;;  %3739 = vset.pattern.permute.xlu1 %v3813_v26 }
  0x9e   :  { %v4079_v43 = vpop.permute.xlu0 %452  ;;  %860 = vperm.xlu1 %3739, %v3904_v10  }
  0x9f   :  { %7424 = vst [vmem:[#allocation15_spill] sm:$0xff] %v4079_v43  ;;  %v4082_v44 = vpop.permute.xlu1 %100 }
  0xa2   :  { %v4084_v45 = vpop.permute.xlu0 %194  ;;  %607 = vrot.lane.b32.xlu1 %v3895_v8, %s3807_s2 }
  0xa3   :  { %7425 = vst [vmem:[#allocation16_spill] sm:$0xff] %v4084_v45 }
  0xa4   :  { %v4088_v46 = vpop.permute.xlu1 %216 }
  0xa5   :  { %7426 = vst [vmem:[#allocation17_spill] sm:$0xff] %v4088_v46 }
  0xa6   :  { %v4090_v47 = vpop.permute.xlu0 %306  ;;  %719 = vrot.lane.b32.xlu1 %v3981_v22, %s3810_s24 }
  0xa7   :  { %v314_v3 = vsel %vm312_vm2, %v4073_v41, %v4090_v47 }
  0xa8   :  { %v4094_v48 = vpop.permute.xlu1 %302 }
  0xaa   :  { %v4096_v49 = vpop.permute.xlu0 %413  ;;  %831 = vrot.lane.b32.xlu1 %v3949_v19, %s3812_s25 }
  0xab   :  { %7427 = vst [vmem:[#allocation18_spill] sm:$0xff] %v4096_v49 }
  0xac   :  { %v4100_v50 = vpop.permute.xlu1 %334 }
  0xae   :  { %v4102_v51 = vpop.permute.xlu0 %418  ;;  %856 = vperm.xlu1 %3739, %v3944_v18  }
  0xb0   :  { %v4105_v52 = vpop.permute.xlu1 %76 }
  0xb2   :  { %v4107_v53 = vpop.permute.xlu0 %308  ;;  %941 = vrot.lane.b32.xlu1 %v3912_v12, %s3814_s26 }
  0xb3   :  { %3742 = vset.pattern.permute.xlu1 %v3815_v33  ;;  %v270_v33 = vmul.f32 %v4159_v16, %v4033_v28 }
  0xb4   :  { %v4111_v54 = vpop.permute.xlu1 %95 }
  0xb6   :  { %v4113_v55 = vpop.permute.xlu0 %420  ;;  %974 = vperm.xlu1 %3742, %v3904_v10   ;;  %v4153_v10 = vld [vmem:[%s7257_s1] sm:$0x3f] }
  0xb7   :  { %7428 = vst [vmem:[#allocation19_spill] sm:$0xff] %v4113_v55  ;;  %7432 = vst [vmem:[#allocation23_spill] sm:$0xff] %v4153_v10  ;;  %v4173_v23 = vrot.slane %v4153_v10, %v45_v5  ;;  %v4182_v25 = vrot.slane %v4153_v10, %v56_v9  ;;  %v4187_v26 = vrot.slane %v4153_v10, %v60_v13 }
  0xb8   :  { %v200_v5 = vsel %vm198_vm0, %v4052_v34, %v4064_v37  ;;  %v269_v9 = vmul.f32 %v4156_v14, %v4033_v28  ;;  %v4209_v34 = vrot.slane %v4153_v10, %v68_v21 }
  0xb9   :  { %v4116_v56 = vpop.permute.xlu1 %212  ;;  %7433 = vst [vmem:[#allocation24_spill] sm:$0xff] %v4173_v23  ;;  %7434 = vst [vmem:[#allocation25_spill] sm:$0xff] %v4182_v25  ;;  %v4218_v63 = vrot.slane %v200_v5, %v3890_v6  ;;  %v313_v5 = vsel %vm312_vm2, %v4094_v48, %v4073_v41  ;;  %v324_v23 = vsel %vm312_vm2, %v4067_v39, %v4094_v48 }
  0xba   :  { %v4118_v57 = vpop.permute.xlu0 %310  ;;  %833 = vrot.lane.b32.xlu1 %v3981_v22, %s3812_s25  ;;  %7435 = vst [vmem:[#allocation26_spill] sm:$0xff] %v4187_v26  ;;  %7438 = vst [vmem:[#allocation29_spill] sm:$0xff] %v4209_v34  ;;  %v83_v48 = vsel %vm80_vm1, %v4077_v42, %v4105_v52 }
  0xbe   :  { %945 = vrot.lane.b32.xlu1 %v3949_v19, %s3814_s26  ;;  %v4124_v58 = vpop.permute.xlu1 %330  ;;  %v4126_v59 = vpop.permute.xlu0 %440 }
  0xc2   :  { %970 = vperm.xlu1 %3742, %v3944_v18   ;;  %v4129_v60 = vpop.permute.xlu1 %416  ;;  %v4131_v61 = vpop.permute.xlu0 %599  ;;  %v4162_v18 = vrot.slane %v92_v0, %v3890_v6  ;;  %v263_v0 = vmul.f32 %v4156_v14, %v4071_v40 }
  0xc3   :  { %7429 = vst [vmem:[#allocation20_spill] sm:$0xff] %v4131_v61  ;;  %v271_v61 = vmul.f32 %v4218_v63, %v4033_v28 }
  0xc4   :  { %v155_v38 = vmul.f32 %v4162_v18, %v4042_v30  ;;  %v149_v62 = vmul.f32 %v4162_v18, %v4047_v31 }
  0xc6   :  { %v4143_v2 = vpop.permute.xlu1 %448  ;;  %v4145_v4 = vpop.permute.xlu0 %632  ;;  %947 = vrot.lane.b32.xlu1 %v3981_v22, %s3814_s26  ;;  %v144_v22 = vmul.f32 %v4165_v20, %v4082_v44 }
  0xc7   :  { %7430 = vst [vmem:[#allocation21_spill] sm:$0xff] %v4143_v2  ;;  %7431 = vst [vmem:[#allocation22_spill] sm:$0xff] %v4145_v4  ;;  %3745 = vset.pattern.permute.xlu1 %v3800_v7  ;;  %v82_v7 = vsel %vm80_vm1, %v4049_v32, %v4077_v42  ;;  %v4197_v32 = vrot.slane %v4153_v10, %v64_v17  ;;  %v156_v17 = vmul.f32 %v4165_v20, %v4042_v30 }
  0xc8   :  { %v4204_v13 = vrot.slane %v82_v7, %v3890_v6  ;;  %v264_v7 = vmul.f32 %v4159_v16, %v4071_v40  ;;  %v201_v4 = vsel %vm198_vm0, %v4064_v37, %v4084_v45  ;;  %v4260_v37 = vrot.slane %v313_v5, %v3890_v6 }
  0xc9   :  { %7437 = vst [vmem:[#allocation28_spill] sm:$0xff] %v4197_v32  ;;  %v293_v32 = vadd.f32 %v269_v9, %v155_v38  ;;  %v294_v26 = vadd.f32 %v270_v33, %v156_v17  ;;  %v265_v9 = vmul.f32 %v4218_v63, %v4071_v40  ;;  %v287_v33 = vadd.f32 %v263_v0, %v149_v62 }
  0xca   :  { %v4175_v24 = vpop.permute.xlu1 %78  ;;  %949 = vrot.lane.b32.xlu1 %v3895_v8, %s3814_s26  ;;  %v151_v25 = vmul.f32 %v4204_v13, %v4047_v31  ;;  %v157_v41 = vmul.f32 %v4204_v13, %v4042_v30  ;;  %v4249_v8 = vrot.slane %v314_v3, %v3890_v6  ;;  %v4257_v38 = vrot.slane %v324_v23, %v3890_v6 }
  0xcb   :  { %v4192_v29 = vpop.permute.xlu0 %540  ;;  %v143_v3 = vmul.f32 %v4162_v18, %v4082_v44  ;;  %v242_v42 = vrot.slane %v201_v4, %v3890_v6  ;;  %v145_v23 = vmul.f32 %v4204_v13, %v4082_v44  ;;  %v257_v0 = vmul.f32 %v4156_v14, %v4088_v46 }
  0xcc   :  { %7436 = vst [vmem:[#allocation27_spill] sm:$0xff] %v4192_v29  ;;  %v289_v62 = vadd.f32 %v265_v9, %v151_v25  ;;  %v128_v5 = vrot.slane %v83_v48, %v3890_v6  ;;  %v385_v4 = vmul.f32 %v4249_v8, %v4059_v36  ;;  %v383_v25 = vmul.f32 %v4257_v38, %v4059_v36 }
  0xcd   :  { %v384_v9 = vmul.f32 %v4260_v37, %v4059_v36  ;;  %v315_v48 = vsel %vm312_vm2, %v4090_v47, %v4107_v53  ;;  %v378_v15 = vmul.f32 %v4260_v37, %v4100_v50  ;;  %v379_v12 = vmul.f32 %v4249_v8, %v4100_v50 }
  0xce   :  { %v4225_v21 = vpop.permute.xlu1 %196  ;;  %v272_v47 = vmul.f32 %v242_v42, %v4033_v28  ;;  %v260_v35 = vmul.f32 %v242_v42, %v4088_v46  ;;  %v4310_v10 = vrot.slane %v315_v48, %v3890_v6  ;;  %v4317_v2 = vadd.f32 %v383_v25, %v293_v32 }
  0xcf   :  { %7439 = vst [vmem:[#allocation30_spill] sm:$0xff] %v4225_v21  ;;  %v4237_v34 = vpop.permute.xlu0 %536  ;;  %v158_v21 = vmul.f32 %v128_v5, %v4042_v30  ;;  %v4319_v28 = vadd.f32 %v384_v9, %v294_v26  ;;  %v316_v32 = vsel %vm312_vm2, %v4107_v53, %v4118_v57  ;;  %v252_v53 = vmul.f32 %v4159_v16, %v4116_v56 }
  0xd0   :  { %7440 = vst [vmem:[#allocation31_spill] sm:$0xff] %v4237_v34  ;;  %v288_v34 = vadd.f32 %v264_v7, %v150_v1  ;;  %v295_v1 = vadd.f32 %v271_v61, %v157_v41  ;;  %v258_v7 = vmul.f32 %v4159_v16, %v4088_v46  ;;  %v428_v61 = vsel %vm426_vm3, %v4102_v51, %v4113_v55 }
  0xd1   :  { %v266_v41 = vmul.f32 %v242_v42, %v4071_v40  ;;  %v281_v55 = vadd.f32 %v257_v0, %v143_v3  ;;  %v152_v40 = vmul.f32 %v128_v5, %v4047_v31  ;;  %v4313_v27 = vrot.slane %v428_v61, %v3890_v6 }
  0xd2   :  { %v4262_v17 = vpop.permute.xlu1 %326  ;;  %v4306_v45 = vadd.f32 %v258_v7, %v144_v22  ;;  %v4323_v0 = vadd.f32 %v378_v15, %v288_v34  ;;  %v4325_v22 = vadd.f32 %v379_v12, %v289_v62  ;;  %v146_v7 = vmul.f32 %v128_v5, %v4082_v44 }
  0xd3   :  { %7441 = vst [vmem:[#allocation32_spill] sm:$0xff] %v4262_v17  ;;  %v4269_v19 = vpop.permute.xlu0 %528  ;;  %v259_v17 = vmul.f32 %v4218_v63, %v4088_v46  ;;  %v290_v46 = vadd.f32 %v266_v41, %v152_v40  ;;  %v296_v12 = vadd.f32 %v272_v47, %v158_v21  ;;  %v380_v26 = vmul.f32 %v4310_v10, %v4100_v50 }
  0xd4   :  { %7442 = vst [vmem:[#allocation33_spill] sm:$0xff] %v4269_v19  ;;  %v377_v19 = vmul.f32 %v4257_v38, %v4100_v50  ;;  %v386_v40 = vmul.f32 %v4310_v10, %v4059_v36  ;;  %v251_v34 = vmul.f32 %v4156_v14, %v4116_v56  ;;  %v254_v21 = vmul.f32 %v242_v42, %v4116_v56 }
  0xd5   :  { %v427_v14 = vsel %vm426_vm3, %v4129_v60, %v4102_v51  ;;  %v140_v42 = vmul.f32 %v128_v5, %v4111_v54  ;;  %v4374_v25 = vadd.f32 %v380_v26, %v290_v46 }
  0xd6   :  { %v4321_v3 = vadd.f32 %v377_v19, %v287_v33  ;;  %v317_v19 = vsel %vm312_vm2, %v4118_v57, %v4067_v39  ;;  %v253_v39 = vmul.f32 %v4218_v63, %v4116_v56  ;;  %v438_v57 = vsel %vm426_vm3, %v4096_v49, %v4129_v60 }
  0xd7   :  { %v4299_v29 = vpop.permute.xlu1 %444  ;;  %v4301_v11 = vpop.permute.xlu0 %711  ;;  %v4357_v33 = vrot.slane %v316_v32, %v3890_v6  ;;  %v4360_v62 = vrot.slane %v317_v19, %v3890_v6  ;;  %v138_v63 = vmul.f32 %v4165_v20, %v4111_v54  ;;  %7448 = vst [vmem:[#allocation39_spill] sm:$0xff] %v4374_v25  ;;  %v4376_v9 = vadd.f32 %v386_v40, %v296_v12 }
  0xd8   :  { %7443 = vst [vmem:[#allocation34_spill] sm:$0xff] %v4299_v29  ;;  %7444 = vst [vmem:[#allocation35_spill] sm:$0xff] %v4301_v11  ;;  %v4315_v29 = vadd.f32 %v259_v17, %v145_v23  ;;  %v409_v11 = vadd.f32 %v385_v4, %v295_v1  ;;  %v137_v17 = vmul.f32 %v4162_v18, %v4111_v54 }
  0xd9   :  { %v499_v18 = vmul.f32 %v4313_v27, %v4079_v43  ;;  %v284_v23 = vadd.f32 %v260_v35, %v146_v7  ;;  %v139_v1 = vmul.f32 %v4204_v13, %v4111_v54  ;;  %7449 = vst [vmem:[#allocation40_spill] sm:$0xff] %v4376_v9  ;;  %v4381_v51 = vrot.slane %v438_v57, %v3890_v6  ;;  %v7459_v57 = vld [vmem:[#allocation21_spill] sm:$0xff] }
  0xda   :  { %v4383_v35 = vadd.f32 %v251_v34, %v137_v17  ;;  %v4385_v60 = vadd.f32 %v252_v53, %v138_v63  ;;  %v371_v20 = vmul.f32 %v4257_v38, %v4124_v58  ;;  %v4390_v13 = vrot.slane %v427_v14, %v3890_v6  ;;  %v7460_v14 = vld [vmem:[#allocation11_spill] sm:$0xff]  ;;  %v7468_v9 = vld [vmem:[#allocation13_spill] sm:$0xff] }
  0xdb   :  { %v4328_v48 = vpop.permute.xlu0 %715  ;;  %v4378_v61 = vadd.f32 %v499_v18, %v409_v11  ;;  %v4392_v5 = vadd.f32 %v253_v39, %v139_v1  ;;  %v4394_v46 = vadd.f32 %v254_v21, %v140_v42  ;;  %v4398_v11 = vmul.f32 %v4357_v33, %v4100_v50 }
  0xdc   :  { %7445 = vst [vmem:[#allocation36_spill] sm:$0xff] %v4328_v48  ;;  %v4338_v15 = vpop.permute.xlu1 %636  ;;  %v4402_v41 = vmul.f32 %v4360_v62, %v4100_v50  ;;  %v4408_v7 = vmul.f32 %v4357_v33, %v4059_v36  ;;  %v372_v17 = vmul.f32 %v4260_v37, %v4124_v58  ;;  %v373_v32 = vmul.f32 %v4249_v8, %v4124_v58 }
  0xdd   :  { %7446 = vst [vmem:[#allocation37_spill] sm:$0xff] %v4338_v15  ;;  %7450 = vst [vmem:[#allocation41_spill] sm:$0xff] %v4378_v61  ;;  %v374_v19 = vmul.f32 %v4310_v10, %v4124_v58  ;;  %v4420_v50 = vmul.f32 %v4360_v62, %v4059_v36  ;;  %v4424_v26 = vmul.f32 %v4357_v33, %v4124_v58 }
  0xde   :  { %7451 = vst [vmem:[#allocation42_spill] sm:$0xff] %v4398_v11  ;;  %7452 = vst [vmem:[#allocation43_spill] sm:$0xff] %v4402_v41  ;;  %v4428_v40 = vmul.f32 %v4360_v62, %v4124_v58  ;;  %v497_v18 = vmul.f32 %v4381_v51, %v4079_v43  ;;  %v4432_v34 = vadd.f32 %v371_v20, %v281_v55  ;;  %v7488_v41 = vld [vmem:[#allocation14_spill] sm:$0xff] }
  0xdf   :  { %v4365_v16 = vpop.permute.xlu0 %717  ;;  %7454 = vst [vmem:[#allocation45_spill] sm:$0xff] %v4408_v7  ;;  %7456 = vst [vmem:[#allocation47_spill] sm:$0xff] %v4420_v50  ;;  %v4436_v53 = vmul.f32 %v4313_v27, %v4126_v59  ;;  %v498_v36 = vmul.f32 %v4390_v13, %v4079_v43  ;;  %v84_v39 = vsel %vm80_vm1, %v4105_v52, %v4175_v24 }
  0xe0   :  { %7447 = vst [vmem:[#allocation38_spill] sm:$0xff] %v4365_v16  ;;  %v4372_v4 = vpop.permute.xlu1 %422  ;;  %7457 = vst [vmem:[#allocation48_spill] sm:$0xff] %v4424_v26  ;;  %v491_v58 = vmul.f32 %v4381_v51, %v7459_v57  ;;  %v492_v21 = vmul.f32 %v4390_v13, %v7459_v57  ;;  %v493_v55 = vmul.f32 %v4313_v27, %v7459_v57  ;;  %v7493_v16 = vld [vmem:[#allocation12_spill] sm:$0xff] }
  0xe1   :  { %7458 = vst [vmem:[#allocation49_spill] sm:$0xff] %v4428_v40  ;;  %v85_v63 = vsel %vm80_vm1, %v4175_v24, %v7460_v14  ;;  %v4455_v42 = vadd.f32 %v372_v17, %v4306_v45  ;;  %v4458_v52 = vadd.f32 %v373_v32, %v4315_v29  ;;  %v4462_v20 = vmul.f32 %v4381_v51, %v4126_v59  ;;  %v7464_v17 = vld [vmem:[#allocation23_spill] sm:$0xff]  ;;  %v7467_v14 = vld [vmem:[#allocation16_spill] sm:$0xff] }
  0xe2   :  { %v4470_v61 = vmul.f32 %v4390_v13, %v4126_v59  ;;  %v521_v24 = vadd.f32 %v497_v18, %v4317_v2  ;;  %v132_v45 = vrot.slane %v84_v39, %v3890_v6  ;;  %v4476_v29 = vrot.slane %v7464_v17, %v3890_v6 }
  0xe3   :  { %v4404_v47 = vpop.permute.xlu0 %825  ;;  %v4479_v32 = vadd.f32 %v498_v36, %v4319_v28  ;;  %v515_v2 = vadd.f32 %v491_v58, %v4321_v3  ;;  %v4490_v18 = vadd.f32 %v492_v21, %v4323_v0  ;;  %v4493_v39 = vadd.f32 %v493_v55, %v4325_v22  ;;  %v7470_v28 = vld [vmem:[#allocation6_spill] sm:$0xff]  ;;  %v7471_v36 = vld [vmem:[#allocation27_spill] sm:$0xff]  ;;  %v7480_v55 = vld [vmem:[#allocation5_spill] sm:$0xff] }
  0xe4   :  { %7453 = vst [vmem:[#allocation44_spill] sm:$0xff] %v4404_v47  ;;  %v4416_v12 = vpop.permute.xlu1 %532  ;;  %v4464_v47 = vadd.f32 %v374_v19, %v284_v23  ;;  %7465 = vst [vmem:[#allocation23_spill] sm:$0xff] %v4476_v29  ;;  %v136_v23 = vrot.slane %v85_v63, %v3890_v6  ;;  %v7466_v19 = vld [vmem:[#allocation30_spill] sm:$0xff]  ;;  %v567_v17 = vmul.f32 %v7471_v36, %v7470_v28  ;;  %v7472_v63 = vld [vmem:[#allocation7_spill] sm:$0xff] }
  0xe5   :  { %7455 = vst [vmem:[#allocation46_spill] sm:$0xff] %v4416_v12  ;;  %v203_v25 = vsel %vm198_vm0, %v7466_v19, %v7468_v9  ;;  %7469 = vst [vmem:[#allocation30_spill] sm:$0xff] %v4493_v39  ;;  %v4499_v29 = vmul.f32 %v7471_v36, %v7472_v63  ;;  %v7475_v9 = vld [vmem:[#allocation9_spill] sm:$0xff]  ;;  %v7477_v0 = vld [vmem:[#allocation10_spill] sm:$0xff]  ;;  %v141_v21 = vmul.f32 %v132_v45, %v4111_v54 }
  0xe6   :  { %7462 = vst [vmem:[#allocation50_spill] sm:$0xff] %v4464_v47  ;;  %v4507_v3 = vmul.f32 %v7471_v36, %v7475_v9  ;;  %v4511_v58 = vmul.f32 %v7471_v36, %v7477_v0  ;;  %v147_v39 = vmul.f32 %v132_v45, %v4082_v44  ;;  %v154_v43 = vmul.f32 %v136_v23, %v4047_v31 }
  0xe7   :  { %v4452_v1 = vpop.permute.xlu0 %829  ;;  %v159_v50 = vmul.f32 %v132_v45, %v4042_v30 }
  0xe8   :  { %7461 = vst [vmem:[#allocation11_spill] sm:$0xff] %v4452_v1  ;;  %v4466_v15 = vpop.permute.xlu1 %597  ;;  %v202_v1 = vsel %vm198_vm0, %v7467_v14, %v7466_v19  ;;  %v7473_v14 = vld [vmem:[#allocation8_spill] sm:$0xff]  ;;  %7476 = vst [vmem:[#allocation13_spill] sm:$0xff] %v4507_v3  ;;  %v4518_v19 = vmul.f32 %v7471_v36, %v7480_v55  ;;  %v142_v3 = vmul.f32 %v136_v23, %v4111_v54 }
  0xe9   :  { %7463 = vst [vmem:[#allocation51_spill] sm:$0xff] %v4466_v15  ;;  %v4503_v47 = vmul.f32 %v7471_v36, %v7473_v14  ;;  %7478 = vst [vmem:[#allocation6_spill] sm:$0xff] %v4511_v58  ;;  %v246_v49 = vrot.slane %v202_v1, %v3890_v6  ;;  %v148_v58 = vmul.f32 %v136_v23, %v4082_v44  ;;  %v7483_v1 = vld [vmem:[#allocation31_spill] sm:$0xff] }
  0xea   :  { %7481 = vst [vmem:[#allocation7_spill] sm:$0xff] %v4518_v19  ;;  %v160_v36 = vmul.f32 %v136_v23, %v4042_v30  ;;  %v561_v19 = vmul.f32 %v7483_v1, %v7470_v28  ;;  %v7486_v23 = vld [vmem:[#allocation17_spill] sm:$0xff]  ;;  %v4548_v7 = vmul.f32 %v7483_v1, %v7473_v14 }
  0xeb   :  { %7474 = vst [vmem:[#allocation16_spill] sm:$0xff] %v4503_v47  ;;  %v250_v47 = vrot.slane %v203_v25, %v3890_v6  ;;  %v4522_v12 = vpop.permute.xlu0 %738  ;;  %v562_v25 = vmul.f32 %v7483_v1, %v7472_v63  ;;  %v261_v57 = vmul.f32 %v246_v49, %v7486_v23  ;;  %v267_v11 = vmul.f32 %v246_v49, %v7488_v41 }
  0xec   :  { %v4513_v22 = vpop.permute.xlu1 %601  ;;  %7482 = vst [vmem:[#allocation8_spill] sm:$0xff] %v4522_v12  ;;  %v7484_v12 = vld [vmem:[#allocation32_spill] sm:$0xff]  ;;  %7487 = vst [vmem:[#allocation10_spill] sm:$0xff] %v4548_v7  ;;  %v4565_v48 = vadd.f32 %v561_v19, %v515_v2  ;;  %v4567_v7 = vadd.f32 %v567_v17, %v521_v24 }
  0xed   :  { %7479 = vst [vmem:[#allocation27_spill] sm:$0xff] %v4513_v22  ;;  %v153_v22 = vmul.f32 %v132_v45, %v4047_v31  ;;  %v365_v54 = vmul.f32 %v4257_v38, %v7484_v12  ;;  %v366_v44 = vmul.f32 %v4260_v37, %v7484_v12  ;;  %v367_v15 = vmul.f32 %v4249_v8, %v7484_v12 }
  0xee   :  { %v255_v45 = vmul.f32 %v246_v49, %v4116_v56  ;;  %v256_v30 = vmul.f32 %v250_v47, %v4116_v56  ;;  %v262_v38 = vmul.f32 %v250_v47, %v7486_v23  ;;  %v268_v37 = vmul.f32 %v250_v47, %v7488_v41 }
  0xef   :  { %v4555_v8 = vmul.f32 %v7483_v1, %v7475_v9  ;;  %v4563_v56 = vmul.f32 %v7483_v1, %v7480_v55  ;;  %v273_v41 = vmul.f32 %v246_v49, %v7493_v16  ;;  %v389_v40 = vadd.f32 %v365_v54, %v4383_v35  ;;  %v7494_v35 = vld [vmem:[#allocation33_spill] sm:$0xff] }
  0xf0   :  { %v4541_v31 = vpop.permute.xlu1 %750  ;;  %v4569_v23 = vpop.permute.xlu0 %864  ;;  %v391_v26 = vadd.f32 %v367_v15, %v4392_v5  ;;  %v280_v2 = vadd.f32 %v256_v30, %v142_v3  ;;  %v285_v19 = vadd.f32 %v261_v57, %v147_v39  ;;  %v286_v24 = vadd.f32 %v262_v38, %v148_v58  ;;  %v7495_v5 = vld [vmem:[#allocation34_spill] sm:$0xff] }
  0xf1   :  { %7485 = vst [vmem:[#allocation9_spill] sm:$0xff] %v4541_v31  ;;  %7489 = vst [vmem:[#allocation5_spill] sm:$0xff] %v4555_v8  ;;  %v4559_v31 = vmul.f32 %v7483_v1, %v7477_v0  ;;  %v390_v8 = vadd.f32 %v366_v44, %v4385_v60  ;;  %v274_v1 = vmul.f32 %v250_v47, %v7493_v16  ;;  %v7496_v16 = vld [vmem:[#allocation19_spill] sm:$0xff] }
  0xf2   :  { %7491 = vst [vmem:[#allocation32_spill] sm:$0xff] %v4563_v56  ;;  %7492 = vst [vmem:[#allocation17_spill] sm:$0xff] %v4569_v23  ;;  %v279_v56 = vadd.f32 %v255_v45, %v141_v21  ;;  %v291_v17 = vadd.f32 %v267_v11, %v153_v22  ;;  %v292_v23 = vadd.f32 %v268_v37, %v154_v43 }
  0xf3   :  { %7490 = vst [vmem:[#allocation31_spill] sm:$0xff] %v4559_v31  ;;  %v368_v49 = vmul.f32 %v4310_v10, %v7484_v12  ;;  %v549_v60 = vmul.f32 %v7494_v35, %v7470_v28  ;;  %v550_v15 = vmul.f32 %v7494_v35, %v7472_v63  ;;  %v485_v54 = vmul.f32 %v4381_v51, %v7495_v5 }
  0xf4   :  { %v4575_v31 = vpop.permute.xlu1 %424  ;;  %v429_v47 = vsel %vm426_vm3, %v7496_v16, %v4372_v4  ;;  %v503_v57 = vadd.f32 %v4462_v20, %v389_v40  ;;  %v504_v43 = vadd.f32 %v4470_v61, %v390_v8  ;;  %v505_v11 = vadd.f32 %v4436_v53, %v391_v26  ;;  %v4602_v40 = vpop.permute.xlu0 %939  ;;  %v7498_v8 = vld [vmem:[#allocation48_spill] sm:$0xff]  ;;  %v7508_v16 = vld [vmem:[#allocation51_spill] sm:$0xff] }
  0xf5   :  { %v551_v10 = vmul.f32 %v7494_v35, %v7473_v14  ;;  %v297_v3 = vadd.f32 %v273_v41, %v159_v50  ;;  %v369_v58 = vmul.f32 %v4357_v33, %v7484_v12  ;;  %v486_v51 = vmul.f32 %v4390_v13, %v7495_v5  ;;  %7497 = vst [vmem:[#allocation14_spill] sm:$0xff] %v4602_v40 }
  0xf6   :  { %v487_v22 = vmul.f32 %v4313_v27, %v7495_v5  ;;  %v298_v61 = vadd.f32 %v274_v1, %v160_v36  ;;  %v370_v26 = vmul.f32 %v4360_v62, %v7484_v12  ;;  %v552_v53 = vmul.f32 %v7494_v35, %v7475_v9  ;;  %v7500_v1 = vld [vmem:[#allocation38_spill] sm:$0xff] }
  0xf7   :  { %v470_v50 = vrot.slane %v429_v47, %v3890_v6  ;;  %v4611_v33 = vmul.f32 %v7494_v35, %v7477_v0  ;;  %v4615_v13 = vmul.f32 %v7494_v35, %v7480_v55  ;;  %v509_v27 = vadd.f32 %v485_v54, %v4432_v34  ;;  %v7507_v54 = vld [vmem:[#allocation20_spill] sm:$0xff] }
  0xf8   :  { %v4594_v39 = vpop.permute.xlu1 %603  ;;  %v392_v20 = vadd.f32 %v368_v49, %v4394_v46  ;;  %v4619_v21 = vadd.f32 %v549_v60, %v503_v57  ;;  %v4621_v62 = vadd.f32 %v550_v15, %v504_v43  ;;  %v4623_v12 = vadd.f32 %v551_v10, %v505_v11  ;;  %v7502_v49 = vld [vmem:[#allocation42_spill] sm:$0xff]  ;;  %v7506_v15 = vld [vmem:[#allocation21_spill] sm:$0xff]  ;;  %v7509_v57 = vld [vmem:[#allocation47_spill] sm:$0xff] }
  0xf9   :  { %v4626_v36 = vadd.f32 %v562_v25, %v4490_v18  ;;  %v510_v45 = vadd.f32 %v486_v51, %v4455_v42  ;;  %v511_v30 = vadd.f32 %v487_v22, %v4458_v52  ;;  %v4634_v34 = vadd.f32 %v4499_v29, %v4479_v32  ;;  %v7499_v18 = vld [vmem:[#allocation49_spill] sm:$0xff]  ;;  %v7501_v42 = vld [vmem:[#allocation36_spill] sm:$0xff]  ;;  %v7503_v29 = vld [vmem:[#allocation43_spill] sm:$0xff] }
  0xfa   :  { %v4636_v46 = vadd.f32 %v369_v58, %v279_v56  ;;  %v482_v38 = vmul.f32 %v470_v50, %v4126_v59  ;;  %v4639_v37 = vadd.f32 %v370_v26, %v280_v2  ;;  %v4642_v41 = vadd.f32 %v7498_v8, %v285_v19  ;;  %v7504_v56 = vld [vmem:[#allocation45_spill] sm:$0xff]  ;;  %v4659_v2 = vpop.permute.xlu0 %943  ;;  %v7511_v10 = vld [vmem:[#allocation27_spill] sm:$0xff]  ;;  %v7512_v51 = vld [vmem:[#allocation30_spill] sm:$0xff] }
  0xfb   :  { %v4645_v25 = vadd.f32 %v7499_v18, %v286_v24  ;;  %v726_v52 = vsel %vm723_vm4, %v7501_v42, %v7500_v1  ;;  %v4651_v35 = vadd.f32 %v7502_v49, %v291_v17  ;;  %v4654_v32 = vadd.f32 %v7503_v29, %v292_v23  ;;  %7505 = vst [vmem:[#allocation12_spill] sm:$0xff] %v4659_v2  ;;  %v7510_v23 = vld [vmem:[#allocation15_spill] sm:$0xff]  ;;  %v7513_v22 = vld [vmem:[#allocation10_spill] sm:$0xff]  ;;  %v7520_v2 = vld [vmem:[#allocation16_spill] sm:$0xff] }
  0xfc   :  { %v4628_v44 = vpop.permute.xlu1 %628  ;;  %v4657_v60 = vadd.f32 %v7504_v56, %v297_v3  ;;  %v488_v19 = vmul.f32 %v470_v50, %v7495_v5  ;;  %v494_v24 = vmul.f32 %v470_v50, %v7506_v15  ;;  %v610_v47 = vsel %vm609_vm5, %v7508_v16, %v7507_v54  ;;  %v7528_v1 = vld [vmem:[#allocation8_spill] sm:$0xff] }
  0xfd   :  { %v4667_v43 = vadd.f32 %v7509_v57, %v298_v61  ;;  %v500_v11 = vmul.f32 %v470_v50, %v7510_v23  ;;  %v611_v3 = vsel %vm609_vm5, %v7507_v54, %v7511_v10  ;;  %v430_v58 = vsel %vm426_vm3, %v4372_v4, %v4575_v31  ;;  %v7514_v61 = vld [vmem:[#allocation46_spill] sm:$0xff]  ;;  %v7517_v57 = vld [vmem:[#allocation39_spill] sm:$0xff] }
  0xfe   :  { %v4680_v26 = vadd.f32 %v7513_v22, %v7512_v51  ;;  %v506_v8 = vadd.f32 %v482_v38, %v392_v20  ;;  %v555_v18 = vmul.f32 %v7514_v61, %v7470_v28  ;;  %v556_v49 = vmul.f32 %v7514_v61, %v7472_v63  ;;  %v7515_v50 = vld [vmem:[#allocation18_spill] sm:$0xff]  ;;  %v7518_v22 = vld [vmem:[#allocation40_spill] sm:$0xff] }
  0xff   :  { %v431_v29 = vsel %vm426_vm3, %v4575_v31, %v7515_v50  ;;  %v4690_v56 = vrot.slane %v726_v52, %v3890_v6  ;;  %v557_v4 = vmul.f32 %v7514_v61, %v7473_v14  ;;  %v558_v54 = vmul.f32 %v7514_v61, %v7475_v9  ;;  %v7516_v28 = vld [vmem:[#allocation50_spill] sm:$0xff] }
 0x100   :  { %v4669_v17 = vpop.permute.xlu1 %713  ;;  %v4697_v20 = vrot.slane %v610_v47, %v3890_v6  ;;  %v512_v38 = vadd.f32 %v488_v19, %v7516_v28  ;;  %v518_v63 = vadd.f32 %v494_v24, %v7517_v57  ;;  %v4702_v51 = vrot.slane %v611_v3, %v3890_v6  ;;  %v7519_v47 = vld [vmem:[#allocation41_spill] sm:$0xff]  ;;  %v4713_v19 = vpop.permute.xlu0 %721 }
 0x101   :  { %v474_v31 = vrot.slane %v430_v58, %v3890_v6  ;;  %v524_v50 = vadd.f32 %v500_v11, %v7518_v22  ;;  %v559_v14 = vmul.f32 %v7514_v61, %v7477_v0  ;;  %v478_v9 = vrot.slane %v431_v29, %v3890_v6  ;;  %v7522_v11 = vld [vmem:[#allocation22_spill] sm:$0xff]  ;;  %v7523_v22 = vld [vmem:[#allocation37_spill] sm:$0xff] }
 0x102   :  { %v593_v40 = vadd.f32 %v7520_v2, %v7519_v47  ;;  %v4715_v24 = vadd.f32 %v552_v53, %v506_v8  ;;  %v4719_v3 = vmul.f32 %v7514_v61, %v7480_v55  ;;  %v579_v58 = vadd.f32 %v555_v18, %v509_v27  ;;  %v7524_v27 = vld [vmem:[#allocation5_spill] sm:$0xff] }
 0x103   :  { %v580_v28 = vadd.f32 %v556_v49, %v510_v45  ;;  %v4721_v57 = vadd.f32 %v557_v4, %v511_v30  ;;  %v675_v0 = vmul.f32 %v4697_v20, %v7522_v11  ;;  %v681_v29 = vmul.f32 %v4697_v20, %v7523_v22 }
 0x104   :  { %v4705_v52 = vpop.permute.xlu1 %746  ;;  %7521 = vst [vmem:[#allocation33_spill] sm:$0xff] %v4715_v24  ;;  %v612_v2 = vsel %vm609_vm5, %v7511_v10, %v4594_v39  ;;  %v676_v53 = vmul.f32 %v4702_v51, %v7522_v11  ;;  %v483_v55 = vmul.f32 %v474_v31, %v4126_v59  ;;  %v4733_v8 = vadd.f32 %v558_v54, %v512_v38  ;;  %v7525_v10 = vld [vmem:[#allocation13_spill] sm:$0xff]  ;;  %v4747_v47 = vpop.permute.xlu0 %852 }
 0x105   :  { %v4736_v45 = vadd.f32 %v7524_v27, %v518_v63  ;;  %v682_v61 = vmul.f32 %v4702_v51, %v7523_v22  ;;  %v484_v18 = vmul.f32 %v478_v9, %v4126_v59  ;;  %v489_v49 = vmul.f32 %v474_v31, %v7495_v5  ;;  %7527 = vst [vmem:[#allocation19_spill] sm:$0xff] %v4747_v47 }
 0x106   :  { %v4745_v4 = vadd.f32 %v7525_v10, %v524_v50  ;;  %v4751_v54 = vmul.f32 %v4690_v56, %v7528_v1  ;;  %v490_v38 = vmul.f32 %v478_v9, %v7495_v5  ;;  %v495_v63 = vmul.f32 %v474_v31, %v7506_v15 }
 0x107   :  { %v4756_v27 = vrot.slane %v612_v2, %v3890_v6  ;;  %v4759_v59 = vadd.f32 %v675_v0, %v4565_v48  ;;  %v705_v24 = vadd.f32 %v681_v29, %v4567_v7  ;;  %v501_v50 = vmul.f32 %v474_v31, %v7510_v23  ;;  %v7531_v0 = vld [vmem:[#allocation35_spill] sm:$0xff] }
 0x108   :  { %v4738_v30 = vpop.permute.xlu1 %605  ;;  %7526 = vst [vmem:[#allocation34_spill] sm:$0xff] %v4745_v4  ;;  %7529 = vst [vmem:[#allocation48_spill] sm:$0xff] %v4751_v54  ;;  %v502_v10 = vmul.f32 %v478_v9, %v7510_v23  ;;  %v4765_v47 = vadd.f32 %v676_v53, %v4626_v36  ;;  %v7530_v54 = vld [vmem:[#allocation9_spill] sm:$0xff]  ;;  %v496_v16 = vmul.f32 %v478_v9, %v7506_v15  ;;  %v4793_v9 = vpop.permute.xlu0 %978 }
 0x109   :  { %v797_v5 = vmul.f32 %v4690_v56, %v7530_v54  ;;  %v507_v2 = vadd.f32 %v483_v55, %v4636_v46  ;;  %v706_v48 = vadd.f32 %v682_v61, %v4634_v34  ;;  %v508_v7 = vadd.f32 %v484_v18, %v4639_v37 }
 0x10a   :  { %v513_v31 = vadd.f32 %v489_v49, %v4642_v41  ;;  %v736_v36 = vsel %vm723_vm4, %v4713_v19, %v7531_v0  ;;  %v514_v23 = vadd.f32 %v490_v38, %v4645_v25  ;;  %v519_v29 = vadd.f32 %v495_v63, %v4651_v35  ;;  %v7532_v63 = vld [vmem:[#allocation31_spill] sm:$0xff] }
 0x10b   :  { %v683_v46 = vmul.f32 %v4756_v27, %v7523_v22  ;;  %v724_v34 = vsel %vm723_vm4, %v7531_v0, %v4669_v17  ;;  %v525_v37 = vadd.f32 %v501_v50, %v4657_v60  ;;  %v526_v41 = vadd.f32 %v502_v10, %v4667_v43  ;;  %v7533_v10 = vld [vmem:[#allocation6_spill] sm:$0xff]  ;;  %v7534_v0 = vld [vmem:[#allocation7_spill] sm:$0xff] }
 0x10c   :  { %v4771_v4 = vpop.permute.xlu1 %624  ;;  %v669_v15 = vmul.f32 %v4697_v20, %v4628_v44  ;;  %v725_v25 = vsel %vm723_vm4, %v4669_v17, %v7501_v42  ;;  %v520_v35 = vadd.f32 %v496_v16, %v4654_v32  ;;  %v4797_v53 = vrot.slane %v736_v36, %v3890_v6 }
 0x10d   :  { %v670_v55 = vmul.f32 %v4702_v51, %v4628_v44  ;;  %v4802_v60 = vadd.f32 %v4611_v33, %v507_v2  ;;  %v677_v43 = vmul.f32 %v4756_v27, %v7522_v11  ;;  %v671_v61 = vmul.f32 %v4756_v27, %v4628_v44 }
 0x10e   :  { %v756_v42 = vrot.slane %v724_v34, %v3890_v6  ;;  %v613_v32 = vsel %vm609_vm5, %v4594_v39, %v4738_v30  ;;  %v707_v17 = vadd.f32 %v683_v46, %v593_v40  ;;  %v760_v18 = vrot.slane %v725_v25, %v3890_v6  ;;  %v7537_v34 = vld [vmem:[#allocation32_spill] sm:$0xff] }
 0x10f   :  { %v4816_v33 = vadd.f32 %v4615_v13, %v508_v7  ;;  %v4818_v49 = vadd.f32 %v559_v14, %v513_v31  ;;  %v4820_v38 = vadd.f32 %v669_v15, %v579_v58  ;;  %v4823_v50 = vadd.f32 %v7532_v63, %v519_v29  ;;  %v4845_v29 = vpop.permute.xlu0 %835 }
 0x110   :  { %v4826_v2 = vadd.f32 %v7533_v10, %v525_v37  ;;  %v4829_v39 = vadd.f32 %v7534_v0, %v526_v41  ;;  %v4833_v40 = vmul.f32 %v4797_v53, %v7528_v1  ;;  %v4837_v13 = vmul.f32 %v4797_v53, %v7530_v54  ;;  %7536 = vst [vmem:[#allocation36_spill] sm:$0xff] %v4845_v29 }
 0x111   :  { %v4812_v16 = vpop.permute.xlu1 %742  ;;  %v4839_v14 = vadd.f32 %v670_v55, %v580_v28  ;;  %v654_v58 = vrot.slane %v613_v32, %v3890_v6  ;;  %v701_v7 = vadd.f32 %v677_v43, %v4680_v26  ;;  %v695_v31 = vadd.f32 %v671_v61, %v4721_v57  ;;  %v7539_v32 = vld [vmem:[#allocation44_spill] sm:$0xff] }
 0x112   :  { %7535 = vst [vmem:[#allocation49_spill] sm:$0xff] %v4833_v40  ;;  %v795_v36 = vmul.f32 %v756_v42, %v7530_v54  ;;  %v4848_v37 = vadd.f32 %v7537_v34, %v520_v35  ;;  %v777_v41 = vmul.f32 %v756_v42, %v7528_v1  ;;  %v796_v15 = vmul.f32 %v760_v18, %v7530_v54 }
 0x113   :  { %v4852_v28 = vadd.f32 %v797_v5, %v707_v17  ;;  %v4855_v25 = vadd.f32 %v4719_v3, %v514_v23  ;;  %v778_v26 = vmul.f32 %v760_v18, %v7528_v1  ;;  %v789_v57 = vmul.f32 %v756_v42, %v4705_v52 }
 0x114   :  { %v790_v55 = vmul.f32 %v760_v18, %v4705_v52  ;;  %v791_v43 = vmul.f32 %v4690_v56, %v4705_v52  ;;  %v672_v35 = vmul.f32 %v654_v58, %v4628_v44  ;;  %v663_v61 = vmul.f32 %v4697_v20, %v4771_v4 }
 0x115   :  { %v828_v46 = vpop.permute.xlu1 %827  ;;  %7538 = vst [vmem:[#allocation42_spill] sm:$0xff] %v4852_v28  ;;  %v664_v5 = vmul.f32 %v4702_v51, %v4771_v4  ;;  %v850_v3 = vsel %vm837_vm6, %v4845_v29, %v7539_v32  ;;  %v819_v23 = vadd.f32 %v795_v36, %v705_v24  ;;  %v678_v17 = vmul.f32 %v654_v58, %v7522_v11  ;;  %v7541_v28 = vld [vmem:[#allocation11_spill] sm:$0xff] }
 0x116   :  { %v665_v63 = vmul.f32 %v4756_v27, %v4771_v4  ;;  %v4877_v0 = vmul.f32 %v4797_v53, %v4705_v52  ;;  %v820_v20 = vadd.f32 %v796_v15, %v706_v48  ;;  %v684_v34 = vmul.f32 %v654_v58, %v7523_v22 }
 0x117   :  { %v838_v51 = vsel %vm837_vm6, %v7539_v32, %v828_v46  ;;  %v839_v24 = vsel %vm837_vm6, %v828_v46, %v7541_v28  ;;  %v813_v36 = vadd.f32 %v789_v57, %v4759_v59  ;;  %v814_v29 = vadd.f32 %v790_v55, %v4765_v47 }
 0x118   :  { %7540 = vst [vmem:[#allocation43_spill] sm:$0xff] %v4877_v0  ;;  %v666_v27 = vmul.f32 %v654_v58, %v4771_v4  ;;  %v4888_v40 = vrot.slane %v850_v3, %v3890_v6  ;;  %v4891_v0 = vadd.f32 %v672_v35, %v4733_v8  ;;  %v687_v48 = vadd.f32 %v663_v61, %v4619_v21  ;;  %v7542_v8 = vld [vmem:[#allocation34_spill] sm:$0xff]  ;;  %v7544_v35 = vld [vmem:[#allocation19_spill] sm:$0xff] }
 0x119   :  { %v4873_v10 = vpop.permute.xlu1 %860  ;;  %v688_v15 = vadd.f32 %v664_v5, %v4621_v62  ;;  %v4895_v32 = vadd.f32 %v791_v43, %v701_v7  ;;  %v4898_v46 = vadd.f32 %v678_v17, %v4736_v45  ;;  %v689_v59 = vadd.f32 %v665_v63, %v4623_v12  ;;  %v7543_v7 = vld [vmem:[#allocation51_spill] sm:$0xff]  ;;  %v7546_v5 = vld [vmem:[#allocation33_spill] sm:$0xff] }
 0x11a   :  { %v4902_v47 = vrot.slane %v838_v51, %v3890_v6  ;;  %v4905_v58 = vrot.slane %v839_v24, %v3890_v6  ;;  %v4908_v55 = vadd.f32 %v684_v34, %v7542_v8  ;;  %v783_v21 = vmul.f32 %v756_v42, %v4812_v16  ;;  %v7547_v34 = vld [vmem:[#allocation17_spill] sm:$0xff] }
 0x11b   :  { %v784_v12 = vmul.f32 %v760_v18, %v4812_v16  ;;  %v785_v43 = vmul.f32 %v4690_v56, %v4812_v16  ;;  %v4920_v61 = vmul.f32 %v4888_v40, %v7544_v35  ;;  %v690_v3 = vadd.f32 %v666_v27, %v7546_v5 }
 0x11c   :  { %v801_v17 = vadd.f32 %v777_v41, %v687_v48  ;;  %v802_v63 = vadd.f32 %v778_v26, %v688_v15  ;;  %v891_v18 = vmul.f32 %v4902_v47, %v7544_v35  ;;  %v892_v56 = vmul.f32 %v4905_v58, %v7544_v35 }
 0x11d   :  { %v608_v57 = vpop.permute.xlu1 %607  ;;  %7545 = vst [vmem:[#allocation45_spill] sm:$0xff] %v4920_v61  ;;  %v4937_v41 = vadd.f32 %v783_v21, %v4820_v38  ;;  %v909_v26 = vmul.f32 %v4902_v47, %v7547_v34  ;;  %v910_v27 = vmul.f32 %v4905_v58, %v7547_v34  ;;  %v4945_v48 = vmul.f32 %v4797_v53, %v4812_v16  ;;  %v7550_v38 = vld [vmem:[#allocation38_spill] sm:$0xff] }
 0x11e   :  { %v614_v62 = vsel %vm609_vm5, %v4738_v30, %v608_v57  ;;  %v622_v45 = vsel %vm609_vm5, %v608_v57, %v7543_v7  ;;  %v4926_v30 = vmul.f32 %v4888_v40, %v7547_v34  ;;  %v7548_v57 = vld [vmem:[#allocation48_spill] sm:$0xff]  ;;  %v4948_v15 = vadd.f32 %v784_v12, %v4839_v14 }
 0x11f   :  { %v662_v42 = vrot.slane %v622_v45, %v3890_v6  ;;  %v658_v51 = vrot.slane %v614_v62, %v3890_v6  ;;  %v4934_v8 = vadd.f32 %v7548_v57, %v689_v59  ;;  %v4950_v62 = vadd.f32 %v785_v43, %v695_v31 }
 0x120   :  { %v903_v59 = vmul.f32 %v4902_v47, %v4873_v10  ;;  %v904_v7 = vmul.f32 %v4905_v58, %v4873_v10  ;;  %v4963_v14 = vmul.f32 %v4888_v40, %v4873_v10  ;;  %v4965_v31 = vadd.f32 %v891_v18, %v801_v17 }
 0x121   :  { %v720_v24 = vpop.permute.xlu1 %719  ;;  %7549 = vst [vmem:[#allocation21_spill] sm:$0xff] %v4950_v62  ;;  %v686_v45 = vmul.f32 %v662_v42, %v7523_v22  ;;  %v4967_v12 = vadd.f32 %v892_v56, %v802_v63  ;;  %v667_v43 = vmul.f32 %v658_v51, %v4771_v4  ;;  %v934_v61 = vadd.f32 %v910_v27, %v820_v20 }
 0x122   :  { %v727_v21 = vsel %vm723_vm4, %v7550_v38, %v720_v24  ;;  %v728_v53 = vsel %vm723_vm4, %v720_v24, %v4713_v19  ;;  %7551 = vst [vmem:[#allocation20_spill] sm:$0xff] %v4963_v14  ;;  %v933_v38 = vadd.f32 %v909_v26, %v819_v23  ;;  %v668_v62 = vmul.f32 %v662_v42, %v4771_v4 }
 0x123   :  { %v768_v5 = vrot.slane %v727_v21, %v3890_v6  ;;  %v772_v19 = vrot.slane %v728_v53, %v3890_v6  ;;  %v673_v24 = vmul.f32 %v658_v51, %v4628_v44  ;;  %v679_v14 = vmul.f32 %v658_v51, %v7522_v11 }
 0x124   :  { %v680_v17 = vmul.f32 %v662_v42, %v7522_v11  ;;  %v685_v63 = vmul.f32 %v658_v51, %v7523_v22  ;;  %v4979_v18 = vadd.f32 %v903_v59, %v813_v36  ;;  %v4981_v56 = vadd.f32 %v904_v7, %v814_v29 }
 0x125   :  { %v4971_v57 = vpop.permute.xlu1 %831  ;;  %v674_v21 = vmul.f32 %v662_v42, %v4628_v44  ;;  %v710_v23 = vadd.f32 %v686_v45, %v4829_v39  ;;  %v691_v4 = vadd.f32 %v667_v43, %v4802_v60  ;;  %v780_v20 = vmul.f32 %v768_v5, %v7528_v1 }
 0x126   :  { %v786_v26 = vmul.f32 %v768_v5, %v4812_v16  ;;  %v792_v27 = vmul.f32 %v768_v5, %v4705_v52  ;;  %v692_v11 = vadd.f32 %v668_v62, %v4816_v33  ;;  %v781_v22 = vmul.f32 %v772_v19, %v7528_v1 }
 0x127   :  { %v798_v29 = vmul.f32 %v768_v5, %v7530_v54  ;;  %v799_v44 = vmul.f32 %v772_v19, %v7530_v54  ;;  %v697_v39 = vadd.f32 %v673_v24, %v4818_v49  ;;  %v703_v60 = vadd.f32 %v679_v14, %v4823_v50 }
 0x128   :  { %v709_v36 = vadd.f32 %v685_v63, %v4826_v2  ;;  %v704_v42 = vadd.f32 %v680_v17, %v4848_v37  ;;  %v793_v51 = vmul.f32 %v772_v19, %v4705_v52  ;;  %v840_v33 = vsel %vm837_vm6, %v7541_v28, %v4971_v57  ;;  %v7552_v28 = vld [vmem:[#allocation14_spill] sm:$0xff]  ;;  %v7554_v17 = vld [vmem:[#allocation43_spill] sm:$0xff] }
 0x129   :  { %v4989_v53 = vpop.permute.xlu1 %856  ;;  %v824_v1 = vadd.f32 %v4837_v13, %v710_v23  ;;  %v698_v62 = vadd.f32 %v674_v21, %v4855_v25  ;;  %v787_v54 = vmul.f32 %v772_v19, %v4812_v16  ;;  %v5006_v59 = vadd.f32 %v780_v20, %v690_v3  ;;  %v5021_v25 = vpop.permute.xlu0 %966 }
 0x12a   :  { %v5009_v49 = vadd.f32 %v786_v26, %v4891_v0  ;;  %v5012_v50 = vadd.f32 %v792_v27, %v4898_v46  ;;  %v5014_v52 = vadd.f32 %v781_v22, %v691_v4  ;;  %v5017_v37 = vadd.f32 %v798_v29, %v4908_v55  ;;  %v7553_v46 = vld [vmem:[#allocation12_spill] sm:$0xff] }
 0x12b   :  { %v5023_v16 = vadd.f32 %v799_v44, %v709_v36  ;;  %v878_v3 = vrot.slane %v840_v33, %v3890_v6  ;;  %v897_v0 = vmul.f32 %v4902_v47, %v4989_v53  ;;  %v898_v55 = vmul.f32 %v4905_v58, %v4989_v53 }
 0x12c   :  { %v5039_v43 = vadd.f32 %v4926_v30, %v824_v1  ;;  %v5041_v5 = vadd.f32 %v793_v51, %v703_v60  ;;  %v818_v63 = vadd.f32 %v7554_v17, %v704_v42  ;;  %v5050_v21 = vadd.f32 %v787_v54, %v697_v39  ;;  %v7555_v51 = vld [vmem:[#allocation49_spill] sm:$0xff] }
 0x12d   :  { %v942_v2 = vpop.permute.xlu1 %941  ;;  %v812_v4 = vadd.f32 %v4945_v48, %v698_v62  ;;  %v893_v20 = vmul.f32 %v878_v3, %v7544_v35  ;;  %v905_v26 = vmul.f32 %v878_v3, %v4873_v10  ;;  %v911_v29 = vmul.f32 %v878_v3, %v7547_v34  ;;  %v7556_v62 = vld [vmem:[#allocation36_spill] sm:$0xff] }
 0x12e   :  { %v952_v13 = vsel %vm951_vm7, %v7552_v28, %v942_v2  ;;  %v953_v7 = vsel %vm951_vm7, %v942_v2, %v7553_v46  ;;  %v899_v44 = vmul.f32 %v878_v3, %v4989_v53  ;;  %v921_v39 = vadd.f32 %v897_v0, %v4937_v41  ;;  %v7558_v2 = vld [vmem:[#allocation25_spill] sm:$0xff]  ;;  %v7559_v0 = vld [vmem:[#allocation20_spill] sm:$0xff] }
 0x12f   :  { %v5031_v45 = vrot.slane %v952_v13, %v3890_v6  ;;  %v5036_v14 = vrot.slane %v953_v7, %v3890_v6  ;;  %v922_v36 = vadd.f32 %v898_v55, %v4948_v15  ;;  %v806_v33 = vadd.f32 %v7555_v51, %v692_v11  ;;  %v7560_v7 = vld [vmem:[#allocation42_spill] sm:$0xff] }
 0x130   :  { %v917_v13 = vadd.f32 %v893_v20, %v4934_v8  ;;  %v929_v3 = vadd.f32 %v905_v26, %v4895_v32  ;;  %v7562_v8 = vld [vmem:[#allocation45_spill] sm:$0xff] }
 0x131   :  { %v1023_v47 = vmul.f32 %v5031_v45, %v4793_v9  ;;  %v1005_v19 = vmul.f32 %v5031_v45, %v5021_v25  ;;  %v5047_v24 = vpop.permute.xlu1 %974  ;;  %v1024_v58 = vmul.f32 %v5036_v14, %v4793_v9  ;;  %v1006_v22 = vmul.f32 %v5036_v14, %v5021_v25 }
 0x132   :  { %v1017_v30 = vmul.f32 %v5031_v45, %v5047_v24  ;;  %v1018_v23 = vmul.f32 %v5036_v14, %v5047_v24 }
 0x133   :  { %v5061_v27 = vadd.f32 %v1023_v47, %v933_v38  ;;  %v5068_v60 = vadd.f32 %v1024_v58, %v934_v61  ;;  %v5072_v48 = vadd.f32 %v1005_v19, %v4965_v31  ;;  %v902_v38 = vmul.f32 %v4888_v40, %v4989_v53  ;;  %v7557_v40 = vld [vmem:[#allocation23_spill] sm:$0xff]  ;;  %v7561_v19 = vld [vmem:[#allocation21_spill] sm:$0xff] }
 0x134   :  { %v5082_v61 = vadd.f32 %v1017_v30, %v4979_v18  ;;  %v5085_v41 = vadd.f32 %v1018_v23, %v4981_v56  ;;  %v5088_v15 = vadd.f32 %v1006_v22, %v4967_v12  ;;  %v5099_v56 = vadd.f32 %v7559_v0, %v818_v63 }
 0x135   :  { %v834_v42 = vpop.permute.xlu1 %833  ;;  %v1110_v11 = vmul.f32 %v7557_v40, %v5061_v27  ;;  %v935_v12 = vadd.f32 %v911_v29, %v7560_v7  ;;  %v923_v17 = vadd.f32 %v899_v44, %v7561_v19  ;;  %v5104_v58 = vadd.f32 %v902_v38, %v812_v4 }
 0x136   :  { %v841_v1 = vsel %vm837_vm6, %v4971_v57, %v834_v42  ;;  %v842_v54 = vsel %vm837_vm6, %v834_v42, %v7556_v62  ;;  %v1111_v57 = vmul.f32 %v7558_v2, %v5068_v60  ;;  %v1104_v30 = vmul.f32 %v7557_v40, %v5082_v61 }
 0x137   :  { %v882_v31 = vrot.slane %v841_v1, %v3890_v6  ;;  %v886_v18 = vrot.slane %v842_v54, %v3890_v6  ;;  %v1105_v32 = vmul.f32 %v7558_v2, %v5085_v41  ;;  %v5111_v23 = vadd.f32 %v7562_v8, %v806_v33 }
 0x138   :  { %v1092_v63 = vmul.f32 %v7557_v40, %v5072_v48  ;;  %v1137_v22 = vadd.f32 %v1111_v57, %v1110_v11  ;;  %v1093_v4 = vmul.f32 %v7558_v2, %v5088_v15 }
 0x139   :  { %v894_v55 = vmul.f32 %v882_v31, %v7544_v35  ;;  %v946_v47 = vpop.permute.xlu1 %945  ;;  %v900_v20 = vmul.f32 %v882_v31, %v4989_v53  ;;  %v895_v29 = vmul.f32 %v886_v18, %v7544_v35  ;;  %v901_v44 = vmul.f32 %v886_v18, %v4989_v53 }
 0x13a   :  { %v954_v26 = vsel %vm951_vm7, %v7553_v46, %v946_v47  ;;  %v906_v42 = vmul.f32 %v882_v31, %v4873_v10  ;;  %v907_v51 = vmul.f32 %v886_v18, %v4873_v10  ;;  %v912_v33 = vmul.f32 %v882_v31, %v7547_v34 }
 0x13b   :  { %v992_v38 = vrot.slane %v954_v26, %v3890_v6  ;;  %v913_v1 = vmul.f32 %v886_v18, %v7547_v34  ;;  %v5128_v46 = vadd.f32 %v894_v55, %v5006_v59  ;;  %v1130_v10 = vadd.f32 %v1105_v32, %v1104_v30 }
 0x13c   :  { %v924_v31 = vadd.f32 %v900_v20, %v5009_v49  ;;  %v936_v19 = vadd.f32 %v912_v33, %v5017_v37  ;;  %v7563_v49 = vld [vmem:[#allocation26_spill] sm:$0xff]  ;;  %v931_v37 = vadd.f32 %v907_v51, %v5041_v5  ;;  %v1116_v32 = vadd.f32 %v1093_v4, %v1092_v63 }
 0x13d   :  { %v971_v62 = vpop.permute.xlu1 %970  ;;  %v1007_v54 = vmul.f32 %v992_v38, %v5021_v25  ;;  %v1019_v35 = vmul.f32 %v992_v38, %v5047_v24  ;;  %v1025_v53 = vmul.f32 %v992_v38, %v4793_v9  ;;  %v937_v8 = vadd.f32 %v913_v1, %v5023_v16 }
 0x13e   :  { %v1011_v11 = vmul.f32 %v5031_v45, %v971_v62  ;;  %v1012_v57 = vmul.f32 %v5036_v14, %v971_v62  ;;  %v1013_v0 = vmul.f32 %v992_v38, %v971_v62  ;;  %v925_v16 = vadd.f32 %v901_v44, %v5050_v21 }
 0x13f   :  { %v5136_v7 = vadd.f32 %v1007_v54, %v917_v13  ;;  %v5138_v34 = vadd.f32 %v1025_v53, %v935_v12  ;;  %v5140_v59 = vadd.f32 %v1019_v35, %v929_v3  ;;  %v930_v12 = vadd.f32 %v906_v42, %v5012_v50 }
 0x140   :  { %v5142_v18 = vadd.f32 %v1011_v11, %v921_v39  ;;  %v5146_v45 = vadd.f32 %v1012_v57, %v922_v36  ;;  %v5148_v14 = vadd.f32 %v1013_v0, %v923_v17  ;;  %v919_v17 = vadd.f32 %v895_v29, %v5014_v52 }
 0x141   :  { %v948_v55 = vpop.permute.xlu1 %947  ;;  %v1112_v13 = vmul.f32 %v7563_v49, %v5138_v34  ;;  %v1094_v50 = vmul.f32 %v7563_v49, %v5136_v7 }
 0x142   :  { %v955_v30 = vsel %vm951_vm7, %v946_v47, %v948_v55  ;;  %v1098_v39 = vmul.f32 %v7557_v40, %v5142_v18  ;;  %v1099_v36 = vmul.f32 %v7558_v2, %v5146_v45  ;;  %v1106_v47 = vmul.f32 %v7563_v49, %v5140_v59 }
 0x143   :  { %v996_v3 = vrot.slane %v955_v30, %v3890_v6  ;;  %v1100_v21 = vmul.f32 %v7563_v49, %v5148_v14  ;;  %v1138_v51 = vadd.f32 %v1137_v22, %v1112_v13  ;;  %v1117_v53 = vadd.f32 %v1116_v32, %v1094_v50  ;;  %v7564_v22 = vld [vmem:[#allocation28_spill] sm:$0xff] }
 0x144   :  { %v1123_v52 = vadd.f32 %v1099_v36, %v1098_v39  ;;  %v1131_v54 = vadd.f32 %v1130_v10, %v1106_v47  ;;  %v7565_v36 = vld [vmem:[#allocation29_spill] sm:$0xff] }
 0x145   :  { %v1014_v20 = vmul.f32 %v996_v3, %v971_v62  ;;  %v1020_v26 = vmul.f32 %v996_v3, %v5047_v24  ;;  %v1026_v42 = vmul.f32 %v996_v3, %v4793_v9  ;;  %v950_v5 = vpop.permute.xlu1 %949  ;;  %v1008_v1 = vmul.f32 %v996_v3, %v5021_v25 }
 0x146   :  { %v956_v44 = vsel %vm951_vm7, %v948_v55, %v950_v5  ;;  %v964_v38 = vsel %vm951_vm7, %v950_v5, %v7552_v28  ;;  %v1124_v0 = vadd.f32 %v1123_v52, %v1100_v21 }
 0x147   :  { %v1000_v29 = vrot.slane %v956_v44, %v3890_v6  ;;  %v1004_v63 = vrot.slane %v964_v38, %v3890_v6  ;;  %v5175_v4 = vadd.f32 %v1026_v42, %v936_v19  ;;  %v5177_v33 = vadd.f32 %v1020_v26, %v930_v12 }
 0x148   :  { %v5180_v35 = vadd.f32 %v1014_v20, %v924_v31 }
 0x149   :  { %v1027_v11 = vmul.f32 %v1000_v29, %v4793_v9  ;;  %v1028_v28 = vmul.f32 %v1004_v63, %v4793_v9  ;;  %v1113_v57 = vmul.f32 %v7564_v22, %v5175_v4  ;;  %v1021_v6 = vmul.f32 %v1000_v29, %v5047_v24 }
 0x14a   :  { %v1022_v55 = vmul.f32 %v1004_v63, %v5047_v24  ;;  %v1107_v19 = vmul.f32 %v7564_v22, %v5177_v33  ;;  %v1015_v30 = vmul.f32 %v1000_v29, %v971_v62  ;;  %v1009_v10 = vmul.f32 %v1000_v29, %v5021_v25 }
 0x14b   :  { %v5191_v31 = vadd.f32 %v1027_v11, %v937_v8  ;;  %v5194_v13 = vadd.f32 %v1028_v28, %v5039_v43  ;;  %v1016_v9 = vmul.f32 %v1004_v63, %v971_v62  ;;  %v5196_v12 = vadd.f32 %v1021_v6, %v931_v37  ;;  %v7566_v62 = vld [vmem:[#allocation24_spill] sm:$0xff] }
 0x14c   :  { %v5199_v39 = vadd.f32 %v1022_v55, %v5099_v56  ;;  %v5201_v3 = vadd.f32 %v1015_v30, %v925_v16  ;;  %v5204_v24 = vadd.f32 %v1008_v1, %v5128_v46  ;;  %v1139_v50 = vadd.f32 %v1138_v51, %v1113_v57 }
 0x14d   :  { %v1114_v47 = vmul.f32 %v7565_v36, %v5191_v31  ;;  %v1132_v8 = vadd.f32 %v1131_v54, %v1107_v19  ;;  %v1101_v43 = vmul.f32 %v7564_v22, %v5180_v35  ;;  %v1115_v37 = vmul.f32 %v7566_v62, %v5194_v13 }
 0x14e   :  { %v1108_v56 = vmul.f32 %v7565_v36, %v5196_v12  ;;  %v1102_v16 = vmul.f32 %v7565_v36, %v5201_v3  ;;  %v1010_v46 = vmul.f32 %v1004_v63, %v5021_v25  ;;  %v1109_v20 = vmul.f32 %v7566_v62, %v5199_v39 }
 0x14f   :  { %v1140_v32 = vadd.f32 %v1139_v50, %v1114_v47  ;;  %v5220_v26 = vadd.f32 %v1016_v9, %v5104_v58  ;;  %v5222_v42 = vadd.f32 %v1009_v10, %v919_v17  ;;  %v1125_v21 = vadd.f32 %v1124_v0, %v1101_v43 }
 0x150   :  { %v1133_v5 = vadd.f32 %v1132_v8, %v1108_v56  ;;  %v5225_v44 = vadd.f32 %v1010_v46, %v5111_v23  ;;  %v1095_v38 = vmul.f32 %v7564_v22, %v5204_v24 }
 0x151   :  { %v1141_v51 = vadd.f32 %v1140_v32, %v1115_v37  ;;  %v1096_v25 = vmul.f32 %v7565_v36, %v5222_v42  ;;  %v1126_v29 = vadd.f32 %v1125_v21, %v1102_v16  ;;  %v1103_v58 = vmul.f32 %v7566_v62, %v5220_v26 }
 0x152   :  { %v1134_v52 = vadd.f32 %v1133_v5, %v1109_v20  ;;  %v1118_v63 = vadd.f32 %v1117_v53, %v1095_v38  ;;  %v1097_v17 = vmul.f32 %v7566_v62, %v5225_v44 }
 0x153   :  { %1142 = vadd.xlane.f32.xlu1 %v1141_v51  ;;  %v1127_v1 = vadd.f32 %v1126_v29, %v1103_v58 }
 0x154   :  { %1135 = vadd.xlane.f32.xlu0 %v1134_v52  ;;  %v1119_v23 = vadd.f32 %v1118_v63, %v1096_v25 }
 0x156   :  { %v1120_v54 = vadd.f32 %v1119_v23, %v1097_v17 }
 0x158   :  { %1128 = vadd.xlane.f32.xlu0 %v1127_v1  ;;  %1121 = vadd.xlane.f32.xlu1 %v1120_v54 }
 0x1dc   :  { %v1143_v11 = vpop.xlane.xlu1 %1142 }
 0x1dd   :  { %v5235_v28 = vmul.f32 0.001953125, %v1143_v11  ;;  %v1136_v57 = vpop.xlane.xlu0 %1135 }
 0x1de   :  { %v5237_v0 = vmul.f32 0.001953125, %v1136_v57 }
 0x1df   :  { %v1166_v53 = vsub.f32 %v5061_v27, %v5235_v28  ;;  %v1167_v6 = vsub.f32 %v5068_v60, %v5235_v28  ;;  %v1168_v55 = vsub.f32 %v5138_v34, %v5235_v28  ;;  %v1169_v19 = vsub.f32 %v5175_v4, %v5235_v28 }
 0x1e0   :  { %v1170_v30 = vsub.f32 %v5191_v31, %v5235_v28  ;;  %v1171_v10 = vsub.f32 %v5194_v13, %v5235_v28  ;;  %v1160_v37 = vsub.f32 %v5082_v61, %v5237_v0  ;;  %v1161_v46 = vsub.f32 %v5085_v41, %v5237_v0 }
 0x1e1   :  { %v1129_v9 = vpop.xlane.xlu0 %1128  ;;  %v1122_v47 = vpop.xlane.xlu1 %1121  ;;  %v1190_v50 = vmul.f32 %v1166_v53, %v7557_v40  ;;  %v1191_v8 = vmul.f32 %v1167_v6, %v7558_v2  ;;  %v1192_v43 = vmul.f32 %v1168_v55, %v7563_v49  ;;  %v1193_v56 = vmul.f32 %v1169_v19, %v7564_v22 }
 0x1e2   :  { %v1194_v16 = vmul.f32 %v1170_v30, %v7565_v36  ;;  %v5260_v32 = vmul.f32 0.001953125, %v1129_v9  ;;  %v1195_v20 = vmul.f32 %v1171_v10, %v7566_v62  ;;  %v5263_v38 = vmul.f32 0.001953125, %v1122_v47 }
 0x1e3   :  { %v1214_v5 = vmul.f32 %v1190_v50, %v1190_v50  ;;  %v1215_v21 = vmul.f32 %v1191_v8, %v1191_v8  ;;  %v1216_v51 = vmul.f32 %v1192_v43, %v1192_v43  ;;  %v1162_v25 = vsub.f32 %v5140_v59, %v5237_v0 }
 0x1e4   :  { %v1163_v52 = vsub.f32 %v5177_v33, %v5237_v0  ;;  %v1164_v63 = vsub.f32 %v5196_v12, %v5237_v0  ;;  %v1165_v58 = vsub.f32 %v5199_v39, %v5237_v0  ;;  %v1184_v17 = vmul.f32 %v1160_v37, %v7557_v40 }
 0x1e5   :  { %v1241_v29 = vadd.f32 %v1215_v21, %v1214_v5  ;;  %v1217_v23 = vmul.f32 %v1193_v56, %v1193_v56  ;;  %v1218_v1 = vmul.f32 %v1194_v16, %v1194_v16  ;;  %v1185_v54 = vmul.f32 %v1161_v46, %v7558_v2 }
 0x1e6   :  { %v1186_v11 = vmul.f32 %v1162_v25, %v7563_v49  ;;  %v1219_v57 = vmul.f32 %v1195_v20, %v1195_v20  ;;  %v1208_v6 = vmul.f32 %v1184_v17, %v1184_v17  ;;  %v1154_v55 = vsub.f32 %v5142_v18, %v5260_v32 }
 0x1e7   :  { %v1242_v53 = vadd.f32 %v1241_v29, %v1216_v51  ;;  %v1187_v19 = vmul.f32 %v1163_v52, %v7564_v22  ;;  %v1188_v30 = vmul.f32 %v1164_v63, %v7565_v36  ;;  %v1209_v10 = vmul.f32 %v1185_v54, %v1185_v54 }
 0x1e8   :  { %v1155_v9 = vsub.f32 %v5146_v45, %v5260_v32  ;;  %v1189_v50 = vmul.f32 %v1165_v58, %v7566_v62  ;;  %v1210_v8 = vmul.f32 %v1186_v11, %v1186_v11  ;;  %v1156_v43 = vsub.f32 %v5148_v14, %v5260_v32 }
 0x1e9   :  { %v1243_v47 = vadd.f32 %v1242_v53, %v1217_v23  ;;  %v1234_v37 = vadd.f32 %v1209_v10, %v1208_v6  ;;  %v1157_v56 = vsub.f32 %v5180_v35, %v5260_v32  ;;  %v1158_v16 = vsub.f32 %v5201_v3, %v5260_v32 }
 0x1ea   :  { %v1159_v46 = vsub.f32 %v5220_v26, %v5260_v32  ;;  %v1178_v5 = vmul.f32 %v1154_v55, %v7557_v40  ;;  %v1179_v21 = vmul.f32 %v1155_v9, %v7558_v2  ;;  %v1180_v51 = vmul.f32 %v1156_v43, %v7563_v49 }
 0x1eb   :  { %v1244_v20 = vadd.f32 %v1243_v47, %v1218_v1  ;;  %v1211_v25 = vmul.f32 %v1187_v19, %v1187_v19  ;;  %v1212_v52 = vmul.f32 %v1188_v30, %v1188_v30  ;;  %v1235_v29 = vadd.f32 %v1234_v37, %v1210_v8 }
 0x1ec   :  { %v1181_v63 = vmul.f32 %v1157_v56, %v7564_v22  ;;  %v1213_v17 = vmul.f32 %v1189_v50, %v1189_v50  ;;  %v1202_v23 = vmul.f32 %v1178_v5, %v1178_v5  ;;  %v1203_v54 = vmul.f32 %v1179_v21, %v1179_v21 }
 0x1ed   :  { %v1245_v58 = vadd.f32 %v1244_v20, %v1219_v57  ;;  %v1236_v11 = vadd.f32 %v1235_v29, %v1211_v25  ;;  %v1182_v53 = vmul.f32 %v1158_v16, %v7565_v36  ;;  %v1183_v1 = vmul.f32 %v1159_v46, %v7566_v62 }
 0x1ee   :  { %v1204_v6 = vmul.f32 %v1180_v51, %v1180_v51  ;;  %v1227_v55 = vadd.f32 %v1203_v54, %v1202_v23  ;;  %v1148_v10 = vsub.f32 %v5072_v48, %v5263_v38  ;;  %v1149_v19 = vsub.f32 %v5088_v15, %v5263_v38 }
 0x1ef   :  { %1246 = vadd.xlane.f32.xlu0 %v1245_v58  ;;  %v1150_v57 = vsub.f32 %v5136_v7, %v5263_v38  ;;  %v1237_v30 = vadd.f32 %v1236_v11, %v1212_v52  ;;  %v1205_v9 = vmul.f32 %v1181_v63, %v1181_v63  ;;  %v1151_v47 = vsub.f32 %v5204_v24, %v5263_v38 }
 0x1f0   :  { %v1152_v50 = vsub.f32 %v5222_v42, %v5263_v38  ;;  %v1228_v8 = vadd.f32 %v1227_v55, %v1204_v6  ;;  %v1172_v43 = vmul.f32 %v1148_v10, %v7557_v40  ;;  %v1173_v37 = vmul.f32 %v1149_v19, %v7558_v2 }
 0x1f1   :  { %v1174_v56 = vmul.f32 %v1150_v57, %v7563_v49  ;;  %v1238_v16 = vadd.f32 %v1237_v30, %v1213_v17  ;;  %v1206_v46 = vmul.f32 %v1182_v53, %v1182_v53  ;;  %v1153_v20 = vsub.f32 %v5225_v44, %v5263_v38 }
 0x1f2   :  { %v1229_v5 = vadd.f32 %v1228_v8, %v1205_v9  ;;  %v1175_v21 = vmul.f32 %v1151_v47, %v7564_v22  ;;  %v1196_v51 = vmul.f32 %v1172_v43, %v1172_v43  ;;  %v1197_v25 = vmul.f32 %v1173_v37, %v1173_v37 }
 0x1f3   :  { %1239 = vadd.xlane.f32.xlu1 %v1238_v16  ;;  %v1207_v52 = vmul.f32 %v1183_v1, %v1183_v1  ;;  %v1176_v63 = vmul.f32 %v1152_v50, %v7565_v36  ;;  %v1198_v58 = vmul.f32 %v1174_v56, %v1174_v56  ;;  %v1177_v11 = vmul.f32 %v1153_v20, %v7566_v62 }
 0x1f4   :  { %v1230_v29 = vadd.f32 %v1229_v5, %v1206_v46  ;;  %v1220_v23 = vadd.f32 %v1197_v25, %v1196_v51  ;;  %v1199_v17 = vmul.f32 %v1175_v21, %v1175_v21  ;;  %v1056_v46 = vld [vmem:[%s7260_s4 + $0x18] sm:$0xff]  ;;  %v1055_v25 = vld [vmem:[%s7260_s4 + $0x10] sm:$0xff] }
 0x1f5   :  { %v1200_v6 = vmul.f32 %v1176_v63, %v1176_v63  ;;  %v1201_v10 = vmul.f32 %v1177_v11, %v1177_v11  ;;  %v1054_v63 = vld [vmem:[%s7260_s4 + $0x8] sm:$0xff] }
 0x1f6   :  { %v1231_v54 = vadd.f32 %v1230_v29, %v1207_v52  ;;  %v1221_v53 = vadd.f32 %v1220_v23, %v1198_v58 }
 0x1f8   :  { %1232 = vadd.xlane.f32.xlu0 %v1231_v54  ;;  %v1222_v55 = vadd.f32 %v1221_v53, %v1199_v17  ;;  %v1053_v54 = vld [vmem:[%s7260_s4] sm:$0xff] }
 0x1fa   :  { %v1223_v19 = vadd.f32 %v1222_v55, %v1200_v6  ;;  %v1060_v6 = vld [vmem:[%s7261_s5 + $0x18] sm:$0xff] }
 0x1fc   :  { %v1224_v57 = vadd.f32 %v1223_v19, %v1201_v10  ;;  %v1059_v19 = vld [vmem:[%s7261_s5 + $0x10] sm:$0xff] }
 0x1fe   :  { %1225 = vadd.xlane.f32.xlu1 %v1224_v57 }
 0x278   :  { %v1247_v30 = vpop.xlane.xlu0 %1246 }
 0x279   :  { %v1251_v9 = vmul.f32 0.001953125, %v1247_v30 }
 0x27b   :  { %v1255_v1 = vadd.f32 1e-05, %v1251_v9 }
 0x27c   :  { %v1240_v47 = vpop.xlane.xlu1 %1239 }
 0x27d   :  { %3746 = vrsqrt.f32 %v1255_v1  ;;  %v1250_v50 = vmul.f32 0.001953125, %v1240_v47 }
 0x27f   :  { %v1254_v8 = vadd.f32 1e-05, %v1250_v50 }
 0x281   :  { %3748 = vrsqrt.f32 %v1254_v8  ;;  %v1233_v43 = vpop.xlane.xlu0 %1232 }
 0x282   :  { %v1249_v37 = vmul.f32 0.001953125, %v1233_v43 }
 0x284   :  { %v1253_v56 = vadd.f32 1e-05, %v1249_v37 }
 0x286   :  { %3750 = vrsqrt.f32 %v1253_v56 }
 0x287   :  { %v1226_v16 = vpop.xlane.xlu1 %1225 }
 0x288   :  { %v1248_v20 = vmul.f32 0.001953125, %v1226_v16 }
 0x28a   :  { %v3747_v5 = vpop.eup %3746  ;;  %v1252_v21 = vadd.f32 1e-05, %v1248_v20 }
 0x28b   :  { %v1263_v51 = vmul.f32 %v3747_v5, %v1056_v46 }
 0x28c   :  { %3752 = vrsqrt.f32 %v1252_v21 }
 0x28d   :  { %1289 = vperm.xlu0 %3744, %v1263_v51   ;;  %v1267_v17 = vmul.f32 %v1263_v51, %v5235_v28  ;;  %v1058_v28 = vld [vmem:[%s7261_s5 + $0x8] sm:$0xff] }
 0x28e   :  { %v3749_v52 = vpop.eup %3748 }
 0x28f   :  { %v1262_v29 = vmul.f32 %v3749_v52, %v1055_v25  ;;  %v1271_v55 = vsub.f32 %v1060_v6, %v1267_v17 }
 0x291   :  { %1284 = vperm.xlu1 %3745, %v1262_v29   ;;  %v1266_v10 = vmul.f32 %v1262_v29, %v5237_v0  ;;  %v1057_v0 = vld [vmem:[%s7261_s5] sm:$0xff] }
 0x293   :  { %v3751_v58 = vpop.eup %3750  ;;  %v1270_v57 = vsub.f32 %v1059_v19, %v1266_v10 }
 0x294   :  { %v1261_v23 = vmul.f32 %v3751_v58, %v1054_v63 }
 0x296   :  { %1279 = vperm.xlu1 %3745, %v1261_v23   ;;  %v1265_v30 = vmul.f32 %v1261_v23, %v5260_v32 }
 0x298   :  { %v1269_v9 = vsub.f32 %v1058_v28, %v1265_v30 }
 0x299   :  { %v3753_v11 = vpop.eup %3752 }
 0x29a   :  { %v1260_v53 = vmul.f32 %v3753_v11, %v1053_v54 }
 0x29c   :  { %1274 = vperm.xlu1 %3745, %v1260_v53   ;;  %v1264_v1 = vmul.f32 %v1260_v53, %v5263_v38 }
 0x29e   :  { %v1268_v47 = vsub.f32 %v1057_v0, %v1264_v1 }
 0x2a0   :  { %1333 = vperm.xlu1 %3745, %v1271_v55  }
 0x2a4   :  { %1328 = vperm.xlu1 %3745, %v1270_v57  }
 0x2a8   :  { %1323 = vperm.xlu1 %3745, %v1269_v9  }
 0x2ac   :  { %1318 = vperm.xlu1 %3745, %v1268_v47  }
 0x308   :  { %v5347_v32 = vpop.permute.xlu0 %1289 }
 0x309   :  { %v1311_v37 = vmul.f32 %v5347_v32, %v5068_v60  ;;  %v1312_v38 = vmul.f32 %v5347_v32, %v5138_v34  ;;  %v1310_v56 = vmul.f32 %v5347_v32, %v5061_v27 }
 0x30c   :  { %v5343_v50 = vpop.permute.xlu1 %1284 }
 0x30d   :  { %v1305_v25 = vmul.f32 %v5343_v50, %v5085_v41  ;;  %v1304_v34 = vmul.f32 %v5343_v50, %v5082_v61  ;;  %v1306_v27 = vmul.f32 %v5343_v50, %v5140_v59 }
 0x311   :  { %v5345_v8 = vpop.permute.xlu1 %1279 }
 0x312   :  { %v1299_v61 = vmul.f32 %v5345_v8, %v5146_v45  ;;  %v1300_v11 = vmul.f32 %v5345_v8, %v5148_v14  ;;  %v1298_v45 = vmul.f32 %v5345_v8, %v5142_v18 }
 0x317   :  { %v5349_v43 = vpop.permute.xlu1 %1274 }
 0x318   :  { %v1293_v14 = vmul.f32 %v5349_v43, %v5088_v15  ;;  %v1294_v47 = vmul.f32 %v5349_v43, %v5136_v7  ;;  %v1292_v15 = vmul.f32 %v5349_v43, %v5072_v48 }
 0x31b   :  { %v5357_v16 = vpop.permute.xlu1 %1333 }
 0x31c   :  { %v1355_v46 = vadd.f32 %v5357_v16, %v1311_v37  ;;  %v1356_v20 = vadd.f32 %v5357_v16, %v1312_v38  ;;  %v1354_v5 = vadd.f32 %v5357_v16, %v1310_v56 }
 0x31e   :  { %v1379_v21 = vmax.f32 %v1355_v46, 0.0  ;;  %v1380_v51 = vmax.f32 %v1356_v20, 0.0  ;;  %v1378_v63 = vmax.f32 %v1354_v5, 0.0 }
 0x31f   :  { %v5364_v60 = vpop.permute.xlu1 %1328 }
 0x320   :  { %v5371_v52 = vmul.f32 %v1379_v21, %v7558_v2  ;;  %v5374_v29 = vmul.f32 %v1380_v51, %v7563_v49  ;;  %v1349_v58 = vadd.f32 %v5364_v60, %v1305_v25  ;;  %v1348_v23 = vadd.f32 %v5364_v60, %v1304_v34 }
 0x321   :  { %v1350_v41 = vadd.f32 %v5364_v60, %v1306_v27  ;;  %v5390_v17 = vmul.f32 %v1378_v63, %v7557_v40  ;;  %v7325_v25 = vmov 0.0   ;;  %v1313_v34 = vmul.f32 %v5347_v32, %v5175_v4 }
 0x322   :  { %2172 = vrot.lane.b32.xlu0 %v5374_v29, %s3814_s26  ;;  %v1373_v59 = vmax.f32 %v1349_v58, 0.0  ;;  %2170 = vrot.lane.b32.xlu1 %v5371_v52, %s3814_s26  ;;  %v1372_v10 = vmax.f32 %v1348_v23, 0.0  ;;  %v1315_v23 = vmul.f32 %v5347_v32, %v5194_v13  ;;  %v1307_v13 = vmul.f32 %v5343_v50, %v5177_v33 }
 0x323   :  { %v5385_v54 = vpop.permute.xlu1 %1323  ;;  %v1374_v53 = vmax.f32 %v1350_v41, 0.0  ;;  %2458 = vmatprep.mubr.f32.mxu1 %v7325_v25  ;;  %v1357_v63 = vadd.f32 %v5357_v16, %v1313_v34 }
 0x324   :  { %v5393_v6 = vmul.f32 %v1373_v59, %v7558_v2  ;;  %v1343_v55 = vadd.f32 %v5385_v54, %v1299_v61  ;;  %v1344_v19 = vadd.f32 %v5385_v54, %v1300_v11  ;;  %v1342_v28 = vadd.f32 %v5385_v54, %v1298_v45 }
 0x325   :  { %v5408_v30 = vmul.f32 %v1374_v53, %v7563_v49  ;;  %v5412_v18 = vmul.f32 %v1372_v10, %v7557_v40  ;;  %v1359_v4 = vadd.f32 %v5357_v16, %v1315_v23  ;;  %v1381_v41 = vmax.f32 %v1357_v63, 0.0 }
 0x326   :  { %2168 = vrot.lane.b32.xlu1 %v5390_v17, %s3814_s26  ;;  %2158 = vrot.lane.b32.xlu0 %v5393_v6, %s3814_s26  ;;  %v1367_v9 = vmax.f32 %v1343_v55, 0.0  ;;  %v1368_v1 = vmax.f32 %v1344_v19, 0.0  ;;  %v1366_v37 = vmax.f32 %v1342_v28, 0.0  ;;  %v1309_v11 = vmul.f32 %v5343_v50, %v5199_v39 }
 0x327   :  { %v5401_v57 = vpop.permute.xlu1 %1318  ;;  %v1383_v61 = vmax.f32 %v1359_v4, 0.0  ;;  %v5467_v59 = vmul.f32 %v1381_v41, %v7564_v22  ;;  %v1351_v55 = vadd.f32 %v5364_v60, %v1307_v13  ;;  %v1301_v39 = vmul.f32 %v5345_v8, %v5180_v35 }
 0x328   :  { %v1337_v0 = vadd.f32 %v5401_v57, %v1293_v14  ;;  %v5424_v38 = vmul.f32 %v1367_v9, %v7558_v2  ;;  %v1338_v56 = vadd.f32 %v5401_v57, %v1294_v47  ;;  %v5428_v46 = vmul.f32 %v1368_v1, %v7563_v49 }
 0x329   :  { %v1336_v7 = vadd.f32 %v5401_v57, %v1292_v15  ;;  %v5436_v48 = vmul.f32 %v1366_v37, %v7557_v40  ;;  %v5478_v53 = vmul.f32 %v1383_v61, %v7566_v62  ;;  %v1353_v10 = vadd.f32 %v5364_v60, %v1309_v11 }
 0x32a   :  { %2160 = vrot.lane.b32.xlu1 %v5408_v30, %s3814_s26  ;;  %2156 = vrot.lane.b32.xlu0 %v5412_v18, %s3814_s26  ;;  %v1361_v20 = vmax.f32 %v1337_v0, 0.0  ;;  %v1362_v5 = vmax.f32 %v1338_v56, 0.0  ;;  %v1375_v33 = vmax.f32 %v1351_v55, 0.0  ;;  %v1345_v28 = vadd.f32 %v5385_v54, %v1301_v39 }
 0x32b   :  { %v1360_v21 = vmax.f32 %v1336_v7, 0.0  ;;  %7567 = vst [vmem:[#allocation47_spill] sm:$0xff] %v5478_v53  ;;  %v1377_v45 = vmax.f32 %v1353_v10, 0.0  ;;  %v1303_v9 = vmul.f32 %v5345_v8, %v5220_v26  ;;  %v1295_v26 = vmul.f32 %v5349_v43, %v5204_v24 }
 0x32c   :  { %v5439_v51 = vmul.f32 %v1361_v20, %v7558_v2  ;;  %v5449_v27 = vmul.f32 %v1362_v5, %v7563_v49  ;;  %v5493_v19 = vmul.f32 %v1375_v33, %v7564_v22  ;;  %v1369_v1 = vmax.f32 %v1345_v28, 0.0 }
 0x32d   :  { %v5453_v58 = vmul.f32 %v1360_v21, %v7557_v40  ;;  %v5496_v14 = vmul.f32 %v1377_v45, %v7566_v62  ;;  %v1347_v35 = vadd.f32 %v5385_v54, %v1303_v9  ;;  %v1297_v15 = vmul.f32 %v5349_v43, %v5225_v44 }
 0x32e   :  { %2146 = vrot.lane.b32.xlu1 %v5424_v38, %s3814_s26  ;;  %2148 = vrot.lane.b32.xlu0 %v5428_v46, %s3814_s26  ;;  %v5511_v47 = vmul.f32 %v1369_v1, %v7564_v22  ;;  %v1339_v56 = vadd.f32 %v5401_v57, %v1295_v26  ;;  %v2234_v26 = vld [vmem:[%s7262_s6 + $0x10] sm:$0xff] }
 0x32f   :  { %7568 = vst [vmem:[#allocation15_spill] sm:$0xff] %v5496_v14  ;;  %v1371_v0 = vmax.f32 %v1347_v35, 0.0  ;;  %v1341_v7 = vadd.f32 %v5401_v57, %v1297_v15 }
 0x330   :  { %v1363_v24 = vmax.f32 %v1339_v56, 0.0 }
 0x331   :  { %v5522_v37 = vmul.f32 %v1371_v0, %v7566_v62  ;;  %v1365_v20 = vmax.f32 %v1341_v7, 0.0 }
 0x332   :  { %2144 = vrot.lane.b32.xlu1 %v5436_v48, %s3814_s26  ;;  %2134 = vrot.lane.b32.xlu0 %v5439_v51, %s3814_s26  ;;  %v5535_v44 = vmul.f32 %v1363_v24, %v7564_v22 }
 0x333   :  { %7569 = vst [vmem:[#allocation27_spill] sm:$0xff] %v5522_v37  ;;  %v5538_v5 = vmul.f32 %v1365_v20, %v7566_v62 }
 0x335   :  { %7570 = vst [vmem:[#allocation30_spill] sm:$0xff] %v5538_v5 }
 0x336   :  { %2136 = vrot.lane.b32.xlu1 %v5449_v27, %s3814_s26  ;;  %2132 = vrot.lane.b32.xlu0 %v5453_v58, %s3814_s26 }
 0x33a   :  { %1774 = vrot.lane.b32.xlu1 %v5390_v17, %s3806_s21  ;;  %1776 = vrot.lane.b32.xlu0 %v5371_v52, %s3806_s21 }
 0x33e   :  { %1778 = vrot.lane.b32.xlu1 %v5374_v29, %s3806_s21  ;;  %1780 = vrot.lane.b32.xlu0 %v5467_v59, %s3806_s21 }
 0x342   :  { %1738 = vrot.lane.b32.xlu1 %v5478_v53, %s3806_s21  ;;  %1764 = vrot.lane.b32.xlu0 %v5412_v18, %s3806_s21 }
 0x346   :  { %1766 = vrot.lane.b32.xlu1 %v5393_v6, %s3806_s21  ;;  %1768 = vrot.lane.b32.xlu0 %v5408_v30, %s3806_s21 }
 0x34a   :  { %1770 = vrot.lane.b32.xlu1 %v5493_v19, %s3806_s21  ;;  %1736 = vrot.lane.b32.xlu0 %v5496_v14, %s3806_s21 }
 0x34e   :  { %1754 = vrot.lane.b32.xlu1 %v5436_v48, %s3806_s21  ;;  %1756 = vrot.lane.b32.xlu0 %v5424_v38, %s3806_s21 }
 0x352   :  { %1758 = vrot.lane.b32.xlu1 %v5428_v46, %s3806_s21  ;;  %1760 = vrot.lane.b32.xlu0 %v5511_v47, %s3806_s21 }
 0x356   :  { %1734 = vrot.lane.b32.xlu1 %v5522_v37, %s3806_s21  ;;  %1744 = vrot.lane.b32.xlu0 %v5453_v58, %s3806_s21 }
 0x35a   :  { %1746 = vrot.lane.b32.xlu1 %v5439_v51, %s3806_s21  ;;  %1748 = vrot.lane.b32.xlu0 %v5449_v27, %s3806_s21 }
 0x35e   :  { %1750 = vrot.lane.b32.xlu1 %v5535_v44, %s3806_s21  ;;  %1732 = vrot.lane.b32.xlu0 %v5538_v5, %s3806_s21 }
 0x362   :  { %1674 = vrot.lane.b32.xlu1 %v5390_v17, %s3805_s18  ;;  %1676 = vrot.lane.b32.xlu0 %v5371_v52, %s3805_s18 }
 0x366   :  { %1678 = vrot.lane.b32.xlu1 %v5374_v29, %s3805_s18  ;;  %1680 = vrot.lane.b32.xlu0 %v5467_v59, %s3805_s18 }
 0x36a   :  { %1638 = vrot.lane.b32.xlu1 %v5478_v53, %s3805_s18  ;;  %1664 = vrot.lane.b32.xlu0 %v5412_v18, %s3805_s18 }
 0x36e   :  { %1666 = vrot.lane.b32.xlu1 %v5393_v6, %s3805_s18  ;;  %1668 = vrot.lane.b32.xlu0 %v5408_v30, %s3805_s18 }
 0x372   :  { %1670 = vrot.lane.b32.xlu1 %v5493_v19, %s3805_s18  ;;  %1636 = vrot.lane.b32.xlu0 %v5496_v14, %s3805_s18 }
 0x376   :  { %1654 = vrot.lane.b32.xlu1 %v5436_v48, %s3805_s18  ;;  %1656 = vrot.lane.b32.xlu0 %v5424_v38, %s3805_s18 }
 0x37a   :  { %1658 = vrot.lane.b32.xlu1 %v5428_v46, %s3805_s18  ;;  %1660 = vrot.lane.b32.xlu0 %v5511_v47, %s3805_s18 }
 0x37e   :  { %1634 = vrot.lane.b32.xlu1 %v5522_v37, %s3805_s18  ;;  %1644 = vrot.lane.b32.xlu0 %v5453_v58, %s3805_s18 }
 0x382   :  { %1646 = vrot.lane.b32.xlu1 %v5439_v51, %s3805_s18  ;;  %1648 = vrot.lane.b32.xlu0 %v5449_v27, %s3805_s18 }
 0x386   :  { %1650 = vrot.lane.b32.xlu1 %v5535_v44, %s3805_s18  ;;  %1632 = vrot.lane.b32.xlu0 %v5538_v5, %s3805_s18 }
 0x38a   :  { %1574 = vrot.lane.b32.xlu1 %v5390_v17, %s3802_s17  ;;  %1576 = vrot.lane.b32.xlu0 %v5371_v52, %s3802_s17 }
 0x38e   :  { %1578 = vrot.lane.b32.xlu1 %v5374_v29, %s3802_s17  ;;  %1580 = vrot.lane.b32.xlu0 %v5467_v59, %s3802_s17 }
 0x392   :  { %1538 = vrot.lane.b32.xlu1 %v5478_v53, %s3802_s17  ;;  %1564 = vrot.lane.b32.xlu0 %v5412_v18, %s3802_s17 }
 0x394   :  { %v5596_v21 = vpop.permute.xlu0 %2172  ;;  %v2171_v34 = vpop.permute.xlu1 %2170 }
 0x395   :  { %v2196_v63 = vsel %vm951_vm7, %v2171_v34, %v5596_v21 }
 0x396   :  { %1566 = vrot.lane.b32.xlu1 %v5393_v6, %s3802_s17  ;;  %2418 = vmatprep.subr.mxu1 %v2196_v63 }
 0x397   :  { %1568 = vrot.lane.b32.xlu0 %v5408_v30, %s3802_s17 }
 0x398   :  { %v5604_v23 = vpop.permute.xlu1 %2168  ;;  %v2159_v4 = vpop.permute.xlu0 %2158 }
 0x399   :  { %7571 = vst [vmem:[#allocation10_spill] sm:$0xff] %v5604_v23  ;;  %v2195_v41 = vsel %vm951_vm7, %v5604_v23, %v2171_v34  ;;  %v5969_v23 = vld [vmem:[%s7262_s6 + $0x40] sm:$0xff] }
 0x39a   :  { %1570 = vrot.lane.b32.xlu1 %v5493_v19, %s3802_s17  ;;  %2419 = vmatpush1.msra.mxu1 %v2195_v41  ;;  %7584 = vst [vmem:[#allocation8_spill] sm:$0xff] %v5969_v23 }
 0x39b   :  { %1536 = vrot.lane.b32.xlu0 %v5496_v14, %s3802_s17 }
 0x39c   :  { %v5612_v61 = vpop.permute.xlu1 %2160  ;;  %v5614_v13 = vpop.permute.xlu0 %2156 }
 0x39d   :  { %7572 = vst [vmem:[#allocation46_spill] sm:$0xff] %v5614_v13  ;;  %v2191_v11 = vsel %vm951_vm7, %v2159_v4, %v5612_v61  ;;  %v2190_v55 = vsel %vm951_vm7, %v5614_v13, %v2159_v4 }
 0x39e   :  { %1554 = vrot.lane.b32.xlu1 %v5436_v48, %s3802_s17  ;;  %2420 = vmatprep.subr.mxu1 %v2191_v11 }
 0x39f   :  { %1556 = vrot.lane.b32.xlu0 %v5424_v38, %s3802_s17  ;;  %2421 = vmatpush1.msra.mxu1 %v2190_v55 }
 0x3a0   :  { %v2147_v10 = vpop.permute.xlu1 %2146  ;;  %v5624_v33 = vpop.permute.xlu0 %2148 }
 0x3a1   :  { %7573 = vst [vmem:[#allocation18_spill] sm:$0xff] %v5624_v33  ;;  %v2186_v45 = vsel %vm951_vm7, %v2147_v10, %v5624_v33 }
 0x3a2   :  { %1558 = vrot.lane.b32.xlu1 %v5428_v46, %s3802_s17  ;;  %2422 = vmatprep.subr.mxu1 %v2186_v45 }
 0x3a3   :  { %1560 = vrot.lane.b32.xlu0 %v5511_v47, %s3802_s17 }
 0x3a4   :  { %v5632_v39 = vpop.permute.xlu1 %2144  ;;  %v2135_v28 = vpop.permute.xlu0 %2134 }
 0x3a5   :  { %7574 = vst [vmem:[#allocation50_spill] sm:$0xff] %v5632_v39  ;;  %v2185_v9 = vsel %vm951_vm7, %v5632_v39, %v2147_v10 }
 0x3a6   :  { %1534 = vrot.lane.b32.xlu1 %v5522_v37, %s3802_s17  ;;  %2423 = vmatpush1.msra.mxu1 %v2185_v9 }
 0x3a7   :  { %1544 = vrot.lane.b32.xlu0 %v5453_v58, %s3802_s17 }
 0x3a8   :  { %v5640_v35 = vpop.permute.xlu1 %2136  ;;  %v5642_v1 = vpop.permute.xlu0 %2132 }
 0x3a9   :  { %7575 = vst [vmem:[#allocation39_spill] sm:$0xff] %v5640_v35  ;;  %7576 = vst [vmem:[#allocation40_spill] sm:$0xff] %v5642_v1  ;;  %v2181_v0 = vsel %vm951_vm7, %v2135_v28, %v5640_v35  ;;  %v2180_v15 = vsel %vm951_vm7, %v5642_v1, %v2135_v28 }
 0x3aa   :  { %1546 = vrot.lane.b32.xlu1 %v5439_v51, %s3802_s17  ;;  %2424 = vmatprep.subr.mxu1 %v2181_v0 }
 0x3ab   :  { %1548 = vrot.lane.b32.xlu0 %v5449_v27, %s3802_s17  ;;  %2425 = vmatpush1.msra.mxu1 %v2180_v15 }
 0x3ac   :  { %v1775_v56 = vpop.permute.xlu1 %1774  ;;  %3671 = vmatmul.mubr.msk.f32.vlgmr.msra.gmra.mxu1 %vm2256_vm8, %v2234_v26  ;;  %v1777_v7 = vpop.permute.xlu0 %1776 }
 0x3ad   :  { %2464 = vmatprep.mubr.f32.mxu1 %v7325_v25  ;;  %v1799_v24 = vsel %vm426_vm3, %v1775_v56, %v1777_v7 }
 0x3ae   :  { %1550 = vrot.lane.b32.xlu1 %v5535_v44, %s3802_s17  ;;  %2281 = vmatprep.subr.mxu0 %v1799_v24 }
 0x3af   :  { %1532 = vrot.lane.b32.xlu0 %v5538_v5, %s3802_s17 }
 0x3b0   :  { %v1779_v20 = vpop.permute.xlu1 %1778  ;;  %v5662_v34 = vpop.permute.xlu0 %1780 }
 0x3b1   :  { %v1800_v63 = vsel %vm426_vm3, %v1777_v7, %v1779_v20  ;;  %v1801_v4 = vsel %vm426_vm3, %v1779_v20, %v5662_v34 }
 0x3b2   :  { %1474 = vrot.lane.b32.xlu1 %v5390_v17, %s3801_s15  ;;  %2507 = vmatprep.subr.mxu1 %v1801_v4 }
 0x3b3   :  { %1476 = vrot.lane.b32.xlu0 %v5371_v52, %s3801_s15  ;;  %2508 = vmatpush1.msra.mxu1 %v1800_v63 }
 0x3b4   :  { %v5671_v41 = vpop.permute.xlu1 %1738  ;;  %v1765_v11 = vpop.permute.xlu0 %1764 }
 0x3b5   :  { %v1831_v55 = vsel %vm426_vm3, %v5671_v41, %v1775_v56 }
 0x3b6   :  { %1478 = vrot.lane.b32.xlu1 %v5374_v29, %s3801_s15  ;;  %2282 = vmatpush1.msra.mxu0 %v1831_v55 }
 0x3b7   :  { %1480 = vrot.lane.b32.xlu0 %v5467_v59, %s3801_s15 }
 0x3b8   :  { %v1767_v10 = vpop.permute.xlu1 %1766  ;;  %v1769_v45 = vpop.permute.xlu0 %1768 }
 0x3b9   :  { %v1794_v28 = vsel %vm426_vm3, %v1765_v11, %v1767_v10  ;;  %v1795_v56 = vsel %vm426_vm3, %v1767_v10, %v1769_v45 }
 0x3ba   :  { %1418 = vrot.lane.b32.xlu1 %v5478_v53, %s3801_s15  ;;  %2283 = vmatprep.subr.mxu0 %v1794_v28 }
 0x3bb   :  { %1464 = vrot.lane.b32.xlu0 %v5412_v18, %s3801_s15 }
 0x3bc   :  { %v5684_v9 = vpop.permute.xlu1 %1770  ;;  %v5686_v0 = vpop.permute.xlu0 %1736 }
 0x3bd   :  { %v1796_v26 = vsel %vm426_vm3, %v1769_v45, %v5684_v9  ;;  %v1830_v15 = vsel %vm426_vm3, %v5686_v0, %v1765_v11 }
 0x3be   :  { %1466 = vrot.lane.b32.xlu1 %v5393_v6, %s3801_s15  ;;  %2509 = vmatprep.subr.mxu1 %v1796_v26 }
 0x3bf   :  { %1468 = vrot.lane.b32.xlu0 %v5408_v30, %s3801_s15  ;;  %2284 = vmatpush1.msra.mxu0 %v1830_v15 }
 0x3c0   :  { %2510 = vmatpush1.msra.mxu1 %v1795_v56  ;;  %v1755_v7 = vpop.permute.xlu1 %1754  ;;  %v1757_v24 = vpop.permute.xlu0 %1756 }
 0x3c1   :  { %v1789_v20 = vsel %vm426_vm3, %v1755_v7, %v1757_v24 }
 0x3c2   :  { %1470 = vrot.lane.b32.xlu1 %v5493_v19, %s3801_s15  ;;  %2285 = vmatprep.subr.mxu0 %v1789_v20 }
 0x3c3   :  { %1416 = vrot.lane.b32.xlu0 %v5496_v14, %s3801_s15 }
 0x3c4   :  { %v1759_v63 = vpop.permute.xlu1 %1758  ;;  %v5702_v4 = vpop.permute.xlu0 %1760 }
 0x3c5   :  { %v1790_v11 = vsel %vm426_vm3, %v1757_v24, %v1759_v63  ;;  %v1791_v55 = vsel %vm426_vm3, %v1759_v63, %v5702_v4 }
 0x3c6   :  { %1454 = vrot.lane.b32.xlu1 %v5436_v48, %s3801_s15  ;;  %2511 = vmatprep.subr.mxu1 %v1791_v55 }
 0x3c7   :  { %1456 = vrot.lane.b32.xlu0 %v5424_v38, %s3801_s15  ;;  %2512 = vmatpush1.msra.mxu1 %v1790_v11  ;;  %v1314_v11 = vmul.f32 %v5347_v32, %v5191_v31 }
 0x3c8   :  { %v5711_v10 = vpop.permute.xlu1 %1734  ;;  %v1745_v45 = vpop.permute.xlu0 %1744 }
 0x3c9   :  { %v1829_v28 = vsel %vm426_vm3, %v5711_v10, %v1755_v7 }
 0x3ca   :  { %1458 = vrot.lane.b32.xlu1 %v5428_v46, %s3801_s15  ;;  %2286 = vmatpush1.msra.mxu0 %v1829_v28 }
 0x3cb   :  { %1460 = vrot.lane.b32.xlu0 %v5511_v47, %s3801_s15 }
 0x3cc   :  { %v1747_v26 = vpop.permute.xlu1 %1746  ;;  %v1749_v15 = vpop.permute.xlu0 %1748 }
 0x3cd   :  { %v1784_v56 = vsel %vm426_vm3, %v1745_v45, %v1747_v26  ;;  %v1785_v55 = vsel %vm426_vm3, %v1747_v26, %v1749_v15 }
 0x3ce   :  { %1414 = vrot.lane.b32.xlu1 %v5522_v37, %s3801_s15  ;;  %2287 = vmatprep.subr.mxu0 %v1784_v56  ;;  %v1358_v56 = vadd.f32 %v5357_v16, %v1314_v11 }
 0x3cf   :  { %1444 = vrot.lane.b32.xlu0 %v5453_v58, %s3801_s15 }
 0x3d0   :  { %v5724_v24 = vpop.permute.xlu1 %1750  ;;  %v5726_v7 = vpop.permute.xlu0 %1732  ;;  %v1382_v32 = vmax.f32 %v1358_v56, 0.0 }
 0x3d1   :  { %v1786_v20 = vsel %vm426_vm3, %v1749_v15, %v5724_v24  ;;  %v1828_v63 = vsel %vm426_vm3, %v5726_v7, %v1745_v45 }
 0x3d2   :  { %1446 = vrot.lane.b32.xlu1 %v5439_v51, %s3801_s15  ;;  %2513 = vmatprep.subr.mxu1 %v1786_v20 }
 0x3d3   :  { %1448 = vrot.lane.b32.xlu0 %v5449_v27, %s3801_s15  ;;  %2288 = vmatpush1.msra.mxu0 %v1828_v63  ;;  %v5757_v63 = vmul.f32 %v1382_v32, %v7565_v36 }
 0x3d4   :  { %2514 = vmatpush1.msra.mxu1 %v1785_v55  ;;  %v1675_v28 = vpop.permute.xlu1 %1674  ;;  %v1677_v25 = vpop.permute.xlu0 %1676  ;;  %v1308_v55 = vmul.f32 %v5343_v50, %v5196_v12 }
 0x3d5   :  { %v1699_v45 = vsel %vm312_vm2, %v1675_v28, %v1677_v25  ;;  %7577 = vst [vmem:[#allocation41_spill] sm:$0xff] %v5757_v63 }
 0x3d6   :  { %1450 = vrot.lane.b32.xlu1 %v5535_v44, %s3801_s15  ;;  %2289 = vmatprep.subr.mxu0 %v1699_v45  ;;  %v1352_v56 = vadd.f32 %v5364_v60, %v1308_v55 }
 0x3d7   :  { %1412 = vrot.lane.b32.xlu0 %v5538_v5, %s3801_s15 }
 0x3d8   :  { %v1679_v31 = vpop.permute.xlu1 %1678  ;;  %v5745_v20 = vpop.permute.xlu0 %1680  ;;  %v1376_v12 = vmax.f32 %v1352_v56, 0.0 }
 0x3d9   :  { %v1700_v26 = vsel %vm312_vm2, %v1677_v25, %v1679_v31  ;;  %v1701_v16 = vsel %vm312_vm2, %v1679_v31, %v5745_v20 }
 0x3da   :  { %2070 = vrot.lane.b32.xlu1 %v5371_v52, %s3812_s25  ;;  %2515 = vmatprep.subr.mxu1 %v1701_v16  ;;  %v1302_v16 = vmul.f32 %v5345_v8, %v5201_v3  ;;  %v5789_v55 = vmul.f32 %v1376_v12, %v7565_v36 }
 0x3db   :  { %2072 = vrot.lane.b32.xlu0 %v5374_v29, %s3812_s25  ;;  %2516 = vmatpush1.msra.mxu1 %v1700_v26 }
 0x3dc   :  { %v5754_v15 = vpop.permute.xlu1 %1638  ;;  %v1665_v11 = vpop.permute.xlu0 %1664  ;;  %7578 = vst [vmem:[#allocation16_spill] sm:$0xff] %v5789_v55 }
 0x3dd   :  { %v1731_v25 = vsel %vm312_vm2, %v5754_v15, %v1675_v28 }
 0x3de   :  { %2074 = vrot.lane.b32.xlu1 %v5467_v59, %s3812_s25  ;;  %2290 = vmatpush1.msra.mxu0 %v1731_v25 }
 0x3df   :  { %2076 = vrot.lane.b32.xlu0 %v5757_v63, %s3812_s25 }
 0x3e0   :  { %v1667_v45 = vpop.permute.xlu1 %1666  ;;  %v1669_v31 = vpop.permute.xlu0 %1668 }
 0x3e1   :  { %v1694_v32 = vsel %vm312_vm2, %v1665_v11, %v1667_v45  ;;  %v1695_v25 = vsel %vm312_vm2, %v1667_v45, %v1669_v31 }
 0x3e2   :  { %2068 = vrot.lane.b32.xlu1 %v5390_v17, %s3812_s25  ;;  %2291 = vmatprep.subr.mxu0 %v1694_v32  ;;  %v1346_v32 = vadd.f32 %v5385_v54, %v1302_v16  ;;  %v1296_v16 = vmul.f32 %v5349_v43, %v5222_v42 }
 0x3e3   :  { %2058 = vrot.lane.b32.xlu0 %v5393_v6, %s3812_s25 }
 0x3e4   :  { %v5773_v50 = vpop.permute.xlu1 %1670  ;;  %v5775_v28 = vpop.permute.xlu0 %1636  ;;  %v1370_v8 = vmax.f32 %v1346_v32, 0.0 }
 0x3e5   :  { %v1696_v26 = vsel %vm312_vm2, %v1669_v31, %v5773_v50  ;;  %v1730_v60 = vsel %vm312_vm2, %v5775_v28, %v1665_v11 }
 0x3e6   :  { %2060 = vrot.lane.b32.xlu1 %v5408_v30, %s3812_s25  ;;  %2517 = vmatprep.subr.mxu1 %v1696_v26  ;;  %v5809_v26 = vmul.f32 %v1370_v8, %v7565_v36 }
 0x3e7   :  { %2062 = vrot.lane.b32.xlu0 %v5493_v19, %s3812_s25  ;;  %2292 = vmatpush1.msra.mxu0 %v1730_v60 }
 0x3e8   :  { %2518 = vmatpush1.msra.mxu1 %v1695_v25  ;;  %v1655_v56 = vpop.permute.xlu1 %1654  ;;  %v1657_v62 = vpop.permute.xlu0 %1656  ;;  %7579 = vst [vmem:[#allocation22_spill] sm:$0xff] %v5809_v26  ;;  %v1340_v25 = vadd.f32 %v5401_v57, %v1296_v16 }
 0x3e9   :  { %v1689_v11 = vsel %vm312_vm2, %v1655_v56, %v1657_v62 }
 0x3ea   :  { %2064 = vrot.lane.b32.xlu1 %v5789_v55, %s3812_s25  ;;  %2293 = vmatprep.subr.mxu0 %v1689_v11  ;;  %v1364_v42 = vmax.f32 %v1340_v25, 0.0 }
 0x3eb   :  { %2056 = vrot.lane.b32.xlu0 %v5412_v18, %s3812_s25 }
 0x3ec   :  { %v1659_v3 = vpop.permute.xlu1 %1658  ;;  %v5797_v45 = vpop.permute.xlu0 %1660 }
 0x3ed   :  { %v1690_v31 = vsel %vm312_vm2, %v1657_v62, %v1659_v3  ;;  %v1691_v54 = vsel %vm312_vm2, %v1659_v3, %v5797_v45 }
 0x3ee   :  { %2046 = vrot.lane.b32.xlu1 %v5424_v38, %s3812_s25  ;;  %2519 = vmatprep.subr.mxu1 %v1691_v54  ;;  %v5839_v54 = vmul.f32 %v1364_v42, %v7565_v36 }
 0x3ef   :  { %2048 = vrot.lane.b32.xlu0 %v5428_v46, %s3812_s25  ;;  %2520 = vmatpush1.msra.mxu1 %v1690_v31 }
 0x3f0   :  { %v5806_v12 = vpop.permute.xlu1 %1634  ;;  %v1645_v60 = vpop.permute.xlu0 %1644  ;;  %7580 = vst [vmem:[#allocation37_spill] sm:$0xff] %v5839_v54 }
 0x3f1   :  { %v1729_v62 = vsel %vm312_vm2, %v5806_v12, %v1655_v56 }
 0x3f2   :  { %2050 = vrot.lane.b32.xlu1 %v5511_v47, %s3812_s25  ;;  %2294 = vmatpush1.msra.mxu0 %v1729_v62 }
 0x3f3   :  { %2052 = vrot.lane.b32.xlu0 %v5809_v26, %s3812_s25 }
 0x3f4   :  { %v1647_v32 = vpop.permute.xlu1 %1646  ;;  %v1649_v11 = vpop.permute.xlu0 %1648 }
 0x3f5   :  { %v1684_v3 = vsel %vm312_vm2, %v1645_v60, %v1647_v32  ;;  %v1685_v31 = vsel %vm312_vm2, %v1647_v32, %v1649_v11 }
 0x3f6   :  { %2044 = vrot.lane.b32.xlu1 %v5436_v48, %s3812_s25  ;;  %2295 = vmatprep.subr.mxu0 %v1684_v3 }
 0x3f7   :  { %2034 = vrot.lane.b32.xlu0 %v5439_v51, %s3812_s25 }
 0x3f8   :  { %v5825_v43 = vpop.permute.xlu1 %1650  ;;  %v5827_v56 = vpop.permute.xlu0 %1632 }
 0x3f9   :  { %v1686_v8 = vsel %vm312_vm2, %v1649_v11, %v5825_v43  ;;  %v1728_v57 = vsel %vm312_vm2, %v5827_v56, %v1645_v60 }
 0x3fa   :  { %2036 = vrot.lane.b32.xlu1 %v5449_v27, %s3812_s25  ;;  %2521 = vmatprep.subr.mxu1 %v1686_v8 }
 0x3fb   :  { %2038 = vrot.lane.b32.xlu0 %v5535_v44, %s3812_s25  ;;  %2296 = vmatpush1.msra.mxu0 %v1728_v57 }
 0x3fc   :  { %2522 = vmatpush1.msra.mxu1 %v1685_v31  ;;  %v1575_v62 = vpop.permute.xlu1 %1574  ;;  %v1577_v16 = vpop.permute.xlu0 %1576 }
 0x3fd   :  { %v1599_v25 = vsel %vm198_vm0, %v1575_v62, %v1577_v16 }
 0x3fe   :  { %2040 = vrot.lane.b32.xlu1 %v5839_v54, %s3812_s25  ;;  %2297 = vmatprep.subr.mxu0 %v1599_v25 }
 0x3ff   :  { %2032 = vrot.lane.b32.xlu0 %v5453_v58, %s3812_s25 }
 0x400   :  { %v1579_v60 = vpop.permute.xlu1 %1578  ;;  %v5846_v3 = vpop.permute.xlu0 %1580 }
 0x401   :  { %v1600_v32 = vsel %vm198_vm0, %v1577_v16, %v1579_v60  ;;  %v1601_v11 = vsel %vm198_vm0, %v1579_v60, %v5846_v3 }
 0x402   :  { %1970 = vrot.lane.b32.xlu1 %v5371_v52, %s3810_s24  ;;  %2523 = vmatprep.subr.mxu1 %v1601_v11 }
 0x403   :  { %1972 = vrot.lane.b32.xlu0 %v5374_v29, %s3810_s24  ;;  %2524 = vmatpush1.msra.mxu1 %v1600_v32 }
 0x404   :  { %v5855_v42 = vpop.permute.xlu1 %1538  ;;  %v1565_v8 = vpop.permute.xlu0 %1564 }
 0x405   :  { %v1631_v57 = vsel %vm198_vm0, %v5855_v42, %v1575_v62 }
 0x406   :  { %1974 = vrot.lane.b32.xlu1 %v5467_v59, %s3810_s24  ;;  %2298 = vmatpush1.msra.mxu0 %v1631_v57 }
 0x407   :  { %1976 = vrot.lane.b32.xlu0 %v5757_v63, %s3810_s24 }
 0x408   :  { %v1567_v31 = vpop.permute.xlu1 %1566 }
 0x409   :  { %v1569_v16 = vpop.permute.xlu0 %1568  ;;  %v1594_v25 = vsel %vm198_vm0, %v1565_v8, %v1567_v31 }
 0x40a   :  { %1968 = vrot.lane.b32.xlu1 %v5390_v17, %s3810_s24  ;;  %2299 = vmatprep.subr.mxu0 %v1594_v25  ;;  %v1595_v57 = vsel %vm198_vm0, %v1567_v31, %v1569_v16 }
 0x40b   :  { %1958 = vrot.lane.b32.xlu0 %v5393_v6, %s3810_s24 }
 0x40c   :  { %v5868_v60 = vpop.permute.xlu1 %1570 }
 0x40d   :  { %v5870_v62 = vpop.permute.xlu0 %1536  ;;  %v1596_v32 = vsel %vm198_vm0, %v1569_v16, %v5868_v60 }
 0x40e   :  { %1960 = vrot.lane.b32.xlu1 %v5408_v30, %s3810_s24  ;;  %v1630_v11 = vsel %vm198_vm0, %v5870_v62, %v1565_v8  ;;  %2525 = vmatprep.subr.mxu1 %v1596_v32 }
 0x40f   :  { %1962 = vrot.lane.b32.xlu0 %v5493_v19, %s3810_s24  ;;  %2300 = vmatpush1.msra.mxu0 %v1630_v11 }
 0x410   :  { %2526 = vmatpush1.msra.mxu1 %v1595_v57  ;;  %v1555_v25 = vpop.permute.xlu1 %1554 }
 0x411   :  { %v1557_v36 = vpop.permute.xlu0 %1556 }
 0x412   :  { %1964 = vrot.lane.b32.xlu1 %v5789_v55, %s3810_s24  ;;  %v1589_v22 = vsel %vm198_vm0, %v1555_v25, %v1557_v36 }
 0x413   :  { %1956 = vrot.lane.b32.xlu0 %v5412_v18, %s3810_s24  ;;  %2301 = vmatprep.subr.mxu0 %v1589_v22 }
 0x414   :  { %v1559_v8 = vpop.permute.xlu1 %1558 }
 0x415   :  { %v5886_v32 = vpop.permute.xlu0 %1560  ;;  %v1590_v49 = vsel %vm198_vm0, %v1557_v36, %v1559_v8 }
 0x416   :  { %1946 = vrot.lane.b32.xlu1 %v5424_v38, %s3810_s24  ;;  %v1591_v31 = vsel %vm198_vm0, %v1559_v8, %v5886_v32 }
 0x417   :  { %1948 = vrot.lane.b32.xlu0 %v5428_v46, %s3810_s24  ;;  %2527 = vmatprep.subr.mxu1 %v1591_v31 }
 0x418   :  { %2528 = vmatpush1.msra.mxu1 %v1590_v49  ;;  %v5895_v16 = vpop.permute.xlu1 %1534 }
 0x419   :  { %v1545_v11 = vpop.permute.xlu0 %1544  ;;  %v1629_v22 = vsel %vm198_vm0, %v5895_v16, %v1555_v25 }
 0x41a   :  { %1950 = vrot.lane.b32.xlu1 %v5511_v47, %s3810_s24  ;;  %2302 = vmatpush1.msra.mxu0 %v1629_v22 }
 0x41b   :  { %1952 = vrot.lane.b32.xlu0 %v5809_v26, %s3810_s24 }
 0x41c   :  { %v1547_v36 = vpop.permute.xlu1 %1546 }
 0x41d   :  { %v1549_v57 = vpop.permute.xlu0 %1548  ;;  %v1584_v8 = vsel %vm198_vm0, %v1545_v11, %v1547_v36 }
 0x41e   :  { %1944 = vrot.lane.b32.xlu1 %v5436_v48, %s3810_s24  ;;  %2303 = vmatprep.subr.mxu0 %v1584_v8  ;;  %v1585_v8 = vsel %vm198_vm0, %v1547_v36, %v1549_v57 }
 0x41f   :  { %1934 = vrot.lane.b32.xlu0 %v5439_v51, %s3810_s24 }
 0x420   :  { %v5908_v49 = vpop.permute.xlu1 %1550 }
 0x421   :  { %v5910_v25 = vpop.permute.xlu0 %1532  ;;  %v1586_v31 = vsel %vm198_vm0, %v1549_v57, %v5908_v49 }
 0x422   :  { %1936 = vrot.lane.b32.xlu1 %v5449_v27, %s3810_s24  ;;  %v1628_v22 = vsel %vm198_vm0, %v5910_v25, %v1545_v11  ;;  %2529 = vmatprep.subr.mxu1 %v1586_v31 }
 0x423   :  { %1938 = vrot.lane.b32.xlu0 %v5535_v44, %s3810_s24  ;;  %2304 = vmatpush1.msra.mxu0 %v1628_v22 }
 0x424   :  { %2530 = vmatpush1.msra.mxu1 %v1585_v8  ;;  %v1475_v40 = vpop.permute.xlu1 %1474 }
 0x425   :  { %v1477_v2 = vpop.permute.xlu0 %1476 }
 0x426   :  { %1940 = vrot.lane.b32.xlu1 %v5839_v54, %s3810_s24  ;;  %v1499_v1 = vsel %vm80_vm1, %v1475_v40, %v1477_v2 }
 0x427   :  { %1932 = vrot.lane.b32.xlu0 %v5453_v58, %s3810_s24  ;;  %2305 = vmatprep.subr.mxu0 %v1499_v1 }
 0x428   :  { %v1479_v11 = vpop.permute.xlu1 %1478 }
 0x429   :  { %v5926_v31 = vpop.permute.xlu0 %1480  ;;  %v1500_v39 = vsel %vm80_vm1, %v1477_v2, %v1479_v11 }
 0x42a   :  { %1870 = vrot.lane.b32.xlu1 %v5371_v52, %s3807_s2  ;;  %v1501_v36 = vsel %vm80_vm1, %v1479_v11, %v5926_v31 }
 0x42b   :  { %1872 = vrot.lane.b32.xlu0 %v5374_v29, %s3807_s2  ;;  %2531 = vmatprep.subr.mxu1 %v1501_v36  ;;  %v7583_v36 = vmov 0.0  }
 0x42c   :  { %2532 = vmatpush1.msra.mxu1 %v1500_v39  ;;  %v5935_v57 = vpop.permute.xlu1 %1418  ;;  %v5947_v39 = vld [vmem:[%s7262_s6 + $0x28] sm:$0xff] }
 0x42d   :  { %v1465_v22 = vpop.permute.xlu0 %1464  ;;  %v1531_v1 = vsel %vm80_vm1, %v5935_v57, %v1475_v40  ;;  %7581 = vst [vmem:[#allocation5_spill] sm:$0xff] %v5947_v39  ;;  %3672 = vmatmul.mubr.msk.f32.gmra.mxu1 %vm2256_vm8, %v5947_v39 }
 0x42e   :  { %1874 = vrot.lane.b32.xlu1 %v5467_v59, %s3807_s2  ;;  %2306 = vmatpush1.msra.mxu0 %v1531_v1 }
 0x42f   :  { %1876 = vrot.lane.b32.xlu0 %v5757_v63, %s3807_s2  ;;  %2470 = vmatprep.mubr.f32.mxu1 %v7583_v36 }
 0x430   :  { %v1467_v2 = vpop.permute.xlu1 %1466 }
 0x431   :  { %v1469_v8 = vpop.permute.xlu0 %1468  ;;  %v1494_v11 = vsel %vm80_vm1, %v1465_v22, %v1467_v2  ;;  %3673 = vmatmul.mubr.msk.f32.gmra.mxu1 %vm2256_vm8, %v5969_v23 }
 0x432   :  { %1868 = vrot.lane.b32.xlu1 %v5390_v17, %s3807_s2  ;;  %2307 = vmatprep.subr.mxu0 %v1494_v11  ;;  %v1495_v39 = vsel %vm80_vm1, %v1467_v2, %v1469_v8 }
 0x433   :  { %1858 = vrot.lane.b32.xlu0 %v5393_v6, %s3807_s2  ;;  %2476 = vmatprep.mubr.f32.mxu1 %v7583_v36 }
 0x434   :  { %v5955_v40 = vpop.permute.xlu1 %1470 }
 0x435   :  { %7582 = vst [vmem:[#allocation13_spill] sm:$0xff] %v5955_v40  ;;  %v5958_v1 = vpop.permute.xlu0 %1416  ;;  %v1496_v13 = vsel %vm80_vm1, %v1469_v8, %v5955_v40 }
 0x436   :  { %1860 = vrot.lane.b32.xlu1 %v5408_v30, %s3807_s2  ;;  %v1530_v11 = vsel %vm80_vm1, %v5958_v1, %v1465_v22  ;;  %2533 = vmatprep.subr.mxu1 %v1496_v13  ;;  %v5983_v22 = vld [vmem:[%s7262_s6 + $0x58] sm:$0xff] }
 0x437   :  { %1862 = vrot.lane.b32.xlu0 %v5493_v19, %s3807_s2  ;;  %2308 = vmatpush1.msra.mxu0 %v1530_v11  ;;  %7585 = vst [vmem:[#allocation9_spill] sm:$0xff] %v5983_v22 }
 0x438   :  { %2534 = vmatpush1.msra.mxu1 %v1495_v39  ;;  %v1455_v35 = vpop.permute.xlu1 %1454 }
 0x439   :  { %v1457_v33 = vpop.permute.xlu0 %1456  ;;  %3674 = vmatmul.mubr.msk.f32.gmra.mxu1 %vm2256_vm8, %v5983_v22 }
 0x43a   :  { %1864 = vrot.lane.b32.xlu1 %v5789_v55, %s3807_s2  ;;  %v1489_v13 = vsel %vm80_vm1, %v1455_v35, %v1457_v33  ;;  %2482 = vmatprep.mubr.f32.mxu1 %v7583_v36 }
 0x43b   :  { %1856 = vrot.lane.b32.xlu0 %v5412_v18, %s3807_s2  ;;  %2309 = vmatprep.subr.mxu0 %v1489_v13  ;;  %v6000_v13 = vld [vmem:[%s7262_s6 + $0x70] sm:$0xff] }
 0x43c   :  { %v1459_v2 = vpop.permute.xlu1 %1458  ;;  %7587 = vst [vmem:[#allocation31_spill] sm:$0xff] %v6000_v13 }
 0x43d   :  { %v5987_v8 = vpop.permute.xlu0 %1460  ;;  %v1490_v39 = vsel %vm80_vm1, %v1457_v33, %v1459_v2  ;;  %3675 = vmatmul.mubr.msk.f32.gmra.mxu1 %vm2256_vm8, %v6000_v13 }
 0x43e   :  { %7586 = vst [vmem:[#allocation35_spill] sm:$0xff] %v5987_v8  ;;  %1846 = vrot.lane.b32.xlu1 %v5424_v38, %s3807_s2  ;;  %v1491_v11 = vsel %vm80_vm1, %v1459_v2, %v5987_v8  ;;  %v6015_v2 = vld [vmem:[%s7262_s6 + $0x88] sm:$0xff]  ;;  %2488 = vmatprep.mubr.f32.mxu1 %v7583_v36  ;;  %v6048_v8 = vld [vmem:[%s7262_s6 + $0xb8] sm:$0xff] }
 0x43f   :  { %1848 = vrot.lane.b32.xlu0 %v5428_v46, %s3807_s2  ;;  %2535 = vmatprep.subr.mxu1 %v1491_v11  ;;  %7589 = vst [vmem:[#allocation7_spill] sm:$0xff] %v6015_v2  ;;  %7593 = vst [vmem:[#allocation34_spill] sm:$0xff] %v6048_v8 }
 0x440   :  { %2536 = vmatpush1.msra.mxu1 %v1490_v39  ;;  %v6004_v33 = vpop.permute.xlu1 %1414 }
 0x441   :  { %7588 = vst [vmem:[#allocation6_spill] sm:$0xff] %v6004_v33  ;;  %v1445_v22 = vpop.permute.xlu0 %1444  ;;  %v1529_v23 = vsel %vm80_vm1, %v6004_v33, %v1455_v35  ;;  %3676 = vmatmul.mubr.msk.f32.gmra.mxu1 %vm2256_vm8, %v6015_v2 }
 0x442   :  { %1850 = vrot.lane.b32.xlu1 %v5511_v47, %s3807_s2  ;;  %2310 = vmatpush1.msra.mxu0 %v1529_v23  ;;  %v6028_v23 = vld [vmem:[%s7262_s6 + $0xa0] sm:$0xff] }
 0x443   :  { %1852 = vrot.lane.b32.xlu0 %v5809_v26, %s3807_s2  ;;  %7590 = vst [vmem:[#allocation32_spill] sm:$0xff] %v6028_v23  ;;  %2494 = vmatprep.mubr.f32.mxu1 %v7583_v36 }
 0x444   :  { %v1447_v39 = vpop.permute.xlu1 %1446 }
 0x445   :  { %v1449_v11 = vpop.permute.xlu0 %1448  ;;  %v1484_v35 = vsel %vm80_vm1, %v1445_v22, %v1447_v39  ;;  %3677 = vmatmul.mubr.msk.f32.gmra.mxu1 %vm2256_vm8, %v6028_v23  ;;  %v6056_v23 = vld [vmem:[%s7262_s6 + $0x8] sm:$0xff] }
 0x446   :  { %1844 = vrot.lane.b32.xlu1 %v5436_v48, %s3807_s2  ;;  %2311 = vmatprep.subr.mxu0 %v1484_v35  ;;  %7594 = vst [vmem:[#allocation51_spill] sm:$0xff] %v6056_v23 }
 0x447   :  { %1834 = vrot.lane.b32.xlu0 %v5439_v51, %s3807_s2  ;;  %2500 = vmatprep.mubr.f32.mxu1 %v7583_v36 }
 0x448   :  { %v6033_v13 = vpop.permute.xlu1 %1450  ;;  %2345 = vmatprep.mubr.f32.mxu0 %v6056_v23 }
 0x449   :  { %7591 = vst [vmem:[#allocation44_spill] sm:$0xff] %v6033_v13  ;;  %v6035_v33 = vpop.permute.xlu0 %1412  ;;  %v1486_v2 = vsel %vm80_vm1, %v1449_v11, %v6033_v13  ;;  %v1485_v13 = vsel %vm80_vm1, %v1447_v39, %v1449_v11  ;;  %3678 = vmatmul.mubr.msk.f32.gmra.mxu1 %vm2256_vm8, %v6048_v8 }
 0x44a   :  { %7592 = vst [vmem:[#allocation11_spill] sm:$0xff] %v6035_v33  ;;  %1836 = vrot.lane.b32.xlu1 %v5449_v27, %s3807_s2  ;;  %v1528_v35 = vsel %vm80_vm1, %v6035_v33, %v1445_v22  ;;  %2537 = vmatprep.subr.mxu1 %v1486_v2 }
 0x44b   :  { %1838 = vrot.lane.b32.xlu0 %v5535_v44, %s3807_s2  ;;  %2312 = vmatpush1.msra.mxu0 %v1528_v35 }
 0x44c   :  { %2538 = vmatpush1.msra.mxu1 %v1485_v13  ;;  %v2071_v40 = vpop.permute.xlu1 %2070  ;;  %2571 = vmatprep.mubr.f32.mxu1 %v6056_v23 }
 0x44d   :  { %v2073_v22 = vpop.permute.xlu0 %2072 }
 0x44e   :  { %1840 = vrot.lane.b32.xlu1 %v5839_v54, %s3807_s2  ;;  %v2096_v2 = vsel %vm837_vm6, %v2071_v40, %v2073_v22 }
 0x44f   :  { %1832 = vrot.lane.b32.xlu0 %v5453_v58, %s3807_s2  ;;  %2313 = vmatprep.subr.mxu0 %v2096_v2 }
 0x450   :  { %v2075_v13 = vpop.permute.xlu1 %2074 }
 0x451   :  { %v6068_v39 = vpop.permute.xlu0 %2076  ;;  %v2097_v11 = vsel %vm837_vm6, %v2073_v22, %v2075_v13 }
 0x452   :  { %7595 = vst [vmem:[#allocation19_spill] sm:$0xff] %v6068_v39  ;;  %1782 = vrot.lane.b32.xlu1 %v5757_v63, %s3806_s21  ;;  %v2098_v35 = vsel %vm837_vm6, %v2075_v13, %v6068_v39 }
 0x453   :  { %1772 = vrot.lane.b32.xlu0 %v5789_v55, %s3806_s21  ;;  %2539 = vmatprep.subr.mxu1 %v2098_v35 }
 0x454   :  { %2540 = vmatpush2.msra.mxu1 %v2097_v11  ;;  %v6077_v8 = vpop.permute.xlu1 %2068 }
 0x455   :  { %7596 = vst [vmem:[#allocation33_spill] sm:$0xff] %v6077_v8  ;;  %v2059_v23 = vpop.permute.xlu0 %2058  ;;  %v2095_v2 = vsel %vm837_vm6, %v6077_v8, %v2071_v40 }
 0x456   :  { %1762 = vrot.lane.b32.xlu1 %v5809_v26, %s3806_s21  ;;  %2314 = vmatpush2.msra.mxu0 %v2095_v2 }
 0x457   :  { %1752 = vrot.lane.b32.xlu0 %v5839_v54, %s3806_s21 }
 0x458   :  { %v2061_v22 = vpop.permute.xlu1 %2060 }
 0x459   :  { %v2063_v13 = vpop.permute.xlu0 %2062  ;;  %v2091_v39 = vsel %vm837_vm6, %v2059_v23, %v2061_v22 }
 0x45a   :  { %1682 = vrot.lane.b32.xlu1 %v5757_v63, %s3805_s18  ;;  %2315 = vmatprep.subr.mxu0 %v2091_v39  ;;  %v2092_v39 = vsel %vm837_vm6, %v2061_v22, %v2063_v13 }
 0x45b   :  { %1672 = vrot.lane.b32.xlu0 %v5789_v55, %s3805_s18 }
 0x45c   :  { %v6090_v11 = vpop.permute.xlu1 %2064 }
 0x45d   :  { %7597 = vst [vmem:[#allocation17_spill] sm:$0xff] %v6090_v11  ;;  %v6092_v40 = vpop.permute.xlu0 %2056  ;;  %v2093_v35 = vsel %vm837_vm6, %v2063_v13, %v6090_v11 }
 0x45e   :  { %7598 = vst [vmem:[#allocation48_spill] sm:$0xff] %v6092_v40  ;;  %1662 = vrot.lane.b32.xlu1 %v5809_v26, %s3805_s18  ;;  %v2090_v2 = vsel %vm837_vm6, %v6092_v40, %v2059_v23  ;;  %2541 = vmatprep.subr.mxu1 %v2093_v35 }
 0x45f   :  { %1652 = vrot.lane.b32.xlu0 %v5839_v54, %s3805_s18  ;;  %2316 = vmatpush2.msra.mxu0 %v2090_v2 }
 0x460   :  { %2542 = vmatpush2.msra.mxu1 %v2092_v39  ;;  %v2047_v8 = vpop.permute.xlu1 %2046 }
 0x461   :  { %v2049_v33 = vpop.permute.xlu0 %2048 }
 0x462   :  { %1582 = vrot.lane.b32.xlu1 %v5757_v63, %s3802_s17  ;;  %v2086_v11 = vsel %vm837_vm6, %v2047_v8, %v2049_v33 }
 0x463   :  { %1572 = vrot.lane.b32.xlu0 %v5789_v55, %s3802_s17  ;;  %2317 = vmatprep.subr.mxu0 %v2086_v11 }
 0x464   :  { %v2051_v23 = vpop.permute.xlu1 %2050 }
 0x465   :  { %v6108_v35 = vpop.permute.xlu0 %2052  ;;  %v2087_v40 = vsel %vm837_vm6, %v2049_v33, %v2051_v23 }
 0x466   :  { %1562 = vrot.lane.b32.xlu1 %v5809_v26, %s3802_s17  ;;  %v2088_v22 = vsel %vm837_vm6, %v2051_v23, %v6108_v35 }
 0x467   :  { %1552 = vrot.lane.b32.xlu0 %v5839_v54, %s3802_s17  ;;  %2543 = vmatprep.subr.mxu1 %v2088_v22 }
 0x468   :  { %2544 = vmatpush2.msra.mxu1 %v2087_v40  ;;  %v6117_v13 = vpop.permute.xlu1 %2044 }
 0x469   :  { %7599 = vst [vmem:[#allocation38_spill] sm:$0xff] %v6117_v13  ;;  %v2035_v2 = vpop.permute.xlu0 %2034  ;;  %v2085_v11 = vsel %vm837_vm6, %v6117_v13, %v2047_v8 }
 0x46a   :  { %1482 = vrot.lane.b32.xlu1 %v5757_v63, %s3801_s15  ;;  %2318 = vmatpush2.msra.mxu0 %v2085_v11 }
 0x46b   :  { %2174 = vrot.lane.b32.xlu0 %v5467_v59, %s3814_s26 }
 0x46c   :  { %v2037_v33 = vpop.permute.xlu1 %2036 }
 0x46d   :  { %v2039_v39 = vpop.permute.xlu0 %2038  ;;  %v2081_v23 = vsel %vm837_vm6, %v2035_v2, %v2037_v33 }
 0x46e   :  { %2176 = vrot.lane.b32.xlu1 %v5757_v63, %s3814_s26  ;;  %2319 = vmatprep.subr.mxu0 %v2081_v23  ;;  %v2082_v23 = vsel %vm837_vm6, %v2037_v33, %v2039_v39 }
 0x46f   :  { %1472 = vrot.lane.b32.xlu0 %v5789_v55, %s3801_s15 }
 0x470   :  { %v6130_v40 = vpop.permute.xlu1 %2040 }
 0x471   :  { %7600 = vst [vmem:[#allocation14_spill] sm:$0xff] %v6130_v40  ;;  %v6132_v8 = vpop.permute.xlu0 %2032  ;;  %v2083_v22 = vsel %vm837_vm6, %v2039_v39, %v6130_v40 }
 0x472   :  { %2162 = vrot.lane.b32.xlu1 %v5493_v19, %s3814_s26  ;;  %v2080_v11 = vsel %vm837_vm6, %v6132_v8, %v2035_v2  ;;  %2545 = vmatprep.subr.mxu1 %v2083_v22 }
 0x473   :  { %2164 = vrot.lane.b32.xlu0 %v5789_v55, %s3814_s26  ;;  %2320 = vmatpush2.msra.mxu0 %v2080_v11 }
 0x474   :  { %2546 = vmatpush2.msra.mxu1 %v2082_v23  ;;  %v1971_v63 = vpop.permute.xlu1 %1970 }
 0x475   :  { %v1973_v13 = vpop.permute.xlu0 %1972 }
 0x476   :  { %1462 = vrot.lane.b32.xlu1 %v5809_v26, %s3801_s15  ;;  %v1996_v40 = vsel %vm723_vm4, %v1971_v63, %v1973_v13 }
 0x477   :  { %2150 = vrot.lane.b32.xlu0 %v5511_v47, %s3814_s26  ;;  %2321 = vmatprep.subr.mxu0 %v1996_v40 }
 0x478   :  { %v1975_v2 = vpop.permute.xlu1 %1974 }
 0x479   :  { %v6148_v22 = vpop.permute.xlu0 %1976  ;;  %v1997_v55 = vsel %vm723_vm4, %v1973_v13, %v1975_v2 }
 0x47a   :  { %2152 = vrot.lane.b32.xlu1 %v5809_v26, %s3814_s26  ;;  %v1998_v33 = vsel %vm723_vm4, %v1975_v2, %v6148_v22 }
 0x47b   :  { %1452 = vrot.lane.b32.xlu0 %v5839_v54, %s3801_s15  ;;  %2547 = vmatprep.subr.mxu1 %v1998_v33 }
 0x47c   :  { %2548 = vmatpush2.msra.mxu1 %v1997_v55  ;;  %v6157_v39 = vpop.permute.xlu1 %1968 }
 0x47d   :  { %v1959_v11 = vpop.permute.xlu0 %1958  ;;  %v1995_v40 = vsel %vm723_vm4, %v6157_v39, %v1971_v63 }
 0x47e   :  { %2138 = vrot.lane.b32.xlu1 %v5535_v44, %s3814_s26  ;;  %2322 = vmatpush2.msra.mxu0 %v1995_v40 }
 0x47f   :  { %2140 = vrot.lane.b32.xlu0 %v5839_v54, %s3814_s26 }
 0x480   :  { %v1961_v13 = vpop.permute.xlu1 %1960 }
 0x481   :  { %v1963_v23 = vpop.permute.xlu0 %1962  ;;  %v1991_v2 = vsel %vm723_vm4, %v1959_v11, %v1961_v13 }
 0x482   :  { %2078 = vrot.lane.b32.xlu1 %v5478_v53, %s3812_s25  ;;  %2323 = vmatprep.subr.mxu0 %v1991_v2  ;;  %v1992_v2 = vsel %vm723_vm4, %v1961_v13, %v1963_v23 }
 0x483   :  { %2066 = vrot.lane.b32.xlu0 %v5496_v14, %s3812_s25 }
 0x484   :  { %v6170_v55 = vpop.permute.xlu1 %1964 }
 0x485   :  { %7601 = vst [vmem:[#allocation12_spill] sm:$0xff] %v6170_v55  ;;  %v6172_v63 = vpop.permute.xlu0 %1956  ;;  %v1993_v33 = vsel %vm723_vm4, %v1963_v23, %v6170_v55 }
 0x486   :  { %7602 = vst [vmem:[#allocation43_spill] sm:$0xff] %v6172_v63  ;;  %2054 = vrot.lane.b32.xlu1 %v5522_v37, %s3812_s25  ;;  %v1990_v40 = vsel %vm723_vm4, %v6172_v63, %v1959_v11  ;;  %2549 = vmatprep.subr.mxu1 %v1993_v33 }
 0x487   :  { %2042 = vrot.lane.b32.xlu0 %v5538_v5, %s3812_s25  ;;  %2324 = vmatpush2.msra.mxu0 %v1990_v40 }
 0x488   :  { %2550 = vmatpush2.msra.mxu1 %v1992_v2  ;;  %v1947_v54 = vpop.permute.xlu1 %1946 }
 0x489   :  { %v1949_v26 = vpop.permute.xlu0 %1948 }
 0x48a   :  { %1978 = vrot.lane.b32.xlu1 %v5478_v53, %s3810_s24  ;;  %v1986_v55 = vsel %vm723_vm4, %v1947_v54, %v1949_v26 }
 0x48b   :  { %1966 = vrot.lane.b32.xlu0 %v5496_v14, %s3810_s24  ;;  %2325 = vmatprep.subr.mxu0 %v1986_v55 }
 0x48c   :  { %v1951_v11 = vpop.permute.xlu1 %1950 }
 0x48d   :  { %v6188_v33 = vpop.permute.xlu0 %1952  ;;  %v1987_v63 = vsel %vm723_vm4, %v1949_v26, %v1951_v11 }
 0x48e   :  { %7603 = vst [vmem:[#allocation49_spill] sm:$0xff] %v6188_v33  ;;  %1954 = vrot.lane.b32.xlu1 %v5522_v37, %s3810_s24  ;;  %v1988_v13 = vsel %vm723_vm4, %v1951_v11, %v6188_v33 }
 0x48f   :  { %1942 = vrot.lane.b32.xlu0 %v5538_v5, %s3810_s24  ;;  %2551 = vmatprep.subr.mxu1 %v1988_v13 }
 0x490   :  { %2552 = vmatpush2.msra.mxu1 %v1987_v63  ;;  %v6197_v23 = vpop.permute.xlu1 %1944 }
 0x491   :  { %7604 = vst [vmem:[#allocation36_spill] sm:$0xff] %v6197_v23  ;;  %v1935_v40 = vpop.permute.xlu0 %1934  ;;  %v1985_v55 = vsel %vm723_vm4, %v6197_v23, %v1947_v54 }
 0x492   :  { %1878 = vrot.lane.b32.xlu1 %v5478_v53, %s3807_s2  ;;  %2326 = vmatpush2.msra.mxu0 %v1985_v55 }
 0x493   :  { %1866 = vrot.lane.b32.xlu0 %v5496_v14, %s3807_s2 }
 0x494   :  { %v1937_v26 = vpop.permute.xlu1 %1936 }
 0x495   :  { %v1939_v2 = vpop.permute.xlu0 %1938  ;;  %v1981_v11 = vsel %vm723_vm4, %v1935_v40, %v1937_v26 }
 0x496   :  { %1854 = vrot.lane.b32.xlu1 %v5522_v37, %s3807_s2  ;;  %2327 = vmatprep.subr.mxu0 %v1981_v11  ;;  %v1982_v23 = vsel %vm723_vm4, %v1937_v26, %v1939_v2 }
 0x497   :  { %1842 = vrot.lane.b32.xlu0 %v5538_v5, %s3807_s2 }
 0x498   :  { %v6210_v63 = vpop.permute.xlu1 %1940 }
 0x499   :  { %7605 = vst [vmem:[#allocation20_spill] sm:$0xff] %v6210_v63  ;;  %v6212_v54 = vpop.permute.xlu0 %1932  ;;  %v1983_v13 = vsel %vm723_vm4, %v1939_v2, %v6210_v63 }
 0x49a   :  { %7606 = vst [vmem:[#allocation42_spill] sm:$0xff] %v6212_v54  ;;  %2178 = vrot.lane.b32.xlu1 %v5478_v53, %s3814_s26  ;;  %v1980_v55 = vsel %vm723_vm4, %v6212_v54, %v1935_v40  ;;  %2553 = vmatprep.subr.mxu1 %v1983_v13 }
 0x49b   :  { %2166 = vrot.lane.b32.xlu0 %v5496_v14, %s3814_s26  ;;  %2328 = vmatpush2.msra.mxu0 %v1980_v55 }
 0x49c   :  { %2554 = vmatpush2.msra.mxu1 %v1982_v23  ;;  %v1871_v11 = vpop.permute.xlu1 %1870 }
 0x49d   :  { %v1873_v33 = vpop.permute.xlu0 %1872 }
 0x49e   :  { %2154 = vrot.lane.b32.xlu1 %v5522_v37, %s3814_s26  ;;  %v1896_v63 = vsel %vm609_vm5, %v1871_v11, %v1873_v33 }
 0x49f   :  { %2142 = vrot.lane.b32.xlu0 %v5538_v5, %s3814_s26  ;;  %2329 = vmatprep.subr.mxu0 %v1896_v63 }
 0x4a0   :  { %v1875_v40 = vpop.permute.xlu1 %1874 }
 0x4a1   :  { %v6228_v13 = vpop.permute.xlu0 %1876  ;;  %v1897_v26 = vsel %vm609_vm5, %v1873_v33, %v1875_v40 }
 0x4a2   :  { %7607 = vst [vmem:[#allocation21_spill] sm:$0xff] %v6228_v13  ;;  %v1898_v2 = vsel %vm609_vm5, %v1875_v40, %v6228_v13 }
 0x4a3   :  { %2555 = vmatprep.subr.mxu1 %v1898_v2 }
 0x4a4   :  { %2556 = vmatpush2.msra.mxu1 %v1897_v26  ;;  %v6233_v23 = vpop.permute.xlu1 %1868 }
 0x4a5   :  { %7608 = vst [vmem:[#allocation45_spill] sm:$0xff] %v6233_v23  ;;  %v1859_v55 = vpop.permute.xlu0 %1858  ;;  %v1895_v37 = vsel %vm609_vm5, %v6233_v23, %v1871_v11 }
 0x4a6   :  { %2330 = vmatpush2.msra.mxu0 %v1895_v37 }
 0x4a8   :  { %v1861_v14 = vpop.permute.xlu1 %1860 }
 0x4a9   :  { %v1863_v5 = vpop.permute.xlu0 %1862  ;;  %v1891_v63 = vsel %vm609_vm5, %v1859_v55, %v1861_v14 }
 0x4aa   :  { %2331 = vmatprep.subr.mxu0 %v1891_v63  ;;  %v1892_v26 = vsel %vm609_vm5, %v1861_v14, %v1863_v5 }
 0x4ac   :  { %v6238_v53 = vpop.permute.xlu1 %1864 }
 0x4ad   :  { %7609 = vst [vmem:[#allocation52_spill] sm:$0xff] %v6238_v53  ;;  %v6240_v33 = vpop.permute.xlu0 %1856  ;;  %v1893_v40 = vsel %vm609_vm5, %v1863_v5, %v6238_v53 }
 0x4ae   :  { %v1890_v2 = vsel %vm609_vm5, %v6240_v33, %v1859_v55  ;;  %2557 = vmatprep.subr.mxu1 %v1893_v40 }
 0x4af   :  { %2332 = vmatpush2.msra.mxu0 %v1890_v2  ;;  %2558 = vmatpush2.msra.mxu1 %v1892_v26 }
 0x4b0   :  { %v1847_v37 = vpop.permute.xlu1 %1846 }
 0x4b1   :  { %v1849_v11 = vpop.permute.xlu0 %1848 }
 0x4b2   :  { %v1886_v23 = vsel %vm609_vm5, %v1847_v37, %v1849_v11 }
 0x4b3   :  { %2333 = vmatprep.subr.mxu0 %v1886_v23 }
 0x4b4   :  { %v1851_v63 = vpop.permute.xlu1 %1850 }
 0x4b5   :  { %v6248_v13 = vpop.permute.xlu0 %1852  ;;  %v1887_v54 = vsel %vm609_vm5, %v1849_v11, %v1851_v63 }
 0x4b6   :  { %v1888_v53 = vsel %vm609_vm5, %v1851_v63, %v6248_v13 }
 0x4b7   :  { %2559 = vmatprep.subr.mxu1 %v1888_v53 }
 0x4b8   :  { %2560 = vmatpush2.msra.mxu1 %v1887_v54  ;;  %v6253_v14 = vpop.permute.xlu1 %1844 }
 0x4b9   :  { %v1835_v5 = vpop.permute.xlu0 %1834  ;;  %v1885_v55 = vsel %vm609_vm5, %v6253_v14, %v1847_v37 }
 0x4ba   :  { %2334 = vmatpush2.msra.mxu0 %v1885_v55 }
 0x4bc   :  { %v1837_v40 = vpop.permute.xlu1 %1836 }
 0x4bd   :  { %v1839_v26 = vpop.permute.xlu0 %1838  ;;  %v1881_v23 = vsel %vm609_vm5, %v1835_v5, %v1837_v40 }
 0x4be   :  { %2335 = vmatprep.subr.mxu0 %v1881_v23  ;;  %v1882_v54 = vsel %vm609_vm5, %v1837_v40, %v1839_v26 }
 0x4c0   :  { %v6258_v2 = vpop.permute.xlu1 %1840 }
 0x4c1   :  { %v6260_v11 = vpop.permute.xlu0 %1832  ;;  %v1883_v53 = vsel %vm609_vm5, %v1839_v26, %v6258_v2 }
 0x4c2   :  { %v1880_v63 = vsel %vm609_vm5, %v6260_v11, %v1835_v5  ;;  %2561 = vmatprep.subr.mxu1 %v1883_v53 }
 0x4c3   :  { %2336 = vmatpush2.msra.mxu0 %v1880_v63  ;;  %2562 = vmatpush2.msra.mxu1 %v1882_v54 }
 0x4c4   :  { %2337 = vmatprep.subr.mxu0 %v5371_v52  ;;  %2563 = vmatprep.subr.mxu1 %v5467_v59  ;;  %v1783_v37 = vpop.permute.xlu1 %1782 }
 0x4c5   :  { %v1773_v55 = vpop.permute.xlu0 %1772  ;;  %2338 = vmatpush2.msra.mxu0 %v5390_v17  ;;  %2564 = vmatpush2.msra.mxu1 %v5374_v29  ;;  %v6282_v29 = vld [vmem:[%s7262_s6] sm:$0xff] }
 0x4c6   :  { %2339 = vmatprep.subr.mxu0 %v5393_v6  ;;  %2565 = vmatprep.subr.mxu1 %v5493_v19  ;;  %v6289_v17 = vld [vmem:[%s7262_s6 + $0x20] sm:$0xff]  ;;  %v1803_v6 = vsel %vm426_vm3, %v1783_v37, %v5671_v41 }
 0x4c7   :  { %2340 = vmatpush2.msra.mxu0 %v5412_v18  ;;  %2566 = vmatpush2.msra.mxu1 %v5408_v30  ;;  %v1802_v18 = vsel %vm426_vm3, %v5662_v34, %v1783_v37  ;;  %v6324_v34 = vld [vmem:[%s7262_s6 + $0x30] sm:$0xff] }
 0x4c8   :  { %2341 = vmatprep.subr.mxu0 %v5424_v38  ;;  %2567 = vmatprep.subr.mxu1 %v5511_v47  ;;  %v1763_v52 = vpop.permute.xlu1 %1762 }
 0x4c9   :  { %v1753_v59 = vpop.permute.xlu0 %1752  ;;  %2342 = vmatpush2.msra.mxu0 %v5436_v48  ;;  %2568 = vmatpush2.msra.mxu1 %v5428_v46  ;;  %v6303_v46 = vld [vmem:[%s7262_s6 + $0x18] sm:$0xff]  ;;  %v1798_v48 = vsel %vm426_vm3, %v1773_v55, %v5686_v0  ;;  %v1792_v47 = vsel %vm426_vm3, %v5702_v4, %v1763_v52 }
 0x4ca   :  { %2343 = vmatprep.subr.mxu0 %v5439_v51  ;;  %2569 = vmatprep.subr.mxu1 %v5535_v44  ;;  %v6310_v51 = vld [vmem:[%s7262_s6 + $0x38] sm:$0xff]  ;;  %v1788_v41 = vsel %vm426_vm3, %v1753_v59, %v5726_v7  ;;  %v1787_v0 = vsel %vm426_vm3, %v5724_v24, %v1753_v59  ;;  %v6345_v24 = vld [vmem:[%s7262_s6 + $0x48] sm:$0xff] }
 0x4cb   :  { %2344 = vmatpush2.msra.mxu0 %v5453_v58  ;;  %2570 = vmatpush2.msra.mxu1 %v5449_v27  ;;  %v1797_v27 = vsel %vm426_vm3, %v5684_v9, %v1773_v55  ;;  %v1793_v58 = vsel %vm426_vm3, %v1763_v52, %v5711_v10  ;;  %v6331_v9 = vld [vmem:[%s7262_s6 + $0x50] sm:$0xff] }
 0x4cc   :  { %2346 = vmatmul.mubr.f32.vlgmr.msra.gmra.mxu0 %v6282_v29  ;;  %2733 = vmatprep.subr.mxu1 %v1803_v6  ;;  %v1683_v30 = vpop.permute.xlu1 %1682 }
 0x4cd   :  { %v1673_v38 = vpop.permute.xlu0 %1672  ;;  %2572 = vmatmul.mubr.f32.vlgmr.msra.gmra.mxu1 %v6282_v29  ;;  %2351 = vmatprep.mubr.f32.mxu0 %v6289_v17  ;;  %v1703_v4 = vsel %vm312_vm2, %v1683_v30, %v5754_v15  ;;  %v1702_v7 = vsel %vm312_vm2, %v5745_v20, %v1683_v30  ;;  %v6352_v15 = vld [vmem:[%s7262_s6 + $0x68] sm:$0xff] }
 0x4ce   :  { %2734 = vmatpush1.msra.mxu1 %v1802_v18  ;;  %2577 = vmatprep.mubr.f32.mxu1 %v6289_v17  ;;  %v1698_v40 = vsel %vm312_vm2, %v1673_v38, %v5775_v28  ;;  %v1697_v20 = vsel %vm312_vm2, %v5773_v50, %v1673_v38  ;;  %v6367_v50 = vld [vmem:[%s7262_s6 + $0x60] sm:$0xff]  ;;  %v6424_v38 = vld [vmem:[%s7262_s6 + $0xb0] sm:$0xff] }
 0x4cf   :  { %2735 = vmatprep.subr.mxu1 %v1798_v48 }
 0x4d0   :  { %2736 = vmatpush1.msra.mxu1 %v1797_v27  ;;  %v1663_v19 = vpop.permute.xlu1 %1662  ;;  %2352 = vmatmul.mubr.f32.gmra.mxu0 %v6303_v46 }
 0x4d1   :  { %v1653_v44 = vpop.permute.xlu0 %1652  ;;  %2737 = vmatprep.subr.mxu1 %v1793_v58  ;;  %2357 = vmatprep.mubr.f32.mxu0 %v6310_v51  ;;  %v1693_v26 = vsel %vm312_vm2, %v1663_v19, %v5806_v12  ;;  %v1692_v28 = vsel %vm312_vm2, %v5797_v45, %v1663_v19  ;;  %v6374_v12 = vld [vmem:[%s7262_s6 + $0x80] sm:$0xff] }
 0x4d2   :  { %2738 = vmatpush1.msra.mxu1 %v1792_v47  ;;  %v1688_v54 = vsel %vm312_vm2, %v1653_v44, %v5827_v56  ;;  %v1687_v45 = vsel %vm312_vm2, %v5825_v43, %v1653_v44  ;;  %v6389_v43 = vld [vmem:[%s7262_s6 + $0x78] sm:$0xff]  ;;  %v6445_v47 = vld [vmem:[%s7262_s6 + $0xa8] sm:$0xff] }
 0x4d3   :  { %2739 = vmatprep.subr.mxu1 %v1788_v41  ;;  %2578 = vmatmul.mubr.f32.gmra.mxu1 %v6303_v46 }
 0x4d4   :  { %2740 = vmatpush1.msra.mxu1 %v1787_v0  ;;  %v1583_v10 = vpop.permute.xlu1 %1582  ;;  %2358 = vmatmul.mubr.f32.gmra.mxu0 %v6324_v34  ;;  %v7611_v0 = vld [vmem:[#allocation35_spill] sm:$0xff] }
 0x4d5   :  { %v1573_v5 = vpop.permute.xlu0 %1572  ;;  %2741 = vmatprep.subr.mxu1 %v1703_v4  ;;  %2363 = vmatprep.mubr.f32.mxu0 %v6331_v9  ;;  %v1603_v63 = vsel %vm198_vm0, %v1583_v10, %v5855_v42  ;;  %v1602_v56 = vsel %vm198_vm0, %v5846_v3, %v1583_v10  ;;  %v6396_v42 = vld [vmem:[%s7262_s6 + $0x98] sm:$0xff] }
 0x4d6   :  { %2742 = vmatpush1.msra.mxu1 %v1702_v7  ;;  %2583 = vmatprep.mubr.f32.mxu1 %v6310_v51  ;;  %v1598_v52 = vsel %vm198_vm0, %v1573_v5, %v5870_v62  ;;  %v1597_v3 = vsel %vm198_vm0, %v5868_v60, %v1573_v5  ;;  %v6415_v60 = vld [vmem:[%s7262_s6 + $0x90] sm:$0xff] }
 0x4d7   :  { %2743 = vmatprep.subr.mxu1 %v1698_v40  ;;  %2584 = vmatmul.mubr.f32.gmra.mxu1 %v6324_v34 }
 0x4d8   :  { %2744 = vmatpush1.msra.mxu1 %v1697_v20  ;;  %v1563_v23 = vpop.permute.xlu1 %1562  ;;  %2364 = vmatmul.mubr.f32.gmra.mxu0 %v6345_v24  ;;  %v7613_v20 = vld [vmem:[#allocation18_spill] sm:$0xff] }
 0x4d9   :  { %v1553_v53 = vpop.permute.xlu0 %1552  ;;  %2745 = vmatprep.subr.mxu1 %v1693_v26  ;;  %2369 = vmatprep.mubr.f32.mxu0 %v6352_v15  ;;  %v1593_v59 = vsel %vm198_vm0, %v1563_v23, %v5895_v16  ;;  %v1592_v62 = vsel %vm198_vm0, %v5886_v32, %v1563_v23  ;;  %v7614_v23 = vld [vmem:[#allocation44_spill] sm:$0xff] }
 0x4da   :  { %2746 = vmatpush1.msra.mxu1 %v1692_v28  ;;  %2589 = vmatprep.mubr.f32.mxu1 %v6331_v9  ;;  %v1588_v32 = vsel %vm198_vm0, %v1553_v53, %v5910_v25  ;;  %v1587_v48 = vsel %vm198_vm0, %v5908_v49, %v1553_v53  ;;  %v7615_v53 = vld [vmem:[#allocation11_spill] sm:$0xff] }
 0x4db   :  { %2747 = vmatprep.subr.mxu1 %v1688_v54  ;;  %2590 = vmatmul.mubr.f32.gmra.mxu1 %v6345_v24 }
 0x4dc   :  { %2748 = vmatpush1.msra.mxu1 %v1687_v45  ;;  %v1483_v37 = vpop.permute.xlu1 %1482  ;;  %2370 = vmatmul.mubr.f32.gmra.mxu0 %v6367_v50 }
 0x4dd   :  { %v2175_v55 = vpop.permute.xlu0 %2174  ;;  %2749 = vmatprep.subr.mxu1 %v1603_v63  ;;  %2375 = vmatprep.mubr.f32.mxu0 %v6374_v12  ;;  %v1503_v27 = vsel %vm80_vm1, %v1483_v37, %v5935_v57  ;;  %v1502_v25 = vsel %vm80_vm1, %v5926_v31, %v1483_v37  ;;  %v7610_v31 = vld [vmem:[#allocation13_spill] sm:$0xff]  ;;  %v7616_v37 = vld [vmem:[#allocation39_spill] sm:$0xff] }
 0x4de   :  { %2750 = vmatpush1.msra.mxu1 %v1602_v56  ;;  %2595 = vmatprep.mubr.f32.mxu1 %v6352_v15  ;;  %v2197_v16 = vsel %vm951_vm7, %v5596_v21, %v2175_v55 }
 0x4df   :  { %2751 = vmatprep.subr.mxu1 %v1598_v52  ;;  %2596 = vmatmul.mubr.f32.gmra.mxu1 %v6367_v50  ;;  %v7617_v52 = vld [vmem:[#allocation51_spill] sm:$0xff] }
 0x4e0   :  { %2752 = vmatpush1.msra.mxu1 %v1597_v3  ;;  %v6404_v6 = vpop.permute.xlu1 %2176  ;;  %2376 = vmatmul.mubr.f32.gmra.mxu0 %v6389_v43 }
 0x4e1   :  { %v1473_v30 = vpop.permute.xlu0 %1472  ;;  %2753 = vmatprep.subr.mxu1 %v1593_v59  ;;  %v2198_v18 = vsel %vm951_vm7, %v2175_v55, %v6404_v6  ;;  %2381 = vmatprep.mubr.f32.mxu0 %v6396_v42 }
 0x4e2   :  { %2754 = vmatpush1.msra.mxu1 %v1592_v62  ;;  %2644 = vmatprep.subr.mxu0 %v2198_v18  ;;  %v1498_v57 = vsel %vm80_vm1, %v1473_v30, %v5958_v1  ;;  %v1497_v44 = vsel %vm80_vm1, %v7610_v31, %v1473_v30  ;;  %v7612_v1 = vld [vmem:[#allocation6_spill] sm:$0xff]  ;;  %v6481_v62 = vld [vmem:[%s7262_s6 + $0x10] sm:$0xff] }
 0x4e3   :  { %2755 = vmatprep.subr.mxu1 %v1588_v32  ;;  %2645 = vmatpush1.msra.mxu0 %v2197_v16  ;;  %v7618_v30 = vld [vmem:[#allocation19_spill] sm:$0xff]  ;;  %v7619_v16 = vld [vmem:[#allocation33_spill] sm:$0xff] }
 0x4e4   :  { %2756 = vmatpush1.msra.mxu1 %v1587_v48  ;;  %v2163_v21 = vpop.permute.xlu1 %2162  ;;  %2382 = vmatmul.mubr.f32.gmra.mxu0 %v6415_v60  ;;  %v7620_v48 = vld [vmem:[#allocation48_spill] sm:$0xff] }
 0x4e5   :  { %v6433_v58 = vpop.permute.xlu0 %2164  ;;  %2757 = vmatprep.subr.mxu1 %v1503_v27  ;;  %v2192_v19 = vsel %vm951_vm7, %v5612_v61, %v2163_v21  ;;  %2387 = vmatprep.mubr.f32.mxu0 %v6424_v38 }
 0x4e6   :  { %2758 = vmatpush1.msra.mxu1 %v1502_v25  ;;  %v2193_v49 = vsel %vm951_vm7, %v2163_v21, %v6433_v58  ;;  %2601 = vmatprep.mubr.f32.mxu1 %v6374_v12  ;;  %v7621_v21 = vld [vmem:[#allocation17_spill] sm:$0xff] }
 0x4e7   :  { %2646 = vmatprep.subr.mxu0 %v2193_v49  ;;  %2759 = vmatprep.subr.mxu1 %v1498_v57  ;;  %v7622_v57 = vld [vmem:[#allocation5_spill] sm:$0xff] }
 0x4e8   :  { %2647 = vmatpush1.msra.mxu0 %v2192_v19  ;;  %2760 = vmatpush1.msra.mxu1 %v1497_v44  ;;  %v1463_v61 = vpop.permute.xlu1 %1462  ;;  %v7623_v44 = vld [vmem:[#allocation38_spill] sm:$0xff] }
 0x4e9   :  { %v2151_v41 = vpop.permute.xlu0 %2150  ;;  %v1492_v4 = vsel %vm80_vm1, %v7611_v0, %v1463_v61  ;;  %2388 = vmatmul.mubr.f32.gmra.mxu0 %v6445_v47  ;;  %v1493_v10 = vsel %vm80_vm1, %v1463_v61, %v7612_v1  ;;  %2602 = vmatmul.mubr.f32.gmra.mxu1 %v6389_v43  ;;  %v7624_v0 = vld [vmem:[#allocation14_spill] sm:$0xff] }
 0x4ea   :  { %2761 = vmatprep.subr.mxu1 %v1493_v10  ;;  %2684 = vmatprep.mubr.f32.mxu0 %v7583_v36  ;;  %v2187_v26 = vsel %vm951_vm7, %v7613_v20, %v2151_v41 }
 0x4eb   :  { %2762 = vmatpush1.msra.mxu1 %v1492_v4  ;;  %2607 = vmatprep.mubr.f32.mxu1 %v6396_v42 }
 0x4ec   :  { %v6458_v7 = vpop.permute.xlu1 %2152 }
 0x4ed   :  { %v1453_v5 = vpop.permute.xlu0 %1452  ;;  %v2188_v40 = vsel %vm951_vm7, %v2151_v41, %v6458_v7  ;;  %2608 = vmatmul.mubr.f32.gmra.mxu1 %v6415_v60 }
 0x4ee   :  { %v1487_v28 = vsel %vm80_vm1, %v7614_v23, %v1453_v5  ;;  %2648 = vmatprep.subr.mxu0 %v2188_v40  ;;  %v1488_v54 = vsel %vm80_vm1, %v1453_v5, %v7615_v53  ;;  %2613 = vmatprep.mubr.f32.mxu1 %v6424_v38  ;;  %v7625_v5 = vld [vmem:[#allocation8_spill] sm:$0xff] }
 0x4ef   :  { %2763 = vmatprep.subr.mxu1 %v1488_v54  ;;  %2649 = vmatpush1.msra.mxu0 %v2187_v26  ;;  %v7627_v26 = vld [vmem:[#allocation12_spill] sm:$0xff]  ;;  %v7628_v54 = vld [vmem:[#allocation9_spill] sm:$0xff] }
 0x4f0   :  { %2764 = vmatpush1.msra.mxu1 %v1487_v28  ;;  %v2139_v45 = vpop.permute.xlu1 %2138 }
 0x4f1   :  { %v6470_v63 = vpop.permute.xlu0 %2140  ;;  %v2182_v56 = vsel %vm951_vm7, %v7616_v37, %v2139_v45  ;;  %2614 = vmatmul.mubr.f32.gmra.mxu1 %v6445_v47 }
 0x4f2   :  { %v2183_v55 = vsel %vm951_vm7, %v2139_v45, %v6470_v63  ;;  %2797 = vmatprep.mubr.f32.mxu1 %v7617_v52  ;;  %v7632_v52 = vld [vmem:[#allocation20_spill] sm:$0xff] }
 0x4f3   :  { %2650 = vmatprep.subr.mxu0 %v2183_v55 }
 0x4f4   :  { %2651 = vmatpush1.msra.mxu0 %v2182_v56  ;;  %v2079_v3 = vpop.permute.xlu1 %2078  ;;  %v7631_v56 = vld [vmem:[#allocation42_spill] sm:$0xff] }
 0x4f5   :  { %v2067_v59 = vpop.permute.xlu0 %2066  ;;  %3679 = vmatmul.mubr.msk.f32.vlgmr.msra.gmra.mxu0 %vm2256_vm8, %v6481_v62  ;;  %v2099_v18 = vsel %vm837_vm6, %v7618_v30, %v2079_v3  ;;  %v2131_v32 = vsel %vm837_vm6, %v2079_v3, %v7619_v16  ;;  %v7634_v16 = vld [vmem:[#allocation21_spill] sm:$0xff] }
 0x4f6   :  { %2765 = vmatprep.subr.mxu1 %v2131_v32  ;;  %2690 = vmatprep.mubr.f32.mxu0 %v7583_v36  ;;  %v2130_v27 = vsel %vm837_vm6, %v2067_v59, %v7620_v48  ;;  %v2094_v25 = vsel %vm837_vm6, %v7621_v21, %v2067_v59  ;;  %v7635_v48 = vld [vmem:[#allocation45_spill] sm:$0xff] }
 0x4f7   :  { %2766 = vmatpush2.msra.mxu1 %v2099_v18  ;;  %v7633_v18 = vld [vmem:[#allocation31_spill] sm:$0xff] }
 0x4f8   :  { %2767 = vmatprep.subr.mxu1 %v2130_v27  ;;  %v2055_v19 = vpop.permute.xlu1 %2054 }
 0x4f9   :  { %v2043_v49 = vpop.permute.xlu0 %2042  ;;  %3680 = vmatmul.mubr.msk.f32.gmra.mxu0 %vm2256_vm8, %v7622_v57  ;;  %v2089_v31 = vsel %vm837_vm6, %v6108_v35, %v2055_v19  ;;  %2768 = vmatpush2.msra.mxu1 %v2094_v25  ;;  %v2129_v61 = vsel %vm837_vm6, %v2055_v19, %v7623_v44  ;;  %v7636_v25 = vld [vmem:[#allocation52_spill] sm:$0xff] }
 0x4fa   :  { %2769 = vmatprep.subr.mxu1 %v2129_v61  ;;  %2696 = vmatprep.mubr.f32.mxu0 %v7583_v36  ;;  %v2128_v41 = vsel %vm837_vm6, %v2043_v49, %v6132_v8  ;;  %v2084_v4 = vsel %vm837_vm6, %v7624_v0, %v2043_v49  ;;  %v7626_v8 = vld [vmem:[#allocation43_spill] sm:$0xff] }
 0x4fb   :  { %2770 = vmatpush2.msra.mxu1 %v2089_v31  ;;  %v7637_v31 = vld [vmem:[#allocation7_spill] sm:$0xff] }
 0x4fc   :  { %2771 = vmatprep.subr.mxu1 %v2128_v41  ;;  %v1979_v1 = vpop.permute.xlu1 %1978 }
 0x4fd   :  { %v1967_v10 = vpop.permute.xlu0 %1966  ;;  %3681 = vmatmul.mubr.msk.f32.gmra.mxu0 %vm2256_vm8, %v7625_v5  ;;  %v1999_v35 = vsel %vm723_vm4, %v6148_v22, %v1979_v1  ;;  %2772 = vmatpush2.msra.mxu1 %v2084_v4  ;;  %v2031_v40 = vsel %vm723_vm4, %v1979_v1, %v6157_v39  ;;  %v7629_v22 = vld [vmem:[#allocation49_spill] sm:$0xff]  ;;  %v7630_v39 = vld [vmem:[#allocation36_spill] sm:$0xff]  ;;  %v7640_v5 = vld [vmem:[#allocation47_spill] sm:$0xff] }
 0x4fe   :  { %2773 = vmatprep.subr.mxu1 %v2031_v40  ;;  %2702 = vmatprep.mubr.f32.mxu0 %v7583_v36  ;;  %v2030_v20 = vsel %vm723_vm4, %v1967_v10, %v7626_v8  ;;  %v1994_v23 = vsel %vm723_vm4, %v7627_v26, %v1967_v10  ;;  %v7638_v1 = vld [vmem:[#allocation32_spill] sm:$0xff]  ;;  %v7644_v26 = vld [vmem:[#allocation34_spill] sm:$0xff] }
 0x4ff   :  { %2774 = vmatpush2.msra.mxu1 %v1999_v35  ;;  %v7643_v35 = vld [vmem:[#allocation46_spill] sm:$0xff] }
 0x500   :  { %2775 = vmatprep.subr.mxu1 %v2030_v20  ;;  %v1955_v28 = vpop.permute.xlu1 %1954 }
 0x501   :  { %v1943_v53 = vpop.permute.xlu0 %1942  ;;  %3682 = vmatmul.mubr.msk.f32.gmra.mxu0 %vm2256_vm8, %v7628_v54  ;;  %v1989_v45 = vsel %vm723_vm4, %v7629_v22, %v1955_v28  ;;  %2776 = vmatpush2.msra.mxu1 %v1994_v23  ;;  %v2029_v37 = vsel %vm723_vm4, %v1955_v28, %v7630_v39  ;;  %v7645_v28 = vld [vmem:[#allocation50_spill] sm:$0xff]  ;;  %v7646_v54 = vld [vmem:[#allocation16_spill] sm:$0xff]  ;;  %v7647_v22 = vld [vmem:[#allocation27_spill] sm:$0xff] }
 0x502   :  { %2777 = vmatprep.subr.mxu1 %v2029_v37  ;;  %2708 = vmatprep.mubr.f32.mxu0 %v7583_v36  ;;  %v2028_v55 = vsel %vm723_vm4, %v1943_v53, %v7631_v56  ;;  %v1984_v3 = vsel %vm723_vm4, %v7632_v52, %v1943_v53  ;;  %v7650_v56 = vld [vmem:[#allocation30_spill] sm:$0xff] }
 0x503   :  { %2778 = vmatpush2.msra.mxu1 %v1989_v45  ;;  %v7648_v45 = vld [vmem:[#allocation22_spill] sm:$0xff] }
 0x504   :  { %2779 = vmatprep.subr.mxu1 %v2028_v55  ;;  %v1879_v59 = vpop.permute.xlu1 %1878 }
 0x505   :  { %v1867_v30 = vpop.permute.xlu0 %1866  ;;  %3683 = vmatmul.mubr.msk.f32.gmra.mxu0 %vm2256_vm8, %v7633_v18  ;;  %v1899_v32 = vsel %vm609_vm5, %v7634_v16, %v1879_v59  ;;  %2780 = vmatpush2.msra.mxu1 %v1984_v3  ;;  %v1931_v27 = vsel %vm609_vm5, %v1879_v59, %v7635_v48 }
 0x506   :  { %2781 = vmatprep.subr.mxu1 %v1931_v27  ;;  %2714 = vmatprep.mubr.f32.mxu0 %v7583_v36  ;;  %v1930_v21 = vsel %vm609_vm5, %v1867_v30, %v6240_v33  ;;  %v1894_v19 = vsel %vm609_vm5, %v7636_v25, %v1867_v30 }
 0x507   :  { %2782 = vmatpush2.msra.mxu1 %v1899_v32 }
 0x508   :  { %2783 = vmatprep.subr.mxu1 %v1930_v21  ;;  %v1855_v49 = vpop.permute.xlu1 %1854 }
 0x509   :  { %v1843_v57 = vpop.permute.xlu0 %1842  ;;  %3684 = vmatmul.mubr.msk.f32.gmra.mxu0 %vm2256_vm8, %v7637_v31  ;;  %v1889_v44 = vsel %vm609_vm5, %v6248_v13, %v1855_v49  ;;  %2784 = vmatpush2.msra.mxu1 %v1894_v19  ;;  %v1929_v61 = vsel %vm609_vm5, %v1855_v49, %v6253_v14  ;;  %v7639_v14 = vld [vmem:[#allocation10_spill] sm:$0xff] }
 0x50a   :  { %2785 = vmatprep.subr.mxu1 %v1929_v61  ;;  %2720 = vmatprep.mubr.f32.mxu0 %v7583_v36  ;;  %v1928_v33 = vsel %vm609_vm5, %v1843_v57, %v6260_v11  ;;  %v1884_v41 = vsel %vm609_vm5, %v6258_v2, %v1843_v57  ;;  %v7641_v11 = vld [vmem:[#allocation41_spill] sm:$0xff]  ;;  %v7642_v2 = vld [vmem:[#allocation15_spill] sm:$0xff] }
 0x50b   :  { %2786 = vmatpush2.msra.mxu1 %v1889_v44 }
 0x50c   :  { %2787 = vmatprep.subr.mxu1 %v1928_v33  ;;  %v2179_v0 = vpop.permute.xlu1 %2178 }
 0x50d   :  { %v2167_v4 = vpop.permute.xlu0 %2166  ;;  %3685 = vmatmul.mubr.msk.f32.gmra.mxu0 %vm2256_vm8, %v7638_v1  ;;  %v2199_v13 = vsel %vm951_vm7, %v6404_v6, %v2179_v0  ;;  %2788 = vmatpush2.msra.mxu1 %v1884_v41  ;;  %v2231_v10 = vsel %vm951_vm7, %v2179_v0, %v7639_v14 }
 0x50e   :  { %2789 = vmatprep.subr.mxu1 %v7640_v5  ;;  %2870 = vmatprep.subr.mxu0 %v2231_v10  ;;  %v2230_v40 = vsel %vm951_vm7, %v2167_v4, %v7643_v35  ;;  %v2194_v6 = vsel %vm951_vm7, %v6433_v58, %v2167_v4  ;;  %v7649_v58 = vld [vmem:[#allocation40_spill] sm:$0xff] }
 0x50f   :  { %2726 = vmatprep.mubr.f32.mxu0 %v7583_v36  ;;  %2790 = vmatpush2.msra.mxu1 %v7641_v11 }
 0x510   :  { %2871 = vmatpush1.msra.mxu0 %v2199_v13  ;;  %2791 = vmatprep.subr.mxu1 %v7642_v2  ;;  %v2155_v8 = vpop.permute.xlu1 %2154 }
 0x511   :  { %v2143_v20 = vpop.permute.xlu0 %2142  ;;  %3686 = vmatmul.mubr.msk.f32.gmra.mxu0 %vm2256_vm8, %v7644_v26  ;;  %2872 = vmatprep.subr.mxu0 %v2230_v40  ;;  %v2189_v23 = vsel %vm951_vm7, %v6458_v7, %v2155_v8  ;;  %v2229_v53 = vsel %vm951_vm7, %v2155_v8, %v7645_v28  ;;  %v7651_v7 = vld [vmem:[#allocation37_spill] sm:$0xff] }
 0x512   :  { %2792 = vmatpush2.msra.mxu1 %v7646_v54  ;;  %2873 = vmatpush1.msra.mxu0 %v2194_v6  ;;  %v2228_v39 = vsel %vm951_vm7, %v2143_v20, %v7649_v58  ;;  %v2184_v37 = vsel %vm951_vm7, %v6470_v63, %v2143_v20  ;;  %v3771_v63 = vld [vmem:[%s7262_s6 + $0x28] sm:$0xff] }
 0x513   :  { %2793 = vmatprep.subr.mxu1 %v7647_v22  ;;  %2874 = vmatprep.subr.mxu0 %v2229_v53 }
 0x514   :  { %2794 = vmatpush2.msra.mxu1 %v7648_v45  ;;  %2875 = vmatpush1.msra.mxu0 %v2189_v23 }
 0x515   :  { %2795 = vmatprep.subr.mxu1 %v7650_v56  ;;  %2876 = vmatprep.subr.mxu0 %v2228_v39 }
 0x516   :  { %2796 = vmatpush2.msra.mxu1 %v7651_v7  ;;  %2877 = vmatpush1.msra.mxu0 %v2184_v37 }
 0x517   :  { %2910 = vmatprep.mubr.f32.mxu0 %v7583_v36  ;;  %2798 = vmatmul.mubr.f32.vlgmr.msra.gmra.mxu1 %v6282_v29  ;;  %v3772_v29 = vld [vmem:[%s7262_s6 + $0x40] sm:$0xff] }
 0x518   :  { %3687 = vmatmul.mubr.msk.f32.vlgmr.msra.gmra.mxu0 %vm2256_vm8, %v6481_v62  ;;  %2803 = vmatprep.mubr.f32.mxu1 %v6289_v17  ;;  %v3773_v17 = vld [vmem:[%s7262_s6 + $0x58] sm:$0xff] }
 0x519   :  { %2916 = vmatprep.mubr.f32.mxu0 %v7583_v36 }
 0x51b   :  { %2804 = vmatmul.mubr.f32.gmra.mxu1 %v6303_v46  ;;  %v3774_v46 = vld [vmem:[%s7262_s6 + $0x70] sm:$0xff] }
 0x51c   :  { %3688 = vmatmul.mubr.msk.f32.gmra.mxu0 %vm2256_vm8, %v3771_v63  ;;  %2809 = vmatprep.mubr.f32.mxu1 %v6310_v51  ;;  %v3775_v51 = vld [vmem:[%s7262_s6 + $0x88] sm:$0xff] }
 0x51d   :  { %2922 = vmatprep.mubr.f32.mxu0 %v7583_v36 }
 0x51f   :  { %2810 = vmatmul.mubr.f32.gmra.mxu1 %v6324_v34  ;;  %v3776_v34 = vld [vmem:[%s7262_s6 + $0xa0] sm:$0xff] }
 0x520   :  { %3689 = vmatmul.mubr.msk.f32.gmra.mxu0 %vm2256_vm8, %v3772_v29  ;;  %2815 = vmatprep.mubr.f32.mxu1 %v6331_v9  ;;  %v2460_v9 = vpop.f32.mrf.mxu1 }
 0x521   :  { %2928 = vmatprep.mubr.f32.mxu0 %v7583_v36 }
 0x523   :  { %2816 = vmatmul.mubr.f32.gmra.mxu1 %v6345_v24  ;;  %v2462_v24 = vpop.f32.mrf.mxu1 }
 0x524   :  { %3690 = vmatmul.mubr.msk.f32.gmra.mxu0 %vm2256_vm8, %v3773_v17  ;;  %2821 = vmatprep.mubr.f32.mxu1 %v6352_v15 }
 0x525   :  { %2934 = vmatprep.mubr.f32.mxu0 %v7583_v36  ;;  %v6629_v15 = vpop.f32.mrf.mxu1 }
 0x527   :  { %2822 = vmatmul.mubr.f32.gmra.mxu1 %v6367_v50  ;;  %v2468_v50 = vpop.f32.mrf.mxu1 }
 0x528   :  { %3691 = vmatmul.mubr.msk.f32.gmra.mxu0 %vm2256_vm8, %v3774_v46  ;;  %2827 = vmatprep.mubr.f32.mxu1 %v6374_v12 }
 0x529   :  { %2940 = vmatprep.mubr.f32.mxu0 %v7583_v36  ;;  %v6631_v12 = vpop.f32.mrf.mxu1 }
 0x52b   :  { %2828 = vmatmul.mubr.f32.gmra.mxu1 %v6389_v43  ;;  %v2474_v43 = vpop.f32.mrf.mxu1 }
 0x52c   :  { %3692 = vmatmul.mubr.msk.f32.gmra.mxu0 %vm2256_vm8, %v3775_v51  ;;  %2833 = vmatprep.mubr.f32.mxu1 %v6396_v42 }
 0x52d   :  { %2946 = vmatprep.mubr.f32.mxu0 %v7583_v36  ;;  %v6633_v42 = vpop.f32.mrf.mxu1 }
 0x52f   :  { %2834 = vmatmul.mubr.f32.gmra.mxu1 %v6415_v60  ;;  %v6635_v60 = vpop.f32.mrf.mxu1 }
 0x530   :  { %3693 = vmatmul.mubr.msk.f32.gmra.mxu0 %vm2256_vm8, %v3776_v34  ;;  %2839 = vmatprep.mubr.f32.mxu1 %v6424_v38  ;;  %v7660_v34 = vld [vmem:[#allocation25_spill] sm:$0xff] }
 0x531   :  { %2952 = vmatprep.mubr.f32.mxu0 %v7583_v36  ;;  %v6637_v38 = vpop.f32.mrf.mxu1 }
 0x533   :  { %2840 = vmatmul.mubr.f32.gmra.mxu1 %v6445_v47  ;;  %v6639_v36 = vpop.f32.mrf.mxu1 }
 0x534   :  { %3694 = vmatmul.mubr.msk.f32.gmra.mxu0 %vm2256_vm8, %v7644_v26 }
 0x535   :  { %v6641_v47 = vpop.f32.mrf.mxu1 }
 0x537   :  { %v6643_v62 = vpop.f32.mrf.mxu1 }
 0x539   :  { %v6645_v55 = vpop.f32.mrf.mxu1 }
 0x53b   :  { %v6647_v59 = vpop.f32.mrf.mxu1 }
 0x53d   :  { %v6649_v16 = vpop.f32.mrf.mxu1 }
 0x53e   :  { %7652 = vst [vmem:[#allocation13_spill] sm:$0xff] %v6649_v16 }
 0x53f   :  { %v6651_v27 = vpop.f32.mrf.mxu1 }
 0x540   :  { %7653 = vst [vmem:[#allocation35_spill] sm:$0xff] %v6651_v27 }
 0x58c   :  { %v2347_v52 = vpop.f32.mrf.mxu0 }
 0x58d   :  { %v2573_v19 = vpop.f32.mrf.mxu1  ;;  %v6701_v17 = vadd.f32 %v2460_v9, %v2347_v52  ;;  %v7665_v9 = vld [vmem:[#allocation26_spill] sm:$0xff] }
 0x58e   :  { %v2349_v3 = vpop.f32.mrf.mxu0 }
 0x58f   :  { %v2575_v31 = vpop.f32.mrf.mxu1  ;;  %v6695_v7 = vadd.f32 %v2462_v24, %v2349_v3  ;;  %7658 = vst [vmem:[#allocation39_spill] sm:$0xff] %v6701_v17  ;;  %v7663_v24 = vld [vmem:[#allocation23_spill] sm:$0xff] }
 0x590   :  { %v2353_v30 = vpop.f32.mrf.mxu0  ;;  %v2975_v3 = vmul.f32 %v6701_v17, %v7663_v24 }
 0x591   :  { %7656 = vst [vmem:[#allocation44_spill] sm:$0xff] %v6695_v7  ;;  %v2976_v27 = vmul.f32 %v6695_v7, %v7660_v34 }
 0x592   :  { %v2355_v18 = vpop.f32.mrf.mxu0 }
 0x593   :  { %v2579_v61 = vpop.f32.mrf.mxu1 }
 0x594   :  { %v2359_v32 = vpop.f32.mrf.mxu0 }
 0x595   :  { %v2581_v41 = vpop.f32.mrf.mxu1 }
 0x596   :  { %v2361_v48 = vpop.f32.mrf.mxu0 }
 0x597   :  { %v2585_v4 = vpop.f32.mrf.mxu1  ;;  %v6711_v16 = vadd.f32 %v2474_v43, %v2361_v48 }
 0x598   :  { %v2365_v21 = vpop.f32.mrf.mxu0 }
 0x599   :  { %v6665_v13 = vpop.f32.mrf.mxu1  ;;  %7662 = vst [vmem:[#allocation33_spill] sm:$0xff] %v6711_v16 }
 0x59a   :  { %v2367_v25 = vpop.f32.mrf.mxu0 }
 0x59b   :  { %v6669_v10 = vpop.f32.mrf.mxu1  ;;  %v6734_v7 = vadd.f32 %v6635_v60, %v2367_v25 }
 0x59c   :  { %v6653_v49 = vpop.f32.mrf.mxu0 }
 0x59d   :  { %v6673_v2 = vpop.f32.mrf.mxu1  ;;  %7669 = vst [vmem:[#allocation14_spill] sm:$0xff] %v6734_v7 }
 0x59e   :  { %v6655_v57 = vpop.f32.mrf.mxu0 }
 0x59f   :  { %v6675_v8 = vpop.f32.mrf.mxu1 }
 0x5a0   :  { %v6657_v44 = vpop.f32.mrf.mxu0 }
 0x5a1   :  { %v6677_v26 = vpop.f32.mrf.mxu1 }
 0x5a2   :  { %v6659_v33 = vpop.f32.mrf.mxu0 }
 0x5a4   :  { %v6661_v0 = vpop.f32.mrf.mxu0 }
 0x5a6   :  { %v6663_v1 = vpop.f32.mrf.mxu0 }
 0x5a9   :  { %v6667_v14 = vpop.f32.mrf.mxu0  ;;  %v6679_v53 = vpop.f32.mrf.mxu1 }
 0x5aa   :  { %7654 = vst [vmem:[#allocation6_spill] sm:$0xff] %v6667_v14 }
 0x5ab   :  { %v6671_v5 = vpop.f32.mrf.mxu0  ;;  %v6685_v45 = vpop.f32.mrf.mxu1 }
 0x5ac   :  { %7655 = vst [vmem:[#allocation18_spill] sm:$0xff] %v6671_v5  ;;  %v6709_v5 = vadd.f32 %v2468_v50, %v2355_v18  ;;  %v6727_v50 = vadd.f32 %v6631_v12, %v2359_v32  ;;  %v3023_v18 = vadd.f32 %v2976_v27, %v2975_v3  ;;  %v7672_v27 = vld [vmem:[#allocation28_spill] sm:$0xff] }
 0x5ad   :  { %v6691_v37 = vpop.f32.mrf.mxu1 }
 0x5ae   :  { %7661 = vst [vmem:[#allocation19_spill] sm:$0xff] %v6709_v5  ;;  %7667 = vst [vmem:[#allocation5_spill] sm:$0xff] %v6727_v50  ;;  %v2982_v48 = vmul.f32 %v6709_v5, %v7660_v34  ;;  %v2987_v60 = vmul.f32 %v6727_v50, %v7663_v24 }
 0x5af   :  { %v6699_v29 = vpop.f32.mrf.mxu1 }
 0x5b0   :  { %7657 = vst [vmem:[#allocation11_spill] sm:$0xff] %v6699_v29  ;;  %v6718_v29 = vadd.f32 %v6629_v15, %v2353_v30  ;;  %v2988_v15 = vmul.f32 %v6711_v16, %v7660_v34  ;;  %v6739_v30 = vadd.f32 %v6633_v42, %v2365_v21 }
 0x5b1   :  { %v6713_v14 = vpop.f32.mrf.mxu1 }
 0x5b2   :  { %7664 = vst [vmem:[#allocation48_spill] sm:$0xff] %v6718_v29  ;;  %7670 = vst [vmem:[#allocation8_spill] sm:$0xff] %v6739_v30  ;;  %v2981_v12 = vmul.f32 %v6718_v29, %v7663_v24 }
 0x5b5   :  { %v2686_v11 = vpop.f32.mrf.mxu0 }
 0x5b6   :  { %v6703_v46 = vadd.f32 %v2686_v11, %v2573_v19 }
 0x5b7   :  { %v2688_v35 = vpop.f32.mrf.mxu0 }
 0x5b8   :  { %7659 = vst [vmem:[#allocation51_spill] sm:$0xff] %v6703_v46  ;;  %v2977_v52 = vmul.f32 %v6703_v46, %v7665_v9  ;;  %v6722_v19 = vadd.f32 %v2688_v35, %v2575_v31  ;;  %v6743_v35 = vpop.f32.mrf.mxu1 }
 0x5b9   :  { %v2692_v40 = vpop.f32.mrf.mxu0 }
 0x5ba   :  { %7666 = vst [vmem:[#allocation17_spill] sm:$0xff] %v6722_v19  ;;  %v6729_v43 = vadd.f32 %v2692_v40, %v2579_v61  ;;  %v3024_v32 = vadd.f32 %v3023_v18, %v2977_v52  ;;  %v2978_v61 = vmul.f32 %v6722_v19, %v7672_v27  ;;  %v3037_v52 = vadd.f32 %v2988_v15, %v2987_v60 }
 0x5bb   :  { %v2694_v6 = vpop.f32.mrf.mxu0  ;;  %v2993_v18 = vmul.f32 %v6739_v30, %v7663_v24  ;;  %v7676_v30 = vld [vmem:[#allocation29_spill] sm:$0xff] }
 0x5bc   :  { %7668 = vst [vmem:[#allocation38_spill] sm:$0xff] %v6729_v43  ;;  %v2983_v42 = vmul.f32 %v6729_v43, %v7665_v9  ;;  %v6755_v21 = vadd.f32 %v2694_v6, %v2581_v41  ;;  %v6767_v41 = vadd.f32 %v6637_v38, %v6653_v49  ;;  %v3025_v6 = vadd.f32 %v3024_v32, %v2978_v61  ;;  %v7678_v32 = vld [vmem:[#allocation24_spill] sm:$0xff] }
 0x5bd   :  { %v2698_v20 = vpop.f32.mrf.mxu0  ;;  %v6783_v49 = vadd.f32 %v6639_v36, %v6655_v57 }
 0x5be   :  { %v6741_v31 = vadd.f32 %v2698_v20, %v2585_v4  ;;  %7673 = vst [vmem:[#allocation12_spill] sm:$0xff] %v6755_v21  ;;  %v3030_v4 = vadd.f32 %v2982_v48, %v2981_v12  ;;  %v2994_v20 = vmul.f32 %v6734_v7, %v7660_v34  ;;  %v2984_v7 = vmul.f32 %v6755_v21, %v7672_v27 }
 0x5bf   :  { %v2700_v23 = vpop.f32.mrf.mxu0 }
 0x5c0   :  { %7671 = vst [vmem:[#allocation43_spill] sm:$0xff] %v6741_v31  ;;  %v2989_v16 = vmul.f32 %v6741_v31, %v7665_v9  ;;  %v6770_v48 = vadd.f32 %v2700_v23, %v6665_v13  ;;  %v3031_v60 = vadd.f32 %v3030_v4, %v2983_v42  ;;  %v3044_v38 = vadd.f32 %v2994_v20, %v2993_v18 }
 0x5c1   :  { %v2704_v28 = vpop.f32.mrf.mxu0  ;;  %v6787_v13 = vadd.f32 %v6641_v47, %v6657_v44  ;;  %v2999_v18 = vmul.f32 %v6767_v41, %v7663_v24 }
 0x5c2   :  { %7675 = vst [vmem:[#allocation49_spill] sm:$0xff] %v6770_v48  ;;  %v6773_v12 = vadd.f32 %v2704_v28, %v6669_v10  ;;  %v6791_v10 = vadd.f32 %v6643_v62, %v6659_v33  ;;  %v3038_v28 = vadd.f32 %v3037_v52, %v2989_v16  ;;  %v2990_v36 = vmul.f32 %v6770_v48, %v7672_v27 }
 0x5c3   :  { %v6681_v54 = vpop.f32.mrf.mxu0  ;;  %v3032_v44 = vadd.f32 %v3031_v60, %v2984_v7 }
 0x5c4   :  { %v2995_v47 = vmul.f32 %v6773_v12, %v7665_v9  ;;  %v6803_v57 = vadd.f32 %v6681_v54, %v6673_v2  ;;  %v3000_v2 = vmul.f32 %v6783_v49, %v7660_v34  ;;  %v3005_v54 = vmul.f32 %v6787_v13, %v7663_v24 }
 0x5c5   :  { %v6683_v22 = vpop.f32.mrf.mxu0 }
 0x5c6   :  { %v6807_v62 = vadd.f32 %v6683_v22, %v6675_v8  ;;  %v3006_v8 = vmul.f32 %v6791_v10, %v7660_v34 }
 0x5c7   :  { %v6687_v58 = vpop.f32.mrf.mxu0 }
 0x5c8   :  { %7680 = vst [vmem:[#allocation20_spill] sm:$0xff] %v6807_v62 }
 0x5c9   :  { %v6689_v39 = vpop.f32.mrf.mxu0 }
 0x5ca   :  { %v6823_v7 = vadd.f32 %v6689_v39, %v6679_v53  ;;  %v6835_v53 = vadd.f32 %v6687_v58, %v6677_v26 }
 0x5cb   :  { %v6693_v56 = vpop.f32.mrf.mxu0 }
 0x5cc   :  { %7683 = vst [vmem:[#allocation45_spill] sm:$0xff] %v6835_v53  ;;  %v3007_v26 = vmul.f32 %v6823_v7, %v7665_v9 }
 0x5cd   :  { %v6697_v63 = vpop.f32.mrf.mxu0 }
 0x5cf   :  { %v6705_v51 = vpop.f32.mrf.mxu0 }
 0x5d1   :  { %v6724_v11 = vpop.f32.mrf.mxu0 }
 0x5d3   :  { %v6749_v40 = vpop.f32.mrf.mxu0 }
 0x5d7   :  { %v2799_v25 = vpop.f32.mrf.mxu1 }
 0x5d8   :  { %v2912_v3 = vpop.f32.mrf.mxu0 }
 0x5d9   :  { %v6763_v5 = vadd.f32 %v2912_v3, %v2799_v25  ;;  %v2801_v50 = vpop.f32.mrf.mxu1 }
 0x5da   :  { %v2914_v15 = vpop.f32.mrf.mxu0 }
 0x5db   :  { %7674 = vst [vmem:[#allocation9_spill] sm:$0xff] %v6763_v5  ;;  %v2979_v25 = vmul.f32 %v6763_v5, %v7676_v30  ;;  %v6779_v3 = vadd.f32 %v2914_v15, %v2801_v50  ;;  %v2805_v31 = vpop.f32.mrf.mxu1 }
 0x5dc   :  { %v2918_v23 = vpop.f32.mrf.mxu0 }
 0x5dd   :  { %7677 = vst [vmem:[#allocation36_spill] sm:$0xff] %v6779_v3  ;;  %v2980_v50 = vmul.f32 %v6779_v3, %v7678_v32  ;;  %v6795_v61 = vadd.f32 %v2918_v23, %v2805_v31  ;;  %v2807_v42 = vpop.f32.mrf.mxu1  ;;  %v3026_v4 = vadd.f32 %v3025_v6, %v2979_v25  ;;  %v3039_v23 = vadd.f32 %v3038_v28, %v2990_v36 }
 0x5de   :  { %v2920_v16 = vpop.f32.mrf.mxu0  ;;  %v3051_v28 = vadd.f32 %v3000_v2, %v2999_v18  ;;  %v6843_v36 = vadd.f32 %v6645_v55, %v6661_v0  ;;  %v6857_v55 = vadd.f32 %v6693_v56, %v6685_v45  ;;  %v7686_v56 = vld [vmem:[#allocation6_spill] sm:$0xff] }
 0x5df   :  { %7679 = vst [vmem:[#allocation42_spill] sm:$0xff] %v6795_v61  ;;  %v2985_v33 = vmul.f32 %v6795_v61, %v7676_v30  ;;  %v6811_v31 = vadd.f32 %v2920_v16, %v2807_v42  ;;  %v2811_v20 = vpop.f32.mrf.mxu1  ;;  %v3027_v52 = vadd.f32 %v3026_v4, %v2980_v50  ;;  %v3045_v50 = vadd.f32 %v3044_v38, %v2995_v47 }
 0x5e0   :  { %v2924_v22 = vpop.f32.mrf.mxu0  ;;  %v2996_v42 = vmul.f32 %v6803_v57, %v7672_v27  ;;  %v3001_v4 = vmul.f32 %v6807_v62, %v7665_v9  ;;  %v3058_v38 = vadd.f32 %v3006_v8, %v3005_v54  ;;  %v6847_v47 = vadd.f32 %v6647_v59, %v6663_v1 }
 0x5e1   :  { %7681 = vst [vmem:[#allocation31_spill] sm:$0xff] %v6811_v31  ;;  %v2986_v6 = vmul.f32 %v6811_v31, %v7678_v32  ;;  %v6827_v15 = vadd.f32 %v2924_v22, %v2811_v20  ;;  %3028 = vadd.xlane.f32.xlu1 %v3027_v52  ;;  %v2813_v60 = vpop.f32.mrf.mxu1  ;;  %v3033_v25 = vadd.f32 %v3032_v44, %v2985_v33 }
 0x5e2   :  { %v2926_v16 = vpop.f32.mrf.mxu0  ;;  %v3046_v54 = vadd.f32 %v3045_v50, %v2996_v42  ;;  %v3052_v8 = vadd.f32 %v3051_v28, %v3001_v4  ;;  %v6861_v59 = vadd.f32 %v6697_v63, %v6691_v37  ;;  %v3002_v1 = vmul.f32 %v6835_v53, %v7672_v27  ;;  %v7687_v37 = vld [vmem:[#allocation13_spill] sm:$0xff]  ;;  %v7688_v42 = vld [vmem:[#allocation18_spill] sm:$0xff]  ;;  %v7689_v4 = vld [vmem:[#allocation35_spill] sm:$0xff] }
 0x5e3   :  { %7682 = vst [vmem:[#allocation21_spill] sm:$0xff] %v6827_v15  ;;  %v2991_v39 = vmul.f32 %v6827_v15, %v7676_v30  ;;  %v6839_v20 = vadd.f32 %v2926_v16, %v2813_v60  ;;  %v2817_v52 = vpop.f32.mrf.mxu1  ;;  %v3034_v44 = vadd.f32 %v3033_v25, %v2986_v6  ;;  %v3011_v50 = vmul.f32 %v6843_v36, %v7663_v24 }
 0x5e4   :  { %v2930_v33 = vpop.f32.mrf.mxu0  ;;  %v3012_v45 = vmul.f32 %v6847_v47, %v7660_v34  ;;  %v6875_v63 = vadd.f32 %v7687_v37, %v7686_v56  ;;  %v6879_v16 = vadd.f32 %v7689_v4, %v7688_v42 }
 0x5e5   :  { %7684 = vst [vmem:[#allocation52_spill] sm:$0xff] %v6839_v20  ;;  %v2992_v58 = vmul.f32 %v6839_v20, %v7678_v32  ;;  %v6853_v22 = vadd.f32 %v2930_v33, %v2817_v52  ;;  %3035 = vadd.xlane.f32.xlu0 %v3034_v44  ;;  %v2819_v18 = vpop.f32.mrf.mxu1  ;;  %v3040_v2 = vadd.f32 %v3039_v23, %v2991_v39 }
 0x5e6   :  { %v2932_v0 = vpop.f32.mrf.mxu0  ;;  %7690 = vst [vmem:[#allocation32_spill] sm:$0xff] %v6879_v16  ;;  %v3059_v52 = vadd.f32 %v3058_v38, %v3007_v26  ;;  %v6895_v38 = vadd.f32 %v6724_v11, %v6713_v14  ;;  %v3065_v42 = vadd.f32 %v3012_v45, %v3011_v50  ;;  %v3018_v4 = vmul.f32 %v6879_v16, %v7660_v34 }
 0x5e7   :  { %v2997_v6 = vmul.f32 %v6853_v22, %v7676_v30  ;;  %v6867_v60 = vadd.f32 %v2932_v0, %v2819_v18  ;;  %v2823_v25 = vpop.f32.mrf.mxu1  ;;  %v3041_v23 = vadd.f32 %v3040_v2, %v2992_v58  ;;  %v3008_v18 = vmul.f32 %v6857_v55, %v7672_v27  ;;  %v7692_v0 = vld [vmem:[#allocation11_spill] sm:$0xff] }
 0x5e8   :  { %v2936_v39 = vpop.f32.mrf.mxu0  ;;  %v3013_v2 = vmul.f32 %v6861_v59, %v7665_v9  ;;  %v6891_v56 = vadd.f32 %v6705_v51, %v7692_v0  ;;  %7693 = vst [vmem:[#allocation47_spill] sm:$0xff] %v6895_v38  ;;  %v3017_v51 = vmul.f32 %v6875_v63, %v7663_v24  ;;  %v3019_v45 = vmul.f32 %v6895_v38, %v7665_v9 }
 0x5e9   :  { %7685 = vst [vmem:[#allocation7_spill] sm:$0xff] %v6867_v60  ;;  %v2998_v44 = vmul.f32 %v6867_v60, %v7678_v32  ;;  %v6883_v28 = vadd.f32 %v2936_v39, %v2823_v25  ;;  %3042 = vadd.xlane.f32.xlu0 %v3041_v23  ;;  %v2825_v33 = vpop.f32.mrf.mxu1  ;;  %v3047_v58 = vadd.f32 %v3046_v54, %v2997_v6 }
 0x5ea   :  { %v2938_v26 = vpop.f32.mrf.mxu0  ;;  %v3053_v25 = vadd.f32 %v3052_v8, %v3002_v1  ;;  %v3066_v0 = vadd.f32 %v3065_v42, %v3013_v2  ;;  %v3014_v50 = vmul.f32 %v6891_v56, %v7672_v27 }
 0x5eb   :  { %7691 = vst [vmem:[#allocation10_spill] sm:$0xff] %v6883_v28  ;;  %v3003_v23 = vmul.f32 %v6883_v28, %v7676_v30  ;;  %v6899_v54 = vadd.f32 %v2938_v26, %v2825_v33  ;;  %v2829_v6 = vpop.f32.mrf.mxu1  ;;  %v3048_v37 = vadd.f32 %v3047_v58, %v2998_v44  ;;  %v3060_v33 = vadd.f32 %v3059_v52, %v3008_v18 }
 0x5ec   :  { %v2942_v39 = vpop.f32.mrf.mxu0  ;;  %v6915_v58 = vadd.f32 %v6749_v40, %v6743_v35  ;;  %v3072_v52 = vadd.f32 %v3018_v4, %v3017_v51  ;;  %v3067_v38 = vadd.f32 %v3066_v0, %v3014_v50 }
 0x5ed   :  { %7694 = vst [vmem:[#allocation41_spill] sm:$0xff] %v6899_v54  ;;  %v3004_v14 = vmul.f32 %v6899_v54, %v7678_v32  ;;  %v6907_v11 = vadd.f32 %v2942_v39, %v2829_v6  ;;  %3049 = vadd.xlane.f32.xlu1 %v3048_v37  ;;  %v2831_v8 = vpop.f32.mrf.mxu1  ;;  %v3054_v1 = vadd.f32 %v3053_v25, %v3003_v23 }
 0x5ee   :  { %v2944_v44 = vpop.f32.mrf.mxu0  ;;  %v3073_v35 = vadd.f32 %v3072_v52, %v3019_v45  ;;  %v3020_v16 = vmul.f32 %v6915_v58, %v7672_v27 }
 0x5ef   :  { %v3009_v26 = vmul.f32 %v6907_v11, %v7676_v30  ;;  %v6919_v6 = vadd.f32 %v2944_v44, %v2831_v8  ;;  %v2835_v37 = vpop.f32.mrf.mxu1  ;;  %v3055_v25 = vadd.f32 %v3054_v1, %v3004_v14 }
 0x5f0   :  { %v2948_v18 = vpop.f32.mrf.mxu0  ;;  %v3074_v45 = vadd.f32 %v3073_v35, %v3020_v16  ;;  %v7697_v16 = vld [vmem:[#allocation44_spill] sm:$0xff] }
 0x5f1   :  { %v3010_v2 = vmul.f32 %v6919_v6, %v7678_v32  ;;  %v6923_v23 = vadd.f32 %v2948_v18, %v2835_v37  ;;  %3056 = vadd.xlane.f32.xlu0 %v3055_v25  ;;  %v2837_v42 = vpop.f32.mrf.mxu1  ;;  %v3061_v39 = vadd.f32 %v3060_v33, %v3009_v26 }
 0x5f2   :  { %v2950_v40 = vpop.f32.mrf.mxu0 }
 0x5f3   :  { %7695 = vst [vmem:[#allocation15_spill] sm:$0xff] %v6923_v23  ;;  %v3015_v8 = vmul.f32 %v6923_v23, %v7676_v30  ;;  %v6929_v14 = vadd.f32 %v2950_v40, %v2837_v42  ;;  %v2841_v4 = vpop.f32.mrf.mxu1  ;;  %v3062_v51 = vadd.f32 %v3061_v39, %v3010_v2 }
 0x5f4   :  { %v2954_v1 = vpop.f32.mrf.mxu0 }
 0x5f5   :  { %7696 = vst [vmem:[#allocation46_spill] sm:$0xff] %v6929_v14  ;;  %v3016_v44 = vmul.f32 %v6929_v14, %v7678_v32  ;;  %v6933_v37 = vadd.f32 %v2954_v1, %v2841_v4  ;;  %3063 = vadd.xlane.f32.xlu1 %v3062_v51  ;;  %v2843_v33 = vpop.f32.mrf.mxu1  ;;  %v3068_v0 = vadd.f32 %v3067_v38, %v3015_v8 }
 0x5f6   :  { %v2956_v50 = vpop.f32.mrf.mxu0 }
 0x5f7   :  { %v3021_v26 = vmul.f32 %v6933_v37, %v7676_v30  ;;  %v6937_v25 = vadd.f32 %v2956_v50, %v2843_v33  ;;  %v3069_v52 = vadd.f32 %v3068_v0, %v3016_v44 }
 0x5f9   :  { %v3022_v18 = vmul.f32 %v6937_v25, %v7678_v32  ;;  %3070 = vadd.xlane.f32.xlu0 %v3069_v52  ;;  %v3075_v2 = vadd.f32 %v3074_v45, %v3021_v26 }
 0x5fb   :  { %v3076_v42 = vadd.f32 %v3075_v2, %v3022_v18 }
 0x5fd   :  { %3077 = vadd.xlane.f32.xlu1 %v3076_v42 }
 0x66a   :  { %v3029_v39 = vpop.xlane.xlu1 %3028 }
 0x66b   :  { %v6941_v40 = vmul.f32 0.001953125, %v3029_v39 }
 0x66d   :  { %v3087_v38 = vsub.f32 %v6701_v17, %v6941_v40  ;;  %v3088_v35 = vsub.f32 %v7697_v16, %v6941_v40  ;;  %v3089_v8 = vsub.f32 %v6703_v46, %v6941_v40  ;;  %v3090_v4 = vsub.f32 %v6722_v19, %v6941_v40  ;;  %v7699_v46 = vld [vmem:[#allocation5_spill] sm:$0xff] }
 0x66e   :  { %v3036_v51 = vpop.xlane.xlu0 %3035  ;;  %v3091_v1 = vsub.f32 %v6763_v5, %v6941_v40  ;;  %v3092_v44 = vsub.f32 %v6779_v3, %v6941_v40 }
 0x66f   :  { %v6955_v33 = vmul.f32 0.001953125, %v3036_v51  ;;  %v3135_v0 = vmul.f32 %v3087_v38, %v7663_v24  ;;  %v3136_v50 = vmul.f32 %v3088_v35, %v7660_v34  ;;  %v3137_v45 = vmul.f32 %v3089_v8, %v7665_v9  ;;  %v7698_v38 = vld [vmem:[#allocation19_spill] sm:$0xff] }
 0x670   :  { %v3138_v26 = vmul.f32 %v3090_v4, %v7672_v27  ;;  %v3139_v52 = vmul.f32 %v3091_v1, %v7676_v30  ;;  %v3140_v3 = vmul.f32 %v3092_v44, %v7678_v32 }
 0x671   :  { %v3183_v18 = vmul.f32 %v3135_v0, %v3135_v0  ;;  %v3184_v2 = vmul.f32 %v3136_v50, %v3136_v50  ;;  %v3093_v42 = vsub.f32 %v6718_v29, %v6955_v33  ;;  %v3185_v51 = vmul.f32 %v3137_v45, %v3137_v45 }
 0x672   :  { %v3043_v39 = vpop.xlane.xlu0 %3042  ;;  %v3186_v5 = vmul.f32 %v3138_v26, %v3138_v26  ;;  %v3094_v19 = vsub.f32 %v7698_v38, %v6955_v33  ;;  %v3095_v4 = vsub.f32 %v6729_v43, %v6955_v33  ;;  %v3096_v1 = vsub.f32 %v6755_v21, %v6955_v33 }
 0x673   :  { %v6967_v35 = vmul.f32 0.001953125, %v3043_v39  ;;  %v3231_v8 = vadd.f32 %v3184_v2, %v3183_v18  ;;  %v3097_v0 = vsub.f32 %v6795_v61, %v6955_v33  ;;  %v3098_v44 = vsub.f32 %v6811_v31, %v6955_v33 }
 0x674   :  { %v3141_v50 = vmul.f32 %v3093_v42, %v7663_v24  ;;  %v3142_v45 = vmul.f32 %v3094_v19, %v7660_v34  ;;  %v3187_v26 = vmul.f32 %v3139_v52, %v3139_v52  ;;  %v3143_v18 = vmul.f32 %v3095_v4, %v7665_v9  ;;  %v7700_v4 = vld [vmem:[#allocation33_spill] sm:$0xff] }
 0x675   :  { %v3232_v39 = vadd.f32 %v3231_v8, %v3185_v51  ;;  %v3144_v2 = vmul.f32 %v3096_v1, %v7672_v27  ;;  %v3188_v38 = vmul.f32 %v3140_v3, %v3140_v3  ;;  %v3099_v61 = vsub.f32 %v7699_v46, %v6967_v35  ;;  %v7701_v3 = vld [vmem:[#allocation43_spill] sm:$0xff] }
 0x676   :  { %v3050_v43 = vpop.xlane.xlu1 %3049  ;;  %v3189_v29 = vmul.f32 %v3141_v50, %v3141_v50  ;;  %v3190_v21 = vmul.f32 %v3142_v45, %v3142_v45  ;;  %v3145_v42 = vmul.f32 %v3097_v0, %v7676_v30  ;;  %v3146_v19 = vmul.f32 %v3098_v44, %v7678_v32 }
 0x677   :  { %v6983_v16 = vmul.f32 0.001953125, %v3050_v43  ;;  %v3233_v31 = vadd.f32 %v3232_v39, %v3186_v5  ;;  %v3191_v52 = vmul.f32 %v3143_v18, %v3143_v18  ;;  %v3192_v51 = vmul.f32 %v3144_v2, %v3144_v2 }
 0x678   :  { %v3238_v8 = vadd.f32 %v3190_v21, %v3189_v29  ;;  %v3100_v1 = vsub.f32 %v7700_v4, %v6967_v35  ;;  %v3101_v50 = vsub.f32 %v7701_v3, %v6967_v35  ;;  %v3102_v45 = vsub.f32 %v6770_v48, %v6967_v35 }
 0x679   :  { %v3234_v17 = vadd.f32 %v3233_v31, %v3187_v26  ;;  %v3103_v5 = vsub.f32 %v6827_v15, %v6967_v35  ;;  %v3104_v44 = vsub.f32 %v6839_v20, %v6967_v35  ;;  %v3147_v29 = vmul.f32 %v3099_v61, %v7663_v24  ;;  %v7702_v61 = vld [vmem:[#allocation8_spill] sm:$0xff] }
 0x67a   :  { %v3057_v43 = vpop.xlane.xlu0 %3056  ;;  %v3239_v0 = vadd.f32 %v3238_v8, %v3191_v52  ;;  %v3148_v21 = vmul.f32 %v3100_v1, %v7660_v34  ;;  %v3193_v31 = vmul.f32 %v3145_v42, %v3145_v42  ;;  %v3149_v26 = vmul.f32 %v3101_v50, %v7665_v9  ;;  %v7703_v50 = vld [vmem:[#allocation14_spill] sm:$0xff] }
 0x67b   :  { %v3235_v39 = vadd.f32 %v3234_v17, %v3188_v38  ;;  %v3150_v18 = vmul.f32 %v3102_v45, %v7672_v27  ;;  %v3194_v2 = vmul.f32 %v3146_v19, %v3146_v19  ;;  %v3151_v3 = vmul.f32 %v3103_v5, %v7676_v30 }
 0x67c   :  { %v3240_v48 = vadd.f32 %v3239_v0, %v3192_v51  ;;  %v3195_v15 = vmul.f32 %v3147_v29, %v3147_v29  ;;  %v7002_v4 = vmul.f32 0.001953125, %v3057_v43  ;;  %v3152_v52 = vmul.f32 %v3104_v44, %v7678_v32 }
 0x67d   :  { %3236 = vadd.xlane.f32.xlu0 %v3235_v39  ;;  %v3196_v8 = vmul.f32 %v3148_v21, %v3148_v21  ;;  %v3105_v1 = vsub.f32 %v7702_v61, %v6983_v16  ;;  %v3197_v38 = vmul.f32 %v3149_v26, %v3149_v26  ;;  %v3198_v42 = vmul.f32 %v3150_v18, %v3150_v18 }
 0x67e   :  { %v3241_v17 = vadd.f32 %v3240_v48, %v3193_v31  ;;  %v3106_v45 = vsub.f32 %v7703_v50, %v6983_v16  ;;  %v3064_v19 = vpop.xlane.xlu1 %3063  ;;  %v3199_v51 = vmul.f32 %v3151_v3, %v3151_v3  ;;  %v3107_v5 = vsub.f32 %v6773_v12, %v6983_v16 }
 0x67f   :  { %v3245_v0 = vadd.f32 %v3196_v8, %v3195_v15  ;;  %v3108_v43 = vsub.f32 %v6803_v57, %v6983_v16  ;;  %v3109_v29 = vsub.f32 %v6853_v22, %v6983_v16  ;;  %v3110_v48 = vsub.f32 %v6867_v60, %v6983_v16 }
 0x680   :  { %v3242_v44 = vadd.f32 %v3241_v17, %v3194_v2  ;;  %v3153_v21 = vmul.f32 %v3105_v1, %v7663_v24  ;;  %v3154_v31 = vmul.f32 %v3106_v45, %v7660_v34  ;;  %v3155_v15 = vmul.f32 %v3107_v5, %v7665_v9 }
 0x681   :  { %v3246_v39 = vadd.f32 %v3245_v0, %v3197_v38  ;;  %v3156_v3 = vmul.f32 %v3108_v43, %v7672_v27  ;;  %v7021_v26 = vmul.f32 0.001953125, %v3064_v19  ;;  %v3200_v2 = vmul.f32 %v3152_v52, %v3152_v52 }
 0x682   :  { %3243 = vadd.xlane.f32.xlu1 %v3242_v44  ;;  %v3071_v18 = vpop.xlane.xlu0 %3070  ;;  %v3201_v8 = vmul.f32 %v3153_v21, %v3153_v21  ;;  %v3111_v17 = vsub.f32 %v6767_v41, %v7002_v4  ;;  %v3157_v60 = vmul.f32 %v3109_v29, %v7676_v30  ;;  %v3158_v1 = vmul.f32 %v3110_v48, %v7678_v32 }
 0x683   :  { %v3247_v20 = vadd.f32 %v3246_v39, %v3198_v42  ;;  %v3202_v38 = vmul.f32 %v3154_v31, %v3154_v31  ;;  %v7027_v45 = vmul.f32 0.001953125, %v3071_v18  ;;  %v3203_v0 = vmul.f32 %v3155_v15, %v3155_v15 }
 0x684   :  { %v3204_v5 = vmul.f32 %v3156_v3, %v3156_v3  ;;  %v3112_v19 = vsub.f32 %v6783_v49, %v7002_v4  ;;  %v3113_v52 = vsub.f32 %v6807_v62, %v7002_v4  ;;  %v3114_v42 = vsub.f32 %v6835_v53, %v7002_v4 }
 0x685   :  { %v3248_v43 = vadd.f32 %v3247_v20, %v3199_v51  ;;  %v3252_v44 = vadd.f32 %v3202_v38, %v3201_v8  ;;  %v3115_v29 = vsub.f32 %v6883_v28, %v7002_v4  ;;  %v3116_v48 = vsub.f32 %v6899_v54, %v7002_v4 }
 0x686   :  { %v3078_v21 = vpop.xlane.xlu1 %3077  ;;  %v3159_v39 = vmul.f32 %v3111_v17, %v7663_v24  ;;  %v3160_v31 = vmul.f32 %v3112_v19, %v7660_v34  ;;  %v3205_v20 = vmul.f32 %v3157_v60, %v3157_v60  ;;  %v3161_v3 = vmul.f32 %v3113_v52, %v7665_v9 }
 0x687   :  { %v3249_v15 = vadd.f32 %v3248_v43, %v3200_v2  ;;  %v3253_v51 = vadd.f32 %v3252_v44, %v3203_v0  ;;  %v7042_v18 = vmul.f32 0.001953125, %v3078_v21  ;;  %v3206_v8 = vmul.f32 %v3158_v1, %v3158_v1 }
 0x688   :  { %v3162_v38 = vmul.f32 %v3114_v42, %v7672_v27  ;;  %v3207_v53 = vmul.f32 %v3159_v39, %v3159_v39  ;;  %v3163_v62 = vmul.f32 %v3115_v29, %v7676_v30  ;;  %v3208_v54 = vmul.f32 %v3160_v31, %v3160_v31 }
 0x689   :  { %3250 = vadd.xlane.f32.xlu0 %v3249_v15  ;;  %v3254_v28 = vadd.f32 %v3253_v51, %v3204_v5  ;;  %v3117_v17 = vsub.f32 %v6787_v13, %v7021_v26  ;;  %v3164_v2 = vmul.f32 %v3116_v48, %v7678_v32  ;;  %v3209_v60 = vmul.f32 %v3161_v3, %v3161_v3 }
 0x68a   :  { %v3210_v0 = vmul.f32 %v3162_v38, %v3162_v38  ;;  %v3118_v19 = vsub.f32 %v6791_v10, %v7021_v26  ;;  %v3259_v1 = vadd.f32 %v3208_v54, %v3207_v53  ;;  %v3119_v44 = vsub.f32 %v6823_v7, %v7021_v26 }
 0x68b   :  { %v3255_v43 = vadd.f32 %v3254_v28, %v3205_v20  ;;  %v3120_v5 = vsub.f32 %v6857_v55, %v7021_v26  ;;  %v3121_v52 = vsub.f32 %v6907_v11, %v7021_v26  ;;  %v3122_v42 = vsub.f32 %v6919_v6, %v7021_v26 }
 0x68c   :  { %v3165_v21 = vmul.f32 %v3117_v17, %v7663_v24  ;;  %v3166_v29 = vmul.f32 %v3118_v19, %v7660_v34  ;;  %v3260_v39 = vadd.f32 %v3259_v1, %v3209_v60  ;;  %v3167_v53 = vmul.f32 %v3119_v44, %v7665_v9 }
 0x68d   :  { %v3256_v48 = vadd.f32 %v3255_v43, %v3206_v8  ;;  %v3168_v28 = vmul.f32 %v3120_v5, %v7672_v27  ;;  %v3211_v54 = vmul.f32 %v3163_v62, %v3163_v62  ;;  %v3212_v31 = vmul.f32 %v3164_v2, %v3164_v2 }
 0x68e   :  { %v3213_v15 = vmul.f32 %v3165_v21, %v3165_v21  ;;  %v3214_v20 = vmul.f32 %v3166_v29, %v3166_v29  ;;  %v3261_v51 = vadd.f32 %v3260_v39, %v3210_v0  ;;  %v3169_v3 = vmul.f32 %v3121_v52, %v7676_v30 }
 0x68f   :  { %3257 = vadd.xlane.f32.xlu1 %v3256_v48  ;;  %v3170_v38 = vmul.f32 %v3122_v42, %v7678_v32  ;;  %v3123_v17 = vsub.f32 %v6843_v36, %v7027_v45  ;;  %v3215_v19 = vmul.f32 %v3167_v53, %v3167_v53  ;;  %v3216_v8 = vmul.f32 %v3168_v28, %v3168_v28 }
 0x690   :  { %v3266_v60 = vadd.f32 %v3214_v20, %v3213_v15  ;;  %v3124_v43 = vsub.f32 %v6847_v47, %v7027_v45  ;;  %v3262_v1 = vadd.f32 %v3261_v51, %v3211_v54  ;;  %v3125_v62 = vsub.f32 %v6861_v59, %v7027_v45 }
 0x691   :  { %v3126_v2 = vsub.f32 %v6891_v56, %v7027_v45  ;;  %v3127_v0 = vsub.f32 %v6923_v23, %v7027_v45  ;;  %v3128_v5 = vsub.f32 %v6929_v14, %v7027_v45  ;;  %v3171_v52 = vmul.f32 %v3123_v17, %v7663_v24 }
 0x692   :  { %v3267_v44 = vadd.f32 %v3266_v60, %v3215_v19  ;;  %v3172_v42 = vmul.f32 %v3124_v43, %v7660_v34  ;;  %v3263_v21 = vadd.f32 %v3262_v1, %v3212_v31  ;;  %v3173_v29 = vmul.f32 %v3125_v62, %v7665_v9  ;;  %v7704_v43 = vld [vmem:[#allocation32_spill] sm:$0xff] }
 0x693   :  { %v3174_v48 = vmul.f32 %v3126_v2, %v7672_v27  ;;  %v3217_v39 = vmul.f32 %v3169_v3, %v3169_v3  ;;  %v3219_v28 = vmul.f32 %v3171_v52, %v3171_v52  ;;  %v3218_v15 = vmul.f32 %v3170_v38, %v3170_v38  ;;  %v7705_v3 = vld [vmem:[#allocation47_spill] sm:$0xff] }
 0x694   :  { %v3268_v53 = vadd.f32 %v3267_v44, %v3216_v8  ;;  %v3220_v54 = vmul.f32 %v3172_v42, %v3172_v42  ;;  %3264 = vadd.xlane.f32.xlu0 %v3263_v21  ;;  %v3175_v20 = vmul.f32 %v3127_v0, %v7676_v30  ;;  %v3176_v51 = vmul.f32 %v3128_v5, %v7678_v32 }
 0x695   :  { %v3129_v17 = vsub.f32 %v6875_v63, %v7042_v18  ;;  %v3221_v60 = vmul.f32 %v3173_v29, %v3173_v29  ;;  %v3130_v1 = vsub.f32 %v7704_v43, %v7042_v18  ;;  %v3222_v62 = vmul.f32 %v3174_v48, %v3174_v48 }
 0x696   :  { %v3269_v19 = vadd.f32 %v3268_v53, %v3217_v39  ;;  %v3273_v31 = vadd.f32 %v3220_v54, %v3219_v28  ;;  %v3131_v8 = vsub.f32 %v7705_v3, %v7042_v18  ;;  %v3132_v38 = vsub.f32 %v6915_v58, %v7042_v18 }
 0x697   :  { %v3133_v2 = vsub.f32 %v6933_v37, %v7042_v18  ;;  %v3177_v5 = vmul.f32 %v3129_v17, %v7663_v24  ;;  %v3178_v52 = vmul.f32 %v3130_v1, %v7660_v34  ;;  %v3223_v42 = vmul.f32 %v3175_v20, %v3175_v20 }
 0x698   :  { %v3270_v0 = vadd.f32 %v3269_v19, %v3218_v15  ;;  %v3274_v44 = vadd.f32 %v3273_v31, %v3221_v60  ;;  %v3134_v21 = vsub.f32 %v6937_v25, %v7042_v18  ;;  %v3179_v29 = vmul.f32 %v3131_v8, %v7665_v9 }
 0x699   :  { %v3180_v39 = vmul.f32 %v3132_v38, %v7672_v27  ;;  %v3225_v53 = vmul.f32 %v3177_v5, %v3177_v5  ;;  %v3226_v28 = vmul.f32 %v3178_v52, %v3178_v52  ;;  %v3224_v54 = vmul.f32 %v3176_v51, %v3176_v51 }
 0x69a   :  { %3271 = vadd.xlane.f32.xlu1 %v3270_v0  ;;  %v3275_v48 = vadd.f32 %v3274_v44, %v3222_v62  ;;  %v3181_v15 = vmul.f32 %v3133_v2, %v7676_v30  ;;  %v3227_v19 = vmul.f32 %v3179_v29, %v3179_v29  ;;  %v3182_v20 = vmul.f32 %v3134_v21, %v7678_v32 }
 0x69b   :  { %v3280_v17 = vadd.f32 %v3226_v28, %v3225_v53  ;;  %v3228_v31 = vmul.f32 %v3180_v39, %v3180_v39 }
 0x69c   :  { %v3276_v14 = vadd.f32 %v3275_v48, %v3223_v42  ;;  %v3229_v23 = vmul.f32 %v3181_v15, %v3181_v15  ;;  %v3230_v0 = vmul.f32 %v3182_v20, %v3182_v20  ;;  %v2959_v48 = vld [vmem:[%s7264_s8] sm:$0xff]  ;;  %v2960_v15 = vld [vmem:[%s7264_s8 + $0x8] sm:$0xff] }
 0x69d   :  { %v3281_v1 = vadd.f32 %v3280_v17, %v3227_v19 }
 0x69e   :  { %v3277_v60 = vadd.f32 %v3276_v14, %v3224_v54 }
 0x69f   :  { %v3282_v8 = vadd.f32 %v3281_v1, %v3228_v31  ;;  %v2967_v1 = vld [vmem:[%s7265_s9] sm:$0xff] }
 0x6a0   :  { %3278 = vadd.xlane.f32.xlu0 %v3277_v60 }
 0x6a1   :  { %v3283_v62 = vadd.f32 %v3282_v8, %v3229_v23  ;;  %v2968_v8 = vld [vmem:[%s7265_s9 + $0x8] sm:$0xff] }
 0x6a3   :  { %v3284_v44 = vadd.f32 %v3283_v62, %v3230_v0 }
 0x6a5   :  { %3285 = vadd.xlane.f32.xlu1 %v3284_v44 }
 0x706   :  { %v3237_v38 = vpop.xlane.xlu0 %3236 }
 0x707   :  { %v3287_v5 = vmul.f32 0.001953125, %v3237_v38 }
 0x709   :  { %v3295_v51 = vadd.f32 1e-05, %v3287_v5  ;;  %v2961_v5 = vld [vmem:[%s7264_s8 + $0x10] sm:$0xff] }
 0x70b   :  { %3754 = vrsqrt.f32 %v3295_v51  ;;  %v3244_v52 = vpop.xlane.xlu1 %3243 }
 0x70c   :  { %v3288_v2 = vmul.f32 0.001953125, %v3244_v52 }
 0x70e   :  { %v3296_v42 = vadd.f32 1e-05, %v3288_v2 }
 0x710   :  { %3756 = vrsqrt.f32 %v3296_v42 }
 0x712   :  { %v3251_v14 = vpop.xlane.xlu0 %3250 }
 0x713   :  { %v3289_v29 = vmul.f32 0.001953125, %v3251_v14  ;;  %v2969_v14 = vld [vmem:[%s7265_s9 + $0x10] sm:$0xff] }
 0x715   :  { %v3297_v21 = vadd.f32 1e-05, %v3289_v29  ;;  %v2962_v29 = vld [vmem:[%s7264_s8 + $0x18] sm:$0xff] }
 0x717   :  { %3758 = vrsqrt.f32 %v3297_v21 }
 0x718   :  { %v3755_v39 = vpop.eup %3754  ;;  %v3258_v23 = vpop.xlane.xlu1 %3257 }
 0x719   :  { %v3290_v53 = vmul.f32 0.001953125, %v3258_v23  ;;  %v3311_v28 = vmul.f32 %v3755_v39, %v2959_v48 }
 0x71b   :  { %v3298_v54 = vadd.f32 1e-05, %v3290_v53  ;;  %3337 = vperm.xlu0 %3744, %v3311_v28   ;;  %v3319_v20 = vmul.f32 %v3311_v28, %v6941_v40 }
 0x71d   :  { %v3757_v19 = vpop.eup %3756  ;;  %3760 = vrsqrt.f32 %v3298_v54  ;;  %v3265_v17 = vpop.xlane.xlu0 %3264  ;;  %v3327_v44 = vsub.f32 %v2967_v1, %v3319_v20  ;;  %v2970_v54 = vld [vmem:[%s7265_s9 + $0x18] sm:$0xff] }
 0x71e   :  { %v3312_v60 = vmul.f32 %v3757_v19, %v2960_v15  ;;  %v3291_v31 = vmul.f32 0.001953125, %v3265_v17  ;;  %v2963_v15 = vld [vmem:[%s7264_s8 + $0x20] sm:$0xff] }
 0x720   :  { %3342 = vperm.xlu1 %3745, %v3312_v60   ;;  %v3320_v0 = vmul.f32 %v3312_v60, %v6955_v33  ;;  %v3299_v62 = vadd.f32 1e-05, %v3291_v31 }
 0x722   :  { %v3328_v38 = vsub.f32 %v2968_v8, %v3320_v0  ;;  %3762 = vrsqrt.f32 %v3299_v62  ;;  %v2971_v8 = vld [vmem:[%s7265_s9 + $0x20] sm:$0xff] }
 0x723   :  { %v3272_v40 = vpop.xlane.xlu1 %3271 }
 0x724   :  { %v3759_v51 = vpop.eup %3758  ;;  %v3292_v52 = vmul.f32 0.001953125, %v3272_v40  ;;  %3425 = vperm.xlu1 %3745, %v3327_v44   ;;  %3430 = vperm.xlu0 %3744, %v3328_v38  }
 0x725   :  { %v3313_v2 = vmul.f32 %v3759_v51, %v2961_v5  ;;  %v2972_v5 = vld [vmem:[%s7265_s9 + $0x28] sm:$0xff]  ;;  %v2965_v51 = vld [vmem:[%s7264_s8 + $0x30] sm:$0xff] }
 0x726   :  { %v3300_v42 = vadd.f32 1e-05, %v3292_v52 }
 0x727   :  { %v3321_v33 = vmul.f32 %v3313_v2, %v6967_v35 }
 0x728   :  { %3764 = vrsqrt.f32 %v3300_v42  ;;  %3347 = vperm.xlu1 %3745, %v3313_v2   ;;  %v2973_v42 = vld [vmem:[%s7265_s9 + $0x30] sm:$0xff] }
 0x729   :  { %v3279_v21 = vpop.xlane.xlu0 %3278  ;;  %v3329_v23 = vsub.f32 %v2969_v14, %v3321_v33  ;;  %v2966_v33 = vld [vmem:[%s7264_s8 + $0x38] sm:$0xff] }
 0x72a   :  { %v3761_v48 = vpop.eup %3760  ;;  %v3293_v39 = vmul.f32 0.001953125, %v3279_v21 }
 0x72b   :  { %v3314_v53 = vmul.f32 %v3761_v48, %v2962_v29  ;;  %v2974_v48 = vld [vmem:[%s7265_s9 + $0x38] sm:$0xff] }
 0x72c   :  { %v3301_v28 = vadd.f32 1e-05, %v3293_v39  ;;  %3435 = vperm.xlu1 %3745, %v3329_v23  }
 0x72d   :  { %3352 = vperm.xlu0 %3744, %v3314_v53   ;;  %v3322_v35 = vmul.f32 %v3314_v53, %v6983_v16  ;;  %v2964_v16 = vld [vmem:[%s7264_s8 + $0x28] sm:$0xff]  ;;  %s3817_s8 = smov [#allocation2]  }
 0x72e   :  { %3766 = vrsqrt.f32 %v3301_v28  ;;  %v3286_v19 = vpop.xlane.xlu1 %3285  ;;  %s3660_s9 = sshll.u32 %s3817_s8, 4  ;;  %s3661_s9 = int_to_ptr.vmem [resolvable:$true] %s3660_s9 }
 0x72f   :  { %v3330_v17 = vsub.f32 %v2970_v54, %v3322_v35  ;;  %v3763_v60 = vpop.eup %3762  ;;  %v3294_v20 = vmul.f32 0.001953125, %v3286_v19  ;;  %v7707_v35 = vld [vmem:[#allocation44_spill] sm:$0xff]  ;;  %v7708_v19 = vld [vmem:[#allocation51_spill] sm:$0xff]  ;;  %s3777_s14 = scalar_lea.vmem %s3661_s9, 6144  ;;  %p3782_p1 = scmp.lt.s32.totalorder %s3661_s9, %s3661_s9 }
 0x730   :  { %v3315_v31 = vmul.f32 %v3763_v60, %v2963_v15  ;;  %v7709_v60 = vld [vmem:[#allocation17_spill] sm:$0xff]  ;;  %p3778_p0 = scmp.ne.s32.totalorder %s3661_s9, %s3777_s14  ;;  %p3783_p2 = scmp.lt.s32.totalorder %s3777_s14, %s3777_s14 }
 0x731   :  { %3440 = vperm.xlu0 %3744, %v3330_v17   ;;  %v3302_v1 = vadd.f32 1e-05, %v3294_v20 }
 0x732   :  { %3357 = vperm.xlu1 %3745, %v3315_v31   ;;  %v3323_v0 = vmul.f32 %v3315_v31, %v7002_v4  ;;  %v7710_v31 = vld [vmem:[#allocation48_spill] sm:$0xff]  ;;  %p3784_p3 = por %p3783_p2, %p3782_p1 }
 0x733   :  { %3768 = vrsqrt.f32 %v3302_v1 }
 0x734   :  { %v3331_v44 = vsub.f32 %v2971_v8, %v3323_v0  ;;  %v7711_v8 = vld [vmem:[#allocation19_spill] sm:$0xff]  ;;  %v7712_v0 = vld [vmem:[#allocation38_spill] sm:$0xff]  ;;  %p3785_p4 = pnand %p3784_p3, %p3778_p0 }
 0x735   :  { %v3765_v62 = vpop.eup %3764 }
 0x736   :  { %v3316_v38 = vmul.f32 %v3765_v62, %v2964_v16  ;;  %3445 = vperm.xlu1 %3745, %v3331_v44   ;;  %v7713_v44 = vld [vmem:[#allocation12_spill] sm:$0xff] }
 0x738   :  { %3362 = vperm.xlu0 %3744, %v3316_v38   ;;  %v3324_v40 = vmul.f32 %v3316_v38, %v7021_v26  ;;  %v7714_v38 = vld [vmem:[#allocation9_spill] sm:$0xff] }
 0x73a   :  { %v3332_v52 = vsub.f32 %v2972_v5, %v3324_v40  ;;  %v7715_v40 = vld [vmem:[#allocation36_spill] sm:$0xff] }
 0x73b   :  { %v3767_v2 = vpop.eup %3766 }
 0x73c   :  { %3450 = vperm.xlu0 %3744, %v3332_v52   ;;  %v3317_v4 = vmul.f32 %v3767_v2, %v2965_v51  ;;  %v7716_v52 = vld [vmem:[#allocation42_spill] sm:$0xff] }
 0x73e   :  { %3367 = vperm.xlu1 %3745, %v3317_v4   ;;  %v3325_v14 = vmul.f32 %v3317_v4, %v7027_v45  ;;  %v7706_v45 = vld [vmem:[#allocation39_spill] sm:$0xff] }
 0x73f   :  { %v7717_v4 = vld [vmem:[#allocation31_spill] sm:$0xff] }
 0x740   :  { %v3333_v26 = vsub.f32 %v2973_v42, %v3325_v14  ;;  %v3769_v29 = vpop.eup %3768 }
 0x741   :  { %v3318_v21 = vmul.f32 %v3769_v29, %v2966_v33 }
 0x742   :  { %3455 = vperm.xlu1 %3745, %v3333_v26  }
 0x743   :  { %3372 = vperm.xlu0 %3744, %v3318_v21   ;;  %v3326_v39 = vmul.f32 %v3318_v21, %v7042_v18 }
 0x745   :  { %v3334_v23 = vsub.f32 %v2974_v48, %v3326_v39 }
 0x747   :  { %3460 = vperm.xlu0 %3744, %v3334_v23  }
 0x796   :  { %v3338_v53 = vpop.permute.xlu0 %3337 }
 0x797   :  { %v3375_v54 = vmul.f32 %v3338_v53, %v7706_v45  ;;  %v3376_v15 = vmul.f32 %v3338_v53, %v7707_v35  ;;  %v3377_v17 = vmul.f32 %v3338_v53, %v7708_v19  ;;  %v3378_v20 = vmul.f32 %v3338_v53, %v7709_v60 }
 0x798   :  { %v3379_v5 = vmul.f32 %v3338_v53, %v7714_v38  ;;  %v3380_v51 = vmul.f32 %v3338_v53, %v7715_v40 }
 0x79b   :  { %v3343_v28 = vpop.permute.xlu1 %3342 }
 0x79c   :  { %v3381_v1 = vmul.f32 %v3343_v28, %v7710_v31  ;;  %v3382_v16 = vmul.f32 %v3343_v28, %v7711_v8  ;;  %v3383_v62 = vmul.f32 %v3343_v28, %v7712_v0  ;;  %v3384_v18 = vmul.f32 %v3343_v28, %v7713_v44 }
 0x79d   :  { %v3385_v2 = vmul.f32 %v3343_v28, %v7716_v52  ;;  %v3386_v42 = vmul.f32 %v3343_v28, %v7717_v4 }
 0x79f   :  { %v3431_v14 = vpop.permute.xlu0 %3430  ;;  %v3426_v33 = vpop.permute.xlu1 %3425 }
 0x7a0   :  { %v3469_v26 = vadd.f32 %v3431_v14, %v3381_v1  ;;  %v3470_v29 = vadd.f32 %v3431_v14, %v3382_v16  ;;  %v3471_v21 = vadd.f32 %v3431_v14, %v3383_v62  ;;  %v3472_v48 = vadd.f32 %v3431_v14, %v3384_v18 }
 0x7a1   :  { %v3473_v39 = vadd.f32 %v3431_v14, %v3385_v2  ;;  %v3474_v23 = vadd.f32 %v3431_v14, %v3386_v42  ;;  %v3463_v45 = vadd.f32 %v3426_v33, %v3375_v54  ;;  %v3464_v35 = vadd.f32 %v3426_v33, %v3376_v15 }
 0x7a2   :  { %v3517_v19 = vmax.f32 %v3469_v26, 0.0  ;;  %v3518_v60 = vmax.f32 %v3470_v29, 0.0  ;;  %v3519_v31 = vmax.f32 %v3471_v21, 0.0  ;;  %v3520_v8 = vmax.f32 %v3472_v48, 0.0 }
 0x7a3   :  { %v3521_v0 = vmax.f32 %v3473_v39, 0.0  ;;  %v3522_v53 = vmax.f32 %v3474_v23, 0.0  ;;  %v3465_v44 = vadd.f32 %v3426_v33, %v3377_v17  ;;  %v3466_v38 = vadd.f32 %v3426_v33, %v3378_v20  ;;  %v3348_v40 = vpop.permute.xlu1 %3347  ;;  %v7718_v23 = vld [vmem:[#allocation33_spill] sm:$0xff] }
 0x7a4   :  { %v3565_v28 = vmul.f32 %v3517_v19, %v7663_v24  ;;  %v3566_v1 = vmul.f32 %v3518_v60, %v7660_v34  ;;  %v3567_v16 = vmul.f32 %v3519_v31, %v7665_v9  ;;  %v3568_v62 = vmul.f32 %v3520_v8, %v7672_v27 }
 0x7a5   :  { %v3569_v54 = vmul.f32 %v3521_v0, %v7676_v30  ;;  %v3570_v15 = vmul.f32 %v3522_v53, %v7678_v32  ;;  %v3467_v18 = vadd.f32 %v3426_v33, %v3379_v5  ;;  %v3468_v52 = vadd.f32 %v3426_v33, %v3380_v51 }
 0x7a6   :  { %3613 = vst [vmem:[#allocation2 + $0x30] sm:$0xff] %v3565_v28  ;;  %3614 = vst [vmem:[#allocation2 + $0x38] sm:$0xff] %v3566_v1  ;;  %v3511_v17 = vmax.f32 %v3463_v45, 0.0  ;;  %v3512_v20 = vmax.f32 %v3464_v35, 0.0  ;;  %v3513_v2 = vmax.f32 %v3465_v44, 0.0  ;;  %v3514_v4 = vmax.f32 %v3466_v38, 0.0 }
 0x7a7   :  { %3615 = vst [vmem:[#allocation2 + $0x40] sm:$0xff] %v3567_v16  ;;  %3616 = vst [vmem:[#allocation2 + $0x48] sm:$0xff] %v3568_v62  ;;  %v3515_v42 = vmax.f32 %v3467_v18, 0.0  ;;  %v3516_v14 = vmax.f32 %v3468_v52, 0.0  ;;  %v3387_v39 = vmul.f32 %v3348_v40, %v7699_v46  ;;  %v3388_v45 = vmul.f32 %v3348_v40, %v7718_v23  ;;  %v3436_v35 = vpop.permute.xlu1 %3435  ;;  %v7719_v46 = vld [vmem:[#allocation7_spill] sm:$0xff]  ;;  %v7721_v28 = vld [vmem:[#allocation49_spill] sm:$0xff] }
 0x7a8   :  { %3617 = vst [vmem:[#allocation2 + $0x50] sm:$0xff] %v3569_v54  ;;  %3618 = vst [vmem:[#allocation2 + $0x58] sm:$0xff] %v3570_v15  ;;  %v3559_v26 = vmul.f32 %v3511_v17, %v7663_v24  ;;  %v3560_v29 = vmul.f32 %v3512_v20, %v7660_v34  ;;  %v3561_v21 = vmul.f32 %v3513_v2, %v7665_v9  ;;  %v3353_v51 = vpop.permute.xlu0 %3352  ;;  %v7720_v44 = vld [vmem:[#allocation43_spill] sm:$0xff]  ;;  %v7722_v16 = vld [vmem:[#allocation21_spill] sm:$0xff] }
 0x7a9   :  { %v3562_v5 = vmul.f32 %v3514_v4, %v7672_v27  ;;  %v3563_v33 = vmul.f32 %v3515_v42, %v7676_v30  ;;  %v3564_v48 = vmul.f32 %v3516_v14, %v7678_v32  ;;  %v3393_v19 = vmul.f32 %v3353_v51, %v7702_v61  ;;  %v7723_v54 = vld [vmem:[#allocation52_spill] sm:$0xff] }
 0x7aa   :  { %3607 = vst [vmem:[#allocation2] sm:$0xff] %v3559_v26  ;;  %3608 = vst [vmem:[#allocation2 + $0x8] sm:$0xff] %v3560_v29  ;;  %v3394_v60 = vmul.f32 %v3353_v51, %v7703_v50  ;;  %v3395_v31 = vmul.f32 %v3353_v51, %v6773_v12  ;;  %v3396_v8 = vmul.f32 %v3353_v51, %v6803_v57 }
 0x7ab   :  { %3609 = vst [vmem:[#allocation2 + $0x10] sm:$0xff] %v3561_v21  ;;  %3610 = vst [vmem:[#allocation2 + $0x18] sm:$0xff] %v3562_v5  ;;  %v3397_v0 = vmul.f32 %v3353_v51, %v6853_v22  ;;  %v3398_v53 = vmul.f32 %v3353_v51, %v7719_v46  ;;  %v3389_v38 = vmul.f32 %v3348_v40, %v7720_v44 }
 0x7ac   :  { %3611 = vst [vmem:[#allocation2 + $0x20] sm:$0xff] %v3563_v33  ;;  %3612 = vst [vmem:[#allocation2 + $0x28] sm:$0xff] %v3564_v48  ;;  %v3390_v1 = vmul.f32 %v3348_v40, %v7721_v28  ;;  %v3391_v62 = vmul.f32 %v3348_v40, %v7722_v16  ;;  %v3392_v61 = vmul.f32 %v3348_v40, %v7723_v54  ;;  %v3441_v15 = vpop.permute.xlu0 %3440 }
 0x7ad   :  { %v3475_v50 = vadd.f32 %v3436_v35, %v3387_v39  ;;  %v3476_v18 = vadd.f32 %v3436_v35, %v3388_v45  ;;  %v3481_v12 = vadd.f32 %v3441_v15, %v3393_v19  ;;  %v3482_v52 = vadd.f32 %v3441_v15, %v3394_v60  ;;  %v3358_v40 = vpop.permute.xlu1 %3357 }
 0x7ae   :  { %v3483_v57 = vadd.f32 %v3441_v15, %v3395_v31  ;;  %v3484_v17 = vadd.f32 %v3441_v15, %v3396_v8  ;;  %v3485_v20 = vadd.f32 %v3441_v15, %v3397_v0  ;;  %v3486_v2 = vadd.f32 %v3441_v15, %v3398_v53 }
 0x7af   :  { %v3477_v22 = vadd.f32 %v3436_v35, %v3389_v38  ;;  %v3478_v4 = vadd.f32 %v3436_v35, %v3390_v1  ;;  %v3529_v42 = vmax.f32 %v3481_v12, 0.0  ;;  %v3530_v14 = vmax.f32 %v3482_v52, 0.0 }
 0x7b0   :  { %v3531_v26 = vmax.f32 %v3483_v57, 0.0  ;;  %v3532_v29 = vmax.f32 %v3484_v17, 0.0  ;;  %v3533_v21 = vmax.f32 %v3485_v20, 0.0  ;;  %v3534_v5 = vmax.f32 %v3486_v2, 0.0  ;;  %v7724_v17 = vld [vmem:[#allocation20_spill] sm:$0xff]  ;;  %v7725_v2 = vld [vmem:[#allocation45_spill] sm:$0xff] }
 0x7b1   :  { %v3479_v51 = vadd.f32 %v3436_v35, %v3391_v62  ;;  %v3480_v33 = vadd.f32 %v3436_v35, %v3392_v61  ;;  %v3577_v48 = vmul.f32 %v3529_v42, %v7663_v24  ;;  %v3578_v39 = vmul.f32 %v3530_v14, %v7660_v34  ;;  %v3446_v52 = vpop.permute.xlu1 %3445  ;;  %v7727_v42 = vld [vmem:[#allocation41_spill] sm:$0xff] }
 0x7b2   :  { %v3579_v23 = vmul.f32 %v3531_v26, %v7665_v9  ;;  %v3580_v45 = vmul.f32 %v3532_v29, %v7672_v27  ;;  %v3581_v19 = vmul.f32 %v3533_v21, %v7676_v30  ;;  %v3582_v60 = vmul.f32 %v3534_v5, %v7678_v32 }
 0x7b3   :  { %v3523_v31 = vmax.f32 %v3475_v50, 0.0  ;;  %v3524_v8 = vmax.f32 %v3476_v18, 0.0  ;;  %3625 = vst [vmem:[#allocation2 + $0x90] sm:$0xff] %v3577_v48  ;;  %3626 = vst [vmem:[#allocation2 + $0x98] sm:$0xff] %v3578_v39  ;;  %v3525_v35 = vmax.f32 %v3477_v22, 0.0  ;;  %v3526_v0 = vmax.f32 %v3478_v4, 0.0  ;;  %v3363_v44 = vpop.permute.xlu0 %3362 }
 0x7b4   :  { %3627 = vst [vmem:[#allocation2 + $0xa0] sm:$0xff] %v3579_v23  ;;  %3628 = vst [vmem:[#allocation2 + $0xa8] sm:$0xff] %v3580_v45  ;;  %v3527_v46 = vmax.f32 %v3479_v51, 0.0  ;;  %v3528_v53 = vmax.f32 %v3480_v33, 0.0  ;;  %v3405_v1 = vmul.f32 %v3363_v44, %v6787_v13  ;;  %v3406_v16 = vmul.f32 %v3363_v44, %v6791_v10  ;;  %v7726_v4 = vld [vmem:[#allocation10_spill] sm:$0xff] }
 0x7b5   :  { %3629 = vst [vmem:[#allocation2 + $0xb0] sm:$0xff] %v3581_v19  ;;  %3630 = vst [vmem:[#allocation2 + $0xb8] sm:$0xff] %v3582_v60  ;;  %v3571_v38 = vmul.f32 %v3523_v31, %v7663_v24  ;;  %v3572_v28 = vmul.f32 %v3524_v8, %v7660_v34  ;;  %v3573_v62 = vmul.f32 %v3525_v35, %v7665_v9 }
 0x7b6   :  { %v3574_v54 = vmul.f32 %v3526_v0, %v7672_v27  ;;  %v3575_v61 = vmul.f32 %v3527_v46, %v7676_v30  ;;  %v3576_v15 = vmul.f32 %v3528_v53, %v7678_v32  ;;  %v3407_v50 = vmul.f32 %v3363_v44, %v6823_v7 }
 0x7b7   :  { %3619 = vst [vmem:[#allocation2 + $0x60] sm:$0xff] %v3571_v38  ;;  %3620 = vst [vmem:[#allocation2 + $0x68] sm:$0xff] %v3572_v28  ;;  %v3408_v18 = vmul.f32 %v3363_v44, %v6857_v55  ;;  %v3409_v12 = vmul.f32 %v3363_v44, %v6907_v11  ;;  %v3410_v13 = vmul.f32 %v3363_v44, %v6919_v6  ;;  %v3451_v7 = vpop.permute.xlu0 %3450 }
 0x7b8   :  { %3621 = vst [vmem:[#allocation2 + $0x70] sm:$0xff] %v3573_v62  ;;  %3622 = vst [vmem:[#allocation2 + $0x78] sm:$0xff] %v3574_v54  ;;  %v3399_v10 = vmul.f32 %v3358_v40, %v6767_v41  ;;  %v3400_v57 = vmul.f32 %v3358_v40, %v6783_v49  ;;  %v3401_v20 = vmul.f32 %v3358_v40, %v7724_v17 }
 0x7b9   :  { %3623 = vst [vmem:[#allocation2 + $0x80] sm:$0xff] %v3575_v61  ;;  %3624 = vst [vmem:[#allocation2 + $0x88] sm:$0xff] %v3576_v15  ;;  %v3402_v22 = vmul.f32 %v3358_v40, %v7725_v2  ;;  %v3403_v55 = vmul.f32 %v3358_v40, %v7726_v4  ;;  %v3404_v11 = vmul.f32 %v3358_v40, %v7727_v42  ;;  %v3368_v8 = vpop.permute.xlu1 %3367 }
 0x7ba   :  { %v3493_v14 = vadd.f32 %v3451_v7, %v3405_v1  ;;  %v3494_v6 = vadd.f32 %v3451_v7, %v3406_v16  ;;  %v3495_v26 = vadd.f32 %v3451_v7, %v3407_v50  ;;  %v3496_v29 = vadd.f32 %v3451_v7, %v3408_v18 }
 0x7bb   :  { %v3497_v21 = vadd.f32 %v3451_v7, %v3409_v12  ;;  %v3498_v5 = vadd.f32 %v3451_v7, %v3410_v13  ;;  %v3487_v41 = vadd.f32 %v3446_v52, %v3399_v10  ;;  %v3488_v48 = vadd.f32 %v3446_v52, %v3400_v57 }
 0x7bc   :  { %v3541_v51 = vmax.f32 %v3493_v14, 0.0  ;;  %v3542_v33 = vmax.f32 %v3494_v6, 0.0  ;;  %v3543_v49 = vmax.f32 %v3495_v26, 0.0  ;;  %v3544_v39 = vmax.f32 %v3496_v29, 0.0  ;;  %v7728_v26 = vld [vmem:[#allocation15_spill] sm:$0xff] }
 0x7bd   :  { %v3545_v23 = vmax.f32 %v3497_v21, 0.0  ;;  %v3546_v45 = vmax.f32 %v3498_v5, 0.0  ;;  %v3489_v31 = vadd.f32 %v3446_v52, %v3401_v20  ;;  %v3490_v40 = vadd.f32 %v3446_v52, %v3402_v22  ;;  %v7729_v21 = vld [vmem:[#allocation46_spill] sm:$0xff] }
 0x7be   :  { %v3589_v19 = vmul.f32 %v3541_v51, %v7663_v24  ;;  %v3590_v60 = vmul.f32 %v3542_v33, %v7660_v34  ;;  %v3591_v35 = vmul.f32 %v3543_v49, %v7665_v9  ;;  %v3592_v0 = vmul.f32 %v3544_v39, %v7672_v27  ;;  %v3373_v54 = vpop.permute.xlu0 %3372 }
 0x7bf   :  { %v3593_v46 = vmul.f32 %v3545_v23, %v7676_v30  ;;  %v3594_v53 = vmul.f32 %v3546_v45, %v7678_v32  ;;  %v3491_v44 = vadd.f32 %v3446_v52, %v3403_v55  ;;  %v3492_v38 = vadd.f32 %v3446_v52, %v3404_v11 }
 0x7c0   :  { %3637 = vst [vmem:[#allocation2 + $0xf0] sm:$0xff] %v3589_v19  ;;  %3638 = vst [vmem:[#allocation2 + $0xf8] sm:$0xff] %v3590_v60  ;;  %v3535_v28 = vmax.f32 %v3487_v41, 0.0  ;;  %v3536_v1 = vmax.f32 %v3488_v48, 0.0  ;;  %v3537_v16 = vmax.f32 %v3489_v31, 0.0  ;;  %v3538_v62 = vmax.f32 %v3490_v40, 0.0 }
 0x7c1   :  { %3639 = vst [vmem:[#allocation2 + $0x100] sm:$0xff] %v3591_v35  ;;  %3640 = vst [vmem:[#allocation2 + $0x108] sm:$0xff] %v3592_v0  ;;  %v3411_v61 = vmul.f32 %v3368_v8, %v6843_v36  ;;  %v3412_v15 = vmul.f32 %v3368_v8, %v6847_v47  ;;  %v3539_v50 = vmax.f32 %v3491_v44, 0.0  ;;  %v3540_v18 = vmax.f32 %v3492_v38, 0.0 }
 0x7c2   :  { %3641 = vst [vmem:[#allocation2 + $0x110] sm:$0xff] %v3593_v46  ;;  %3642 = vst [vmem:[#allocation2 + $0x118] sm:$0xff] %v3594_v53  ;;  %v3583_v12 = vmul.f32 %v3535_v28, %v7663_v24  ;;  %v3584_v13 = vmul.f32 %v3536_v1, %v7660_v34  ;;  %v3585_v52 = vmul.f32 %v3537_v16, %v7665_v9  ;;  %v3461_v4 = vpop.permute.xlu0 %3460 }
 0x7c3   :  { %v3586_v10 = vmul.f32 %v3538_v62, %v7672_v27  ;;  %v3417_v57 = vmul.f32 %v3373_v54, %v6875_v63  ;;  %v3418_v17 = vmul.f32 %v3373_v54, %v7704_v43  ;;  %v3587_v20 = vmul.f32 %v3539_v50, %v7676_v30 }
 0x7c4   :  { %v3588_v36 = vmul.f32 %v3540_v18, %v7678_v32  ;;  %3631 = vst [vmem:[#allocation2 + $0xc0] sm:$0xff] %v3583_v12  ;;  %3632 = vst [vmem:[#allocation2 + $0xc8] sm:$0xff] %v3584_v13  ;;  %v3419_v47 = vmul.f32 %v3373_v54, %v7705_v3  ;;  %v3420_v2 = vmul.f32 %v3373_v54, %v6915_v58  ;;  %v3456_v3 = vpop.permute.xlu1 %3455 }
 0x7c5   :  { %3633 = vst [vmem:[#allocation2 + $0xd0] sm:$0xff] %v3585_v52  ;;  %3634 = vst [vmem:[#allocation2 + $0xd8] sm:$0xff] %v3586_v10  ;;  %v3421_v22 = vmul.f32 %v3373_v54, %v6933_v37  ;;  %v3422_v7 = vmul.f32 %v3373_v54, %v6937_v25  ;;  %v3413_v63 = vmul.f32 %v3368_v8, %v6861_v59 }
 0x7c6   :  { %v3414_v43 = vmul.f32 %v3368_v8, %v6891_v56  ;;  %3635 = vst [vmem:[#allocation2 + $0xe0] sm:$0xff] %v3587_v20  ;;  %3636 = vst [vmem:[#allocation2 + $0xe8] sm:$0xff] %v3588_v36  ;;  %v3505_v55 = vadd.f32 %v3461_v4, %v3417_v57  ;;  %v3506_v42 = vadd.f32 %v3461_v4, %v3418_v17 }
 0x7c7   :  { %v3507_v11 = vadd.f32 %v3461_v4, %v3419_v47  ;;  %v3508_v14 = vadd.f32 %v3461_v4, %v3420_v2  ;;  %v3509_v6 = vadd.f32 %v3461_v4, %v3421_v22  ;;  %v3510_v58 = vadd.f32 %v3461_v4, %v3422_v7 }
 0x7c8   :  { %v3415_v29 = vmul.f32 %v3368_v8, %v7728_v26  ;;  %v3416_v37 = vmul.f32 %v3368_v8, %v7729_v21  ;;  %v3553_v5 = vmax.f32 %v3505_v55, 0.0  ;;  %v3554_v25 = vmax.f32 %v3506_v42, 0.0 }
 0x7c9   :  { %v3555_v51 = vmax.f32 %v3507_v11, 0.0  ;;  %v3556_v33 = vmax.f32 %v3508_v14, 0.0  ;;  %v3557_v59 = vmax.f32 %v3509_v6, 0.0  ;;  %v3558_v41 = vmax.f32 %v3510_v58, 0.0 }
 0x7ca   :  { %v3499_v56 = vadd.f32 %v3456_v3, %v3411_v61  ;;  %v3500_v48 = vadd.f32 %v3456_v3, %v3412_v15  ;;  %v3601_v49 = vmul.f32 %v3553_v5, %v7663_v24  ;;  %v3602_v39 = vmul.f32 %v3554_v25, %v7660_v34 }
 0x7cb   :  { %v3603_v23 = vmul.f32 %v3555_v51, %v7665_v9  ;;  %v3604_v45 = vmul.f32 %v3556_v33, %v7672_v27  ;;  %v3605_v19 = vmul.f32 %v3557_v59, %v7676_v30  ;;  %v3606_v60 = vmul.f32 %v3558_v41, %v7678_v32 }
 0x7cc   :  { %v3501_v31 = vadd.f32 %v3456_v3, %v3413_v63  ;;  %v3502_v40 = vadd.f32 %v3456_v3, %v3414_v43  ;;  %3649 = vst [vmem:[#allocation2 + $0x150] sm:$0xff] %v3601_v49  ;;  %3650 = vst [vmem:[#allocation2 + $0x158] sm:$0xff] %v3602_v39  ;;  %v3503_v8 = vadd.f32 %v3456_v3, %v3415_v29  ;;  %v3547_v0 = vmax.f32 %v3499_v56, 0.0 }
 0x7cd   :  { %3651 = vst [vmem:[#allocation2 + $0x160] sm:$0xff] %v3603_v23  ;;  %3652 = vst [vmem:[#allocation2 + $0x168] sm:$0xff] %v3604_v45  ;;  %v3504_v35 = vadd.f32 %v3456_v3, %v3416_v37  ;;  %v3548_v46 = vmax.f32 %v3500_v48, 0.0 }
 0x7ce   :  { %3653 = vst [vmem:[#allocation2 + $0x170] sm:$0xff] %v3605_v19  ;;  %3654 = vst [vmem:[#allocation2 + $0x178] sm:$0xff] %v3606_v60  ;;  %v3549_v53 = vmax.f32 %v3501_v31, 0.0  ;;  %v3550_v44 = vmax.f32 %v3502_v40, 0.0  ;;  %v3551_v38 = vmax.f32 %v3503_v8, 0.0  ;;  %v3595_v1 = vmul.f32 %v3547_v0, %v7663_v24 }
 0x7cf   :  { %v3552_v28 = vmax.f32 %v3504_v35, 0.0  ;;  %v3596_v16 = vmul.f32 %v3548_v46, %v7660_v34 }
 0x7d0   :  { %v3597_v62 = vmul.f32 %v3549_v53, %v7665_v9  ;;  %v3598_v54 = vmul.f32 %v3550_v44, %v7672_v27  ;;  %v3599_v61 = vmul.f32 %v3551_v38, %v7676_v30  ;;  %3643 = vst [vmem:[#allocation2 + $0x120] sm:$0xff] %v3595_v1 }
 0x7d1   :  { %v3600_v15 = vmul.f32 %v3552_v28, %v7678_v32  ;;  %3644 = vst [vmem:[#allocation2 + $0x128] sm:$0xff] %v3596_v16 }
 0x7d2   :  { %3645 = vst [vmem:[#allocation2 + $0x130] sm:$0xff] %v3597_v62  ;;  %3646 = vst [vmem:[#allocation2 + $0x138] sm:$0xff] %v3598_v54 }
 0x7d3   :  { %3647 = vst [vmem:[#allocation2 + $0x140] sm:$0xff] %v3599_v61  ;;  %3648 = vst [vmem:[#allocation2 + $0x148] sm:$0xff] %v3600_v15 }
 0x7d4   :  { %3788 = shalt.err (!%p3785_p4)
}
 0x7d5   :  { %s3818_s0 = smov 768   ;;  %s3819_s16 = smov 48  }
 0x7d6   :  { %3666 = dma.vmem_to_hbm [thread:$0]  %s3661_s9, 6144, %s7266_s10, [#allocation3], %s3818_s0, %s3818_s0, %s3819_s16  }
 0x7d7   :  { %3797 = dma.done.wait [#allocation3], 6144  }
 0x7d8   :  { %3798 = vsyncadd [#allocation3], 4294961152 }
 0x7d9   :  { %3670 = vsyncpa [#allocation3], 1 }

</bundles_post_ra>
